<compile_context>
chip_gen: v6e
topology: v6e:2x2x1
jax: 0.10.0
libtpu: 0.0.40
codegen_flags: <defaults>
</compile_context>

<pallas_src>
import math
from functools import partial

import jax
import jax.numpy as jnp
from jax import lax
from jax.experimental import pallas as pl
from jax.experimental.pallas import tpu as pltpu


# ----------------------------------------------------------------------------
# Fused kernel: all layers, all batch rows, one invocation per batch chunk.
# ----------------------------------------------------------------------------
def fused_encoder_kernel(x_ref, bias_ref,
                         wqkv_ref, bqkv_ref, wo_ref, bo_ref,
                         w1_ref, b1_ref, w2_ref, b2_ref,
                         g1_ref, be1_ref, g2_ref, be2_ref,
                         o_ref, *, num_heads: int, num_layers: int):
    R, D = x_ref.shape                    # R = tokens in this block (B*S)
    H = num_heads
    Dh = D // H

    x0 = x_ref[...].astype(jnp.float32)
    # Hoisted additive attention bias, broadcast once to all heads
    # (JAX does not CSE broadcast_in_dim inside loops).
    bias_h = jnp.broadcast_to(bias_ref[...][None, :, :], (H, R, R))

    def layer(l, x):
        xb = x.astype(jnp.bfloat16)

        # Fused Q|K|V projection: one MXU pass with 3x wider N.
        # The 1/sqrt(Dh) attention scale is pre-folded into the Q slab.
        qkv = jnp.dot(xb, wqkv_ref[l],
                      preferred_element_type=jnp.float32) + bqkv_ref[l]
        q = qkv[:, 0 * D:1 * D]
        k = qkv[:, 1 * D:2 * D]
        v = qkv[:, 2 * D:3 * D]

        qh = q.reshape(R, H, Dh).astype(jnp.bfloat16)
        kh = k.reshape(R, H, Dh).astype(jnp.bfloat16)
        vh = v.reshape(R, H, Dh).astype(jnp.bfloat16)

        # Batched-head attention over the flattened token axis; cross-batch
        # and padded keys are removed by the -1e9 bias (exp underflows to 0).
        logits = jnp.einsum('qhd,khd->hqk', qh, kh,
                            preferred_element_type=jnp.float32)   # (H, R, R)
        logits = logits + bias_h
        logits = logits - jnp.max(logits, axis=-1, keepdims=True)
        p = jnp.exp(logits)
        p = p * pl.reciprocal(jnp.sum(p, axis=-1, keepdims=True), approx=True)

        ctx = jnp.einsum('hqk,khd->qhd', p.astype(jnp.bfloat16), vh,
                         preferred_element_type=jnp.float32)      # (R, H, Dh)
        att = jnp.dot(ctx.reshape(R, D).astype(jnp.bfloat16), wo_ref[l],
                      preferred_element_type=jnp.float32) + bo_ref[l]

        # Residual + LayerNorm 1 (two-pass variance, eps=1e-6, rsqrt on EUP).
        h1 = x + att
        mu1 = jnp.mean(h1, axis=-1, keepdims=True)
        d1 = h1 - mu1
        var1 = jnp.mean(d1 * d1, axis=-1, keepdims=True)
        n1 = d1 * lax.rsqrt(var1 + 1e-6) * g1_ref[l] + be1_ref[l]

        # FeedForward: Linear -> ReLU -> Linear (bf16 MXU inputs, f32 acc).
        f = jnp.dot(n1.astype(jnp.bfloat16), w1_ref[l],
                    preferred_element_type=jnp.float32) + b1_ref[l]
        f = jnp.maximum(f, 0.0)
        f = jnp.dot(f.astype(jnp.bfloat16), w2_ref[l],
                    preferred_element_type=jnp.float32) + b2_ref[l]

        # Residual + LayerNorm 2.
        h2 = n1 + f
        mu2 = jnp.mean(h2, axis=-1, keepdims=True)
        d2 = h2 - mu2
        var2 = jnp.mean(d2 * d2, axis=-1, keepdims=True)
        return d2 * lax.rsqrt(var2 + 1e-6) * g2_ref[l] + be2_ref[l]

    out = lax.fori_loop(0, num_layers, layer, x0, unroll=True)
    # TODO(synk): D=32 < 128 lanes -> masked output stores; a lane-dense
    # (chunk, S*D) out layout would need an in-kernel relayout, skipped here.
    o_ref[...] = out.astype(o_ref.dtype)


def _vmem_limit_bytes(R, D, FF, H, L):
    """Actual footprint estimate, clamped to a safe fraction of chip VMEM."""
    w_bytes = L * (3 * D * D + D * D + D * FF + FF * D) * 2    # bf16 weights
    small_bytes = L * (3 * D + D + FF + D + 4 * D) * 4         # biases + LN (f32)
    io_bytes = (2 * R * D + R * R) * 4 * 2                     # x, out, bias (x2 bufs)
    inter_bytes = (3 * R * D + 6 * R * D + 2 * H * R * R + R * FF) * 4
    est = w_bytes + small_bytes + io_bytes + inter_bytes
    cap = 48 << 20                                             # safe on v7x (64 MiB/TC)
    try:
        cap = int(0.75 * pltpu.get_tpu_info().vmem_capacity_bytes)
    except Exception:
        pass
    return int(min(max(4 * est, 4 << 20), cap))


def transformer_encoder_pallas(x2d, attn_bias, params, num_heads, *,
                               batch_chunks=1):
    """x2d: (B*S, D) f32; attn_bias: (B*S, B*S) f32 additive mask;
       params: 12 stacked arrays with leading layer axis L."""
    R, D = x2d.shape
    L = params[0].shape[0]
    FF = params[4].shape[-1]          # stacked w1 is (L, D, FF)
    assert R % batch_chunks == 0
    cR = R // batch_chunks            # NOTE: chunk must align to batch bounds
                                      # and keep cR a multiple of 8 (sublane).

    def whole(p):                     # VMEM-resident, fetched once (constant idx)
        nd = p.ndim
        return pl.BlockSpec(p.shape, lambda i, _nd=nd: (0,) * _nd)

    in_specs = [
        pl.BlockSpec((cR, D), lambda i: (i, 0)),     # token rows of this chunk
        pl.BlockSpec((cR, cR), lambda i: (i, i)),    # diagonal bias block
    ] + [whole(p) for p in params]

    out = pl.pallas_call(
        partial(fused_encoder_kernel, num_heads=num_heads, num_layers=L),
        out_shape=jax.ShapeDtypeStruct((R, D), jnp.float32),
        grid_spec=pltpu.PrefetchScalarGridSpec(
            num_scalar_prefetch=0,
            grid=(batch_chunks,),                    # 1 on v5e/v6e; 2 on v7x (2 TCs)
            in_specs=in_specs,
            out_specs=pl.BlockSpec((cR, D), lambda i: (i, 0)),
        ),
        compiler_params=pltpu.CompilerParams(
            dimension_semantics=("parallel",),
            vmem_limit_bytes=_vmem_limit_bytes(cR, D, FF, num_heads, L)),
    )(x2d, attn_bias, *params)
    return out


# ----------------------------------------------------------------------------
# Plain-JAX glue: embedding, positional encoding, parameter init / fusion.
# ----------------------------------------------------------------------------
def make_positional_encoding(seq_len, dim):
    position = jnp.arange(seq_len, dtype=jnp.float32)[:, None]
    div_term = jnp.exp(jnp.arange(0, dim, 2, dtype=jnp.float32)
                       * (-(math.log(10000.0) / dim)))
    pe = jnp.zeros((seq_len, dim), dtype=jnp.float32)
    pe = pe.at[:, 0::2].set(jnp.sin(position * div_term))
    pe = pe.at[:, 1::2].set(jnp.cos(position * div_term))
    return pe[None]                                            # (1, S, D)


def init_layer_params(key, dim, ff_size):
    ks = jax.random.split(key, 6)
    s = 0.02
    z = lambda *shp: jnp.zeros(shp, jnp.float32)
    return dict(
        wq=jax.random.normal(ks[0], (dim, dim), jnp.float32) * s,
        wk=jax.random.normal(ks[1], (dim, dim), jnp.float32) * s,
        wv=jax.random.normal(ks[2], (dim, dim), jnp.float32) * s,
        wo=jax.random.normal(ks[3], (dim, dim), jnp.float32) * s,
        w1=jax.random.normal(ks[4], (dim, ff_size), jnp.float32) * s,
        w2=jax.random.normal(ks[5], (ff_size, dim), jnp.float32) * s,
        bq=z(1, dim), bk=z(1, dim), bv=z(1, dim), bo=z(1, dim),
        b1=z(1, ff_size), b2=z(1, dim),
        g1=jnp.ones((1, dim), jnp.float32), be1=z(1, dim),
        g2=jnp.ones((1, dim), jnp.float32), be2=z(1, dim))


def stack_and_fuse_params(layer_params_list, num_heads):
    """Stack per-layer params on a leading L axis, fuse Q|K|V, fold the
       1/sqrt(Dh) attention scale into the Q slab, cast weights to bf16."""
    D = layer_params_list[0]['wq'].shape[0]
    scale = 1.0 / math.sqrt(D // num_heads)
    st = lambda name: jnp.stack([lp[name] for lp in layer_params_list], axis=0)
    wqkv = jnp.concatenate([st('wq') * scale, st('wk'), st('wv')],
                           axis=-1).astype(jnp.bfloat16)           # (L, D, 3D)
    bqkv = jnp.concatenate([st('bq') * scale, st('bk'), st('bv')],
                           axis=-1)                                # (L, 1, 3D) f32
    return [
        wqkv, bqkv,
        st('wo').astype(jnp.bfloat16), st('bo'),
        st('w1').astype(jnp.bfloat16), st('b1'),
        st('w2').astype(jnp.bfloat16), st('b2'),
        st('g1'), st('be1'), st('g2'), st('be2'),
    ]


def transformer_encoder_forward(src_input_ids, input_padding_mask,
                                embedding_table, layer_params_list, num_heads,
                                batch_chunks=1):
    """src_input_ids: (B, S) int32; input_padding_mask: (B, 1, 1, S) f32
       (1.0 at padded positions)."""
    B, S = src_input_ids.shape
    D = embedding_table.shape[1]

    # Embedding lookup + positional encoding (cheap glue); dropout = identity.
    x = embedding_table[src_input_ids] + make_positional_encoding(S, D)
    x2d = x.reshape(B * S, D).astype(jnp.float32)

    # Additive attention bias over flattened tokens: -1e9 for padded keys and
    # for cross-batch (i, j) pairs -> per-batch softmax is preserved exactly.
    pad_flat = input_padding_mask.reshape(B * S).astype(jnp.float32)
    bid = jnp.arange(B * S, dtype=jnp.int32) // S
    cross = (bid[:, None] != bid[None, :]).astype(jnp.float32)
    attn_bias = jnp.maximum(cross, pad_flat[None, :]) * (-1.0e9)   # (B*S, B*S)

    params = stack_and_fuse_params(layer_params_list, num_heads)
    out2d = transformer_encoder_pallas(x2d, attn_bias, params, num_heads,
                                       batch_chunks=batch_chunks)
    return out2d.reshape(B, S, D)


# ----------------------------------------------------------------------------
if __name__ == "__main__":
    # Small config consistent with the module (D=32 < 128 lanes by design of
    # the toy config; padding D toward 128 would change module semantics).
    B, S = 2, 8
    DIM, FF, HEADS, LAYERS, VOCAB = 32, 64, 4, 2, 50

    key = jax.random.PRNGKey(0)
    k_emb, k_ids, *k_layers = jax.random.split(key, 2 + LAYERS)

    embedding_table = jax.random.normal(k_emb, (VOCAB, DIM), jnp.float32) * 0.02
    layer_params_list = [init_layer_params(k_layers[i], DIM, FF)
                         for i in range(LAYERS)]

    src_input_ids = jax.random.randint(k_ids, (B, S), 0, VOCAB, dtype=jnp.int32)
    # Padding mask: 1.0 at padded positions (last two tokens of sequence 1).
    pad = jnp.zeros((B, S), jnp.float32).at[1, -2:].set(1.0)
    input_padding_mask = pad[:, None, None, :]                    # (B, 1, 1, S)

    out = transformer_encoder_forward(src_input_ids, input_padding_mask,
                                      embedding_table, layer_params_list, HEADS)
    out = jax.block_until_ready(out)

    assert out.shape == (B, S, DIM) and out.dtype == jnp.float32
    assert bool(jnp.all(jnp.isfinite(out)))
    print("KERNEL_OK")
</pallas_src>

<mosaic_0001>
module attributes {stable_mosaic.version = 11 : i64} {
  func.func @fused_encoder_kernel(%arg0: i32, %arg1: memref<16x32xf32, #tpu.memory_space<vmem>>, %arg2: memref<16x16xf32, #tpu.memory_space<vmem>>, %arg3: memref<2x32x96xbf16, #tpu.memory_space<vmem>>, %arg4: memref<2x1x96xf32, #tpu.memory_space<vmem>>, %arg5: memref<2x32x32xbf16, #tpu.memory_space<vmem>>, %arg6: memref<2x1x32xf32, #tpu.memory_space<vmem>>, %arg7: memref<2x32x64xbf16, #tpu.memory_space<vmem>>, %arg8: memref<2x1x64xf32, #tpu.memory_space<vmem>>, %arg9: memref<2x64x32xbf16, #tpu.memory_space<vmem>>, %arg10: memref<2x1x32xf32, #tpu.memory_space<vmem>>, %arg11: memref<2x1x32xf32, #tpu.memory_space<vmem>>, %arg12: memref<2x1x32xf32, #tpu.memory_space<vmem>>, %arg13: memref<2x1x32xf32, #tpu.memory_space<vmem>>, %arg14: memref<2x1x32xf32, #tpu.memory_space<vmem>>, %arg15: memref<16x32xf32, #tpu.memory_space<vmem>>) attributes {dimension_semantics = [#tpu.dimension_semantics<parallel>], iteration_bounds = array<i64: 1>, scalar_prefetch = 0 : i64, scratch_operands = 0 : i64, tpu.core_type = #tpu.core_type<tc>, window_params = [{transform_indices = @transform_0, window_bounds = array<i64: 16, 32>}, {transform_indices = @transform_1, window_bounds = array<i64: 16, 16>}, {pipeline_mode = #tpu.pipeline_mode<synchronous>, transform_indices = @transform_2, window_bounds = array<i64: 2, 32, 96>}, {pipeline_mode = #tpu.pipeline_mode<synchronous>, transform_indices = @transform_3, window_bounds = array<i64: 2, 1, 96>}, {pipeline_mode = #tpu.pipeline_mode<synchronous>, transform_indices = @transform_4, window_bounds = array<i64: 2, 32, 32>}, {pipeline_mode = #tpu.pipeline_mode<synchronous>, transform_indices = @transform_5, window_bounds = array<i64: 2, 1, 32>}, {pipeline_mode = #tpu.pipeline_mode<synchronous>, transform_indices = @transform_6, window_bounds = array<i64: 2, 32, 64>}, {pipeline_mode = #tpu.pipeline_mode<synchronous>, transform_indices = @transform_7, window_bounds = array<i64: 2, 1, 64>}, {pipeline_mode = #tpu.pipeline_mode<synchronous>, transform_indices = @transform_8, window_bounds = array<i64: 2, 64, 32>}, {pipeline_mode = #tpu.pipeline_mode<synchronous>, transform_indices = @transform_9, window_bounds = array<i64: 2, 1, 32>}, {pipeline_mode = #tpu.pipeline_mode<synchronous>, transform_indices = @transform_10, window_bounds = array<i64: 2, 1, 32>}, {pipeline_mode = #tpu.pipeline_mode<synchronous>, transform_indices = @transform_11, window_bounds = array<i64: 2, 1, 32>}, {pipeline_mode = #tpu.pipeline_mode<synchronous>, transform_indices = @transform_12, window_bounds = array<i64: 2, 1, 32>}, {pipeline_mode = #tpu.pipeline_mode<synchronous>, transform_indices = @transform_13, window_bounds = array<i64: 2, 1, 32>}, {transform_indices = @transform_14, window_bounds = array<i64: 16, 32>}]} {
    %c0 = arith.constant 0 : index
    %c0_0 = arith.constant 0 : index
    %0 = vector.load %arg1[%c0, %c0_0] : memref<16x32xf32, #tpu.memory_space<vmem>>, vector<16x32xf32>
    %c0_1 = arith.constant 0 : index
    %c0_2 = arith.constant 0 : index
    %1 = vector.load %arg2[%c0_1, %c0_2] : memref<16x16xf32, #tpu.memory_space<vmem>>, vector<16x16xf32>
    %2 = vector.shape_cast %1 : vector<16x16xf32> to vector<1x16x16xf32>
    %3 = vector.shape_cast %2 : vector<1x16x16xf32> to vector<1x16x16xf32>
    %4 = vector.broadcast %3 : vector<1x16x16xf32> to vector<4x16x16xf32>
    %c0_i32 = arith.constant 0 : i32
    %5 = arith.truncf %0 : vector<16x32xf32> to vector<16x32xbf16>
    %6 = arith.index_cast %c0_i32 : i32 to index
    %c0_3 = arith.constant 0 : index
    %c0_4 = arith.constant 0 : index
    %7 = vector.load %arg3[%6, %c0_3, %c0_4] : memref<2x32x96xbf16, #tpu.memory_space<vmem>>, vector<1x32x96xbf16>
    %8 = vector.shape_cast %7 : vector<1x32x96xbf16> to vector<32x96xbf16>
    %cst = arith.constant dense<0.000000e+00> : vector<16x96xf32>
    %9 = tpu.matmul %5, %8, %cst {dimension_numbers = #tpu.dot_dimension_numbers<[1], [0], [0], [1], [0, 0, 1, 1], [], []>} : vector<16x32xbf16>, vector<32x96xbf16>, vector<16x96xf32> -> vector<16x96xf32>
    %10 = arith.index_cast %c0_i32 : i32 to index
    %c0_5 = arith.constant 0 : index
    %c0_6 = arith.constant 0 : index
    %11 = vector.load %arg4[%10, %c0_5, %c0_6] : memref<2x1x96xf32, #tpu.memory_space<vmem>>, vector<1x1x96xf32>
    %12 = vector.shape_cast %11 : vector<1x1x96xf32> to vector<1x96xf32>
    %13 = vector.broadcast %12 : vector<1x96xf32> to vector<16x96xf32>
    %14 = arith.addf %9, %13 : vector<16x96xf32>
    %15 = vector.extract_strided_slice %14 {offsets = [0, 0], sizes = [16, 32], strides = [1, 1]} : vector<16x96xf32> to vector<16x32xf32>
    %16 = vector.extract_strided_slice %14 {offsets = [0, 32], sizes = [16, 32], strides = [1, 1]} : vector<16x96xf32> to vector<16x32xf32>
    %17 = vector.extract_strided_slice %14 {offsets = [0, 64], sizes = [16, 32], strides = [1, 1]} : vector<16x96xf32> to vector<16x32xf32>
    %18 = vector.shape_cast %15 : vector<16x32xf32> to vector<16x4x8xf32>
    %19 = arith.truncf %18 : vector<16x4x8xf32> to vector<16x4x8xbf16>
    %20 = vector.shape_cast %16 : vector<16x32xf32> to vector<16x4x8xf32>
    %21 = arith.truncf %20 : vector<16x4x8xf32> to vector<16x4x8xbf16>
    %22 = vector.shape_cast %17 : vector<16x32xf32> to vector<16x4x8xf32>
    %23 = arith.truncf %22 : vector<16x4x8xf32> to vector<16x4x8xbf16>
    "tpu.trace_start"() <{level = 10 : i32, message = "qhd,khd->hqk"}> : () -> ()
    %cst_7 = arith.constant dense<0.000000e+00> : vector<4x16x16xf32>
    %24 = tpu.matmul %19, %21, %cst_7 {dimension_numbers = #tpu.dot_dimension_numbers<[2], [2], [0], [0], [0, 1, 0, 0, 1, 0], [1], [1]>} : vector<16x4x8xbf16>, vector<16x4x8xbf16>, vector<4x16x16xf32> -> vector<4x16x16xf32>
    "tpu.trace_stop"() : () -> ()
    %25 = arith.addf %24, %4 : vector<4x16x16xf32>
    %cst_8 = arith.constant dense<0xFF800000> : vector<4x16xf32>
    %26 = vector.multi_reduction <maximumf>, %25, %cst_8 [2] : vector<4x16x16xf32> to vector<4x16xf32>
    %27 = vector.shape_cast %26 : vector<4x16xf32> to vector<4x16x1xf32>
    %28 = vector.broadcast %27 : vector<4x16x1xf32> to vector<4x16x16xf32>
    %29 = arith.subf %25, %28 : vector<4x16x16xf32>
    %30 = math.exp %29 : vector<4x16x16xf32>
    %cst_9 = arith.constant dense<0.000000e+00> : vector<4x16xf32>
    %31 = vector.multi_reduction <add>, %30, %cst_9 [2] : vector<4x16x16xf32> to vector<4x16xf32>
    %32 = vector.shape_cast %31 : vector<4x16xf32> to vector<4x16x1xf32>
    %33 = tpu.reciprocal %32 {approx = true} : vector<4x16x1xf32> -> vector<4x16x1xf32>
    %34 = vector.broadcast %33 : vector<4x16x1xf32> to vector<4x16x16xf32>
    %35 = arith.mulf %30, %34 : vector<4x16x16xf32>
    %36 = arith.truncf %35 : vector<4x16x16xf32> to vector<4x16x16xbf16>
    "tpu.trace_start"() <{level = 10 : i32, message = "hqk,khd->qhd"}> : () -> ()
    %cst_10 = arith.constant dense<0.000000e+00> : vector<4x8x16xf32>
    %37 = tpu.matmul %23, %36, %cst_10 {dimension_numbers = #tpu.dot_dimension_numbers<[0], [2], [2], [1], [0, 1, 0, 2, 1, 1], [1], [0]>} : vector<16x4x8xbf16>, vector<4x16x16xbf16>, vector<4x8x16xf32> -> vector<4x8x16xf32>
    %38 = tpu.transpose %37, [2, 0, 1] : vector<4x8x16xf32> -> vector<16x4x8xf32>
    "tpu.trace_stop"() : () -> ()
    %39 = vector.shape_cast %38 : vector<16x4x8xf32> to vector<16x32xf32>
    %40 = arith.truncf %39 : vector<16x32xf32> to vector<16x32xbf16>
    %41 = arith.index_cast %c0_i32 : i32 to index
    %c0_11 = arith.constant 0 : index
    %c0_12 = arith.constant 0 : index
    %42 = vector.load %arg5[%41, %c0_11, %c0_12] : memref<2x32x32xbf16, #tpu.memory_space<vmem>>, vector<1x32x32xbf16>
    %43 = vector.shape_cast %42 : vector<1x32x32xbf16> to vector<32x32xbf16>
    %cst_13 = arith.constant dense<0.000000e+00> : vector<16x32xf32>
    %44 = tpu.matmul %40, %43, %cst_13 {dimension_numbers = #tpu.dot_dimension_numbers<[1], [0], [0], [1], [0, 0, 1, 1], [], []>} : vector<16x32xbf16>, vector<32x32xbf16>, vector<16x32xf32> -> vector<16x32xf32>
    %45 = arith.index_cast %c0_i32 : i32 to index
    %c0_14 = arith.constant 0 : index
    %c0_15 = arith.constant 0 : index
    %46 = vector.load %arg6[%45, %c0_14, %c0_15] : memref<2x1x32xf32, #tpu.memory_space<vmem>>, vector<1x1x32xf32>
    %47 = vector.shape_cast %46 : vector<1x1x32xf32> to vector<1x32xf32>
    %48 = vector.broadcast %47 : vector<1x32xf32> to vector<16x32xf32>
    %49 = arith.addf %44, %48 : vector<16x32xf32>
    %50 = arith.addf %0, %49 : vector<16x32xf32>
    %cst_16 = arith.constant dense<0.000000e+00> : vector<16xf32>
    %51 = vector.multi_reduction <add>, %50, %cst_16 [1] : vector<16x32xf32> to vector<16xf32>
    %52 = vector.shape_cast %51 : vector<16xf32> to vector<16x1xf32>
    %cst_17 = arith.constant 3.200000e+01 : f32
    %53 = vector.broadcast %cst_17 : f32 to vector<16x1xf32>
    %54 = arith.divf %52, %53 : vector<16x1xf32>
    %55 = vector.broadcast %54 : vector<16x1xf32> to vector<16x32xf32>
    %56 = arith.subf %50, %55 : vector<16x32xf32>
    %57 = arith.mulf %56, %56 : vector<16x32xf32>
    %cst_18 = arith.constant dense<0.000000e+00> : vector<16xf32>
    %58 = vector.multi_reduction <add>, %57, %cst_18 [1] : vector<16x32xf32> to vector<16xf32>
    %59 = vector.shape_cast %58 : vector<16xf32> to vector<16x1xf32>
    %cst_19 = arith.constant 3.200000e+01 : f32
    %60 = vector.broadcast %cst_19 : f32 to vector<16x1xf32>
    %61 = arith.divf %59, %60 : vector<16x1xf32>
    %cst_20 = arith.constant 9.99999997E-7 : f32
    %62 = vector.broadcast %cst_20 : f32 to vector<16x1xf32>
    %63 = arith.addf %61, %62 : vector<16x1xf32>
    %64 = math.rsqrt %63 : vector<16x1xf32>
    %65 = vector.broadcast %64 : vector<16x1xf32> to vector<16x32xf32>
    %66 = arith.mulf %56, %65 : vector<16x32xf32>
    %67 = arith.index_cast %c0_i32 : i32 to index
    %c0_21 = arith.constant 0 : index
    %c0_22 = arith.constant 0 : index
    %68 = vector.load %arg11[%67, %c0_21, %c0_22] : memref<2x1x32xf32, #tpu.memory_space<vmem>>, vector<1x1x32xf32>
    %69 = vector.shape_cast %68 : vector<1x1x32xf32> to vector<1x32xf32>
    %70 = vector.broadcast %69 : vector<1x32xf32> to vector<16x32xf32>
    %71 = arith.mulf %66, %70 : vector<16x32xf32>
    %72 = arith.index_cast %c0_i32 : i32 to index
    %c0_23 = arith.constant 0 : index
    %c0_24 = arith.constant 0 : index
    %73 = vector.load %arg12[%72, %c0_23, %c0_24] : memref<2x1x32xf32, #tpu.memory_space<vmem>>, vector<1x1x32xf32>
    %74 = vector.shape_cast %73 : vector<1x1x32xf32> to vector<1x32xf32>
    %75 = vector.broadcast %74 : vector<1x32xf32> to vector<16x32xf32>
    %76 = arith.addf %71, %75 : vector<16x32xf32>
    %77 = arith.truncf %76 : vector<16x32xf32> to vector<16x32xbf16>
    %78 = arith.index_cast %c0_i32 : i32 to index
    %c0_25 = arith.constant 0 : index
    %c0_26 = arith.constant 0 : index
    %79 = vector.load %arg7[%78, %c0_25, %c0_26] : memref<2x32x64xbf16, #tpu.memory_space<vmem>>, vector<1x32x64xbf16>
    %80 = vector.shape_cast %79 : vector<1x32x64xbf16> to vector<32x64xbf16>
    %cst_27 = arith.constant dense<0.000000e+00> : vector<16x64xf32>
    %81 = tpu.matmul %77, %80, %cst_27 {dimension_numbers = #tpu.dot_dimension_numbers<[1], [0], [0], [1], [0, 0, 1, 1], [], []>} : vector<16x32xbf16>, vector<32x64xbf16>, vector<16x64xf32> -> vector<16x64xf32>
    %82 = arith.index_cast %c0_i32 : i32 to index
    %c0_28 = arith.constant 0 : index
    %c0_29 = arith.constant 0 : index
    %83 = vector.load %arg8[%82, %c0_28, %c0_29] : memref<2x1x64xf32, #tpu.memory_space<vmem>>, vector<1x1x64xf32>
    %84 = vector.shape_cast %83 : vector<1x1x64xf32> to vector<1x64xf32>
    %85 = vector.broadcast %84 : vector<1x64xf32> to vector<16x64xf32>
    %86 = arith.addf %81, %85 : vector<16x64xf32>
    %cst_30 = arith.constant 0.000000e+00 : f32
    %87 = vector.broadcast %cst_30 : f32 to vector<16x64xf32>
    %88 = arith.maximumf %86, %87 : vector<16x64xf32>
    %89 = arith.truncf %88 : vector<16x64xf32> to vector<16x64xbf16>
    %90 = arith.index_cast %c0_i32 : i32 to index
    %c0_31 = arith.constant 0 : index
    %c0_32 = arith.constant 0 : index
    %91 = vector.load %arg9[%90, %c0_31, %c0_32] : memref<2x64x32xbf16, #tpu.memory_space<vmem>>, vector<1x64x32xbf16>
    %92 = vector.shape_cast %91 : vector<1x64x32xbf16> to vector<64x32xbf16>
    %cst_33 = arith.constant dense<0.000000e+00> : vector<16x32xf32>
    %93 = tpu.matmul %89, %92, %cst_33 {dimension_numbers = #tpu.dot_dimension_numbers<[1], [0], [0], [1], [0, 0, 1, 1], [], []>} : vector<16x64xbf16>, vector<64x32xbf16>, vector<16x32xf32> -> vector<16x32xf32>
    %94 = arith.index_cast %c0_i32 : i32 to index
    %c0_34 = arith.constant 0 : index
    %c0_35 = arith.constant 0 : index
    %95 = vector.load %arg10[%94, %c0_34, %c0_35] : memref<2x1x32xf32, #tpu.memory_space<vmem>>, vector<1x1x32xf32>
    %96 = vector.shape_cast %95 : vector<1x1x32xf32> to vector<1x32xf32>
    %97 = vector.broadcast %96 : vector<1x32xf32> to vector<16x32xf32>
    %98 = arith.addf %93, %97 : vector<16x32xf32>
    %99 = arith.addf %76, %98 : vector<16x32xf32>
    %cst_36 = arith.constant dense<0.000000e+00> : vector<16xf32>
    %100 = vector.multi_reduction <add>, %99, %cst_36 [1] : vector<16x32xf32> to vector<16xf32>
    %101 = vector.shape_cast %100 : vector<16xf32> to vector<16x1xf32>
    %cst_37 = arith.constant 3.200000e+01 : f32
    %102 = vector.broadcast %cst_37 : f32 to vector<16x1xf32>
    %103 = arith.divf %101, %102 : vector<16x1xf32>
    %104 = vector.broadcast %103 : vector<16x1xf32> to vector<16x32xf32>
    %105 = arith.subf %99, %104 : vector<16x32xf32>
    %106 = arith.mulf %105, %105 : vector<16x32xf32>
    %cst_38 = arith.constant dense<0.000000e+00> : vector<16xf32>
    %107 = vector.multi_reduction <add>, %106, %cst_38 [1] : vector<16x32xf32> to vector<16xf32>
    %108 = vector.shape_cast %107 : vector<16xf32> to vector<16x1xf32>
    %cst_39 = arith.constant 3.200000e+01 : f32
    %109 = vector.broadcast %cst_39 : f32 to vector<16x1xf32>
    %110 = arith.divf %108, %109 : vector<16x1xf32>
    %cst_40 = arith.constant 9.99999997E-7 : f32
    %111 = vector.broadcast %cst_40 : f32 to vector<16x1xf32>
    %112 = arith.addf %110, %111 : vector<16x1xf32>
    %113 = math.rsqrt %112 : vector<16x1xf32>
    %114 = vector.broadcast %113 : vector<16x1xf32> to vector<16x32xf32>
    %115 = arith.mulf %105, %114 : vector<16x32xf32>
    %116 = arith.index_cast %c0_i32 : i32 to index
    %c0_41 = arith.constant 0 : index
    %c0_42 = arith.constant 0 : index
    %117 = vector.load %arg13[%116, %c0_41, %c0_42] : memref<2x1x32xf32, #tpu.memory_space<vmem>>, vector<1x1x32xf32>
    %118 = vector.shape_cast %117 : vector<1x1x32xf32> to vector<1x32xf32>
    %119 = vector.broadcast %118 : vector<1x32xf32> to vector<16x32xf32>
    %120 = arith.mulf %115, %119 : vector<16x32xf32>
    %121 = arith.index_cast %c0_i32 : i32 to index
    %c0_43 = arith.constant 0 : index
    %c0_44 = arith.constant 0 : index
    %122 = vector.load %arg14[%121, %c0_43, %c0_44] : memref<2x1x32xf32, #tpu.memory_space<vmem>>, vector<1x1x32xf32>
    %123 = vector.shape_cast %122 : vector<1x1x32xf32> to vector<1x32xf32>
    %124 = vector.broadcast %123 : vector<1x32xf32> to vector<16x32xf32>
    %125 = arith.addf %120, %124 : vector<16x32xf32>
    %c1_i32 = arith.constant 1 : i32
    %126 = arith.truncf %125 : vector<16x32xf32> to vector<16x32xbf16>
    %127 = arith.index_cast %c1_i32 : i32 to index
    %c0_45 = arith.constant 0 : index
    %c0_46 = arith.constant 0 : index
    %128 = vector.load %arg3[%127, %c0_45, %c0_46] : memref<2x32x96xbf16, #tpu.memory_space<vmem>>, vector<1x32x96xbf16>
    %129 = vector.shape_cast %128 : vector<1x32x96xbf16> to vector<32x96xbf16>
    %cst_47 = arith.constant dense<0.000000e+00> : vector<16x96xf32>
    %130 = tpu.matmul %126, %129, %cst_47 {dimension_numbers = #tpu.dot_dimension_numbers<[1], [0], [0], [1], [0, 0, 1, 1], [], []>} : vector<16x32xbf16>, vector<32x96xbf16>, vector<16x96xf32> -> vector<16x96xf32>
    %131 = arith.index_cast %c1_i32 : i32 to index
    %c0_48 = arith.constant 0 : index
    %c0_49 = arith.constant 0 : index
    %132 = vector.load %arg4[%131, %c0_48, %c0_49] : memref<2x1x96xf32, #tpu.memory_space<vmem>>, vector<1x1x96xf32>
    %133 = vector.shape_cast %132 : vector<1x1x96xf32> to vector<1x96xf32>
    %134 = vector.broadcast %133 : vector<1x96xf32> to vector<16x96xf32>
    %135 = arith.addf %130, %134 : vector<16x96xf32>
    %136 = vector.extract_strided_slice %135 {offsets = [0, 0], sizes = [16, 32], strides = [1, 1]} : vector<16x96xf32> to vector<16x32xf32>
    %137 = vector.extract_strided_slice %135 {offsets = [0, 32], sizes = [16, 32], strides = [1, 1]} : vector<16x96xf32> to vector<16x32xf32>
    %138 = vector.extract_strided_slice %135 {offsets = [0, 64], sizes = [16, 32], strides = [1, 1]} : vector<16x96xf32> to vector<16x32xf32>
    %139 = vector.shape_cast %136 : vector<16x32xf32> to vector<16x4x8xf32>
    %140 = arith.truncf %139 : vector<16x4x8xf32> to vector<16x4x8xbf16>
    %141 = vector.shape_cast %137 : vector<16x32xf32> to vector<16x4x8xf32>
    %142 = arith.truncf %141 : vector<16x4x8xf32> to vector<16x4x8xbf16>
    %143 = vector.shape_cast %138 : vector<16x32xf32> to vector<16x4x8xf32>
    %144 = arith.truncf %143 : vector<16x4x8xf32> to vector<16x4x8xbf16>
    "tpu.trace_start"() <{level = 10 : i32, message = "qhd,khd->hqk"}> : () -> ()
    %cst_50 = arith.constant dense<0.000000e+00> : vector<4x16x16xf32>
    %145 = tpu.matmul %140, %142, %cst_50 {dimension_numbers = #tpu.dot_dimension_numbers<[2], [2], [0], [0], [0, 1, 0, 0, 1, 0], [1], [1]>} : vector<16x4x8xbf16>, vector<16x4x8xbf16>, vector<4x16x16xf32> -> vector<4x16x16xf32>
    "tpu.trace_stop"() : () -> ()
    %146 = arith.addf %145, %4 : vector<4x16x16xf32>
    %cst_51 = arith.constant dense<0xFF800000> : vector<4x16xf32>
    %147 = vector.multi_reduction <maximumf>, %146, %cst_51 [2] : vector<4x16x16xf32> to vector<4x16xf32>
    %148 = vector.shape_cast %147 : vector<4x16xf32> to vector<4x16x1xf32>
    %149 = vector.broadcast %148 : vector<4x16x1xf32> to vector<4x16x16xf32>
    %150 = arith.subf %146, %149 : vector<4x16x16xf32>
    %151 = math.exp %150 : vector<4x16x16xf32>
    %cst_52 = arith.constant dense<0.000000e+00> : vector<4x16xf32>
    %152 = vector.multi_reduction <add>, %151, %cst_52 [2] : vector<4x16x16xf32> to vector<4x16xf32>
    %153 = vector.shape_cast %152 : vector<4x16xf32> to vector<4x16x1xf32>
    %154 = tpu.reciprocal %153 {approx = true} : vector<4x16x1xf32> -> vector<4x16x1xf32>
    %155 = vector.broadcast %154 : vector<4x16x1xf32> to vector<4x16x16xf32>
    %156 = arith.mulf %151, %155 : vector<4x16x16xf32>
    %157 = arith.truncf %156 : vector<4x16x16xf32> to vector<4x16x16xbf16>
    "tpu.trace_start"() <{level = 10 : i32, message = "hqk,khd->qhd"}> : () -> ()
    %cst_53 = arith.constant dense<0.000000e+00> : vector<4x8x16xf32>
    %158 = tpu.matmul %144, %157, %cst_53 {dimension_numbers = #tpu.dot_dimension_numbers<[0], [2], [2], [1], [0, 1, 0, 2, 1, 1], [1], [0]>} : vector<16x4x8xbf16>, vector<4x16x16xbf16>, vector<4x8x16xf32> -> vector<4x8x16xf32>
    %159 = tpu.transpose %158, [2, 0, 1] : vector<4x8x16xf32> -> vector<16x4x8xf32>
    "tpu.trace_stop"() : () -> ()
    %160 = vector.shape_cast %159 : vector<16x4x8xf32> to vector<16x32xf32>
    %161 = arith.truncf %160 : vector<16x32xf32> to vector<16x32xbf16>
    %162 = arith.index_cast %c1_i32 : i32 to index
    %c0_54 = arith.constant 0 : index
    %c0_55 = arith.constant 0 : index
    %163 = vector.load %arg5[%162, %c0_54, %c0_55] : memref<2x32x32xbf16, #tpu.memory_space<vmem>>, vector<1x32x32xbf16>
    %164 = vector.shape_cast %163 : vector<1x32x32xbf16> to vector<32x32xbf16>
    %cst_56 = arith.constant dense<0.000000e+00> : vector<16x32xf32>
    %165 = tpu.matmul %161, %164, %cst_56 {dimension_numbers = #tpu.dot_dimension_numbers<[1], [0], [0], [1], [0, 0, 1, 1], [], []>} : vector<16x32xbf16>, vector<32x32xbf16>, vector<16x32xf32> -> vector<16x32xf32>
    %166 = arith.index_cast %c1_i32 : i32 to index
    %c0_57 = arith.constant 0 : index
    %c0_58 = arith.constant 0 : index
    %167 = vector.load %arg6[%166, %c0_57, %c0_58] : memref<2x1x32xf32, #tpu.memory_space<vmem>>, vector<1x1x32xf32>
    %168 = vector.shape_cast %167 : vector<1x1x32xf32> to vector<1x32xf32>
    %169 = vector.broadcast %168 : vector<1x32xf32> to vector<16x32xf32>
    %170 = arith.addf %165, %169 : vector<16x32xf32>
    %171 = arith.addf %125, %170 : vector<16x32xf32>
    %cst_59 = arith.constant dense<0.000000e+00> : vector<16xf32>
    %172 = vector.multi_reduction <add>, %171, %cst_59 [1] : vector<16x32xf32> to vector<16xf32>
    %173 = vector.shape_cast %172 : vector<16xf32> to vector<16x1xf32>
    %cst_60 = arith.constant 3.200000e+01 : f32
    %174 = vector.broadcast %cst_60 : f32 to vector<16x1xf32>
    %175 = arith.divf %173, %174 : vector<16x1xf32>
    %176 = vector.broadcast %175 : vector<16x1xf32> to vector<16x32xf32>
    %177 = arith.subf %171, %176 : vector<16x32xf32>
    %178 = arith.mulf %177, %177 : vector<16x32xf32>
    %cst_61 = arith.constant dense<0.000000e+00> : vector<16xf32>
    %179 = vector.multi_reduction <add>, %178, %cst_61 [1] : vector<16x32xf32> to vector<16xf32>
    %180 = vector.shape_cast %179 : vector<16xf32> to vector<16x1xf32>
    %cst_62 = arith.constant 3.200000e+01 : f32
    %181 = vector.broadcast %cst_62 : f32 to vector<16x1xf32>
    %182 = arith.divf %180, %181 : vector<16x1xf32>
    %cst_63 = arith.constant 9.99999997E-7 : f32
    %183 = vector.broadcast %cst_63 : f32 to vector<16x1xf32>
    %184 = arith.addf %182, %183 : vector<16x1xf32>
    %185 = math.rsqrt %184 : vector<16x1xf32>
    %186 = vector.broadcast %185 : vector<16x1xf32> to vector<16x32xf32>
    %187 = arith.mulf %177, %186 : vector<16x32xf32>
    %188 = arith.index_cast %c1_i32 : i32 to index
    %c0_64 = arith.constant 0 : index
    %c0_65 = arith.constant 0 : index
    %189 = vector.load %arg11[%188, %c0_64, %c0_65] : memref<2x1x32xf32, #tpu.memory_space<vmem>>, vector<1x1x32xf32>
    %190 = vector.shape_cast %189 : vector<1x1x32xf32> to vector<1x32xf32>
    %191 = vector.broadcast %190 : vector<1x32xf32> to vector<16x32xf32>
    %192 = arith.mulf %187, %191 : vector<16x32xf32>
    %193 = arith.index_cast %c1_i32 : i32 to index
    %c0_66 = arith.constant 0 : index
    %c0_67 = arith.constant 0 : index
    %194 = vector.load %arg12[%193, %c0_66, %c0_67] : memref<2x1x32xf32, #tpu.memory_space<vmem>>, vector<1x1x32xf32>
    %195 = vector.shape_cast %194 : vector<1x1x32xf32> to vector<1x32xf32>
    %196 = vector.broadcast %195 : vector<1x32xf32> to vector<16x32xf32>
    %197 = arith.addf %192, %196 : vector<16x32xf32>
    %198 = arith.truncf %197 : vector<16x32xf32> to vector<16x32xbf16>
    %199 = arith.index_cast %c1_i32 : i32 to index
    %c0_68 = arith.constant 0 : index
    %c0_69 = arith.constant 0 : index
    %200 = vector.load %arg7[%199, %c0_68, %c0_69] : memref<2x32x64xbf16, #tpu.memory_space<vmem>>, vector<1x32x64xbf16>
    %201 = vector.shape_cast %200 : vector<1x32x64xbf16> to vector<32x64xbf16>
    %cst_70 = arith.constant dense<0.000000e+00> : vector<16x64xf32>
    %202 = tpu.matmul %198, %201, %cst_70 {dimension_numbers = #tpu.dot_dimension_numbers<[1], [0], [0], [1], [0, 0, 1, 1], [], []>} : vector<16x32xbf16>, vector<32x64xbf16>, vector<16x64xf32> -> vector<16x64xf32>
    %203 = arith.index_cast %c1_i32 : i32 to index
    %c0_71 = arith.constant 0 : index
    %c0_72 = arith.constant 0 : index
    %204 = vector.load %arg8[%203, %c0_71, %c0_72] : memref<2x1x64xf32, #tpu.memory_space<vmem>>, vector<1x1x64xf32>
    %205 = vector.shape_cast %204 : vector<1x1x64xf32> to vector<1x64xf32>
    %206 = vector.broadcast %205 : vector<1x64xf32> to vector<16x64xf32>
    %207 = arith.addf %202, %206 : vector<16x64xf32>
    %cst_73 = arith.constant 0.000000e+00 : f32
    %208 = vector.broadcast %cst_73 : f32 to vector<16x64xf32>
    %209 = arith.maximumf %207, %208 : vector<16x64xf32>
    %210 = arith.truncf %209 : vector<16x64xf32> to vector<16x64xbf16>
    %211 = arith.index_cast %c1_i32 : i32 to index
    %c0_74 = arith.constant 0 : index
    %c0_75 = arith.constant 0 : index
    %212 = vector.load %arg9[%211, %c0_74, %c0_75] : memref<2x64x32xbf16, #tpu.memory_space<vmem>>, vector<1x64x32xbf16>
    %213 = vector.shape_cast %212 : vector<1x64x32xbf16> to vector<64x32xbf16>
    %cst_76 = arith.constant dense<0.000000e+00> : vector<16x32xf32>
    %214 = tpu.matmul %210, %213, %cst_76 {dimension_numbers = #tpu.dot_dimension_numbers<[1], [0], [0], [1], [0, 0, 1, 1], [], []>} : vector<16x64xbf16>, vector<64x32xbf16>, vector<16x32xf32> -> vector<16x32xf32>
    %215 = arith.index_cast %c1_i32 : i32 to index
    %c0_77 = arith.constant 0 : index
    %c0_78 = arith.constant 0 : index
    %216 = vector.load %arg10[%215, %c0_77, %c0_78] : memref<2x1x32xf32, #tpu.memory_space<vmem>>, vector<1x1x32xf32>
    %217 = vector.shape_cast %216 : vector<1x1x32xf32> to vector<1x32xf32>
    %218 = vector.broadcast %217 : vector<1x32xf32> to vector<16x32xf32>
    %219 = arith.addf %214, %218 : vector<16x32xf32>
    %220 = arith.addf %197, %219 : vector<16x32xf32>
    %cst_79 = arith.constant dense<0.000000e+00> : vector<16xf32>
    %221 = vector.multi_reduction <add>, %220, %cst_79 [1] : vector<16x32xf32> to vector<16xf32>
    %222 = vector.shape_cast %221 : vector<16xf32> to vector<16x1xf32>
    %cst_80 = arith.constant 3.200000e+01 : f32
    %223 = vector.broadcast %cst_80 : f32 to vector<16x1xf32>
    %224 = arith.divf %222, %223 : vector<16x1xf32>
    %225 = vector.broadcast %224 : vector<16x1xf32> to vector<16x32xf32>
    %226 = arith.subf %220, %225 : vector<16x32xf32>
    %227 = arith.mulf %226, %226 : vector<16x32xf32>
    %cst_81 = arith.constant dense<0.000000e+00> : vector<16xf32>
    %228 = vector.multi_reduction <add>, %227, %cst_81 [1] : vector<16x32xf32> to vector<16xf32>
    %229 = vector.shape_cast %228 : vector<16xf32> to vector<16x1xf32>
    %cst_82 = arith.constant 3.200000e+01 : f32
    %230 = vector.broadcast %cst_82 : f32 to vector<16x1xf32>
    %231 = arith.divf %229, %230 : vector<16x1xf32>
    %cst_83 = arith.constant 9.99999997E-7 : f32
    %232 = vector.broadcast %cst_83 : f32 to vector<16x1xf32>
    %233 = arith.addf %231, %232 : vector<16x1xf32>
    %234 = math.rsqrt %233 : vector<16x1xf32>
    %235 = vector.broadcast %234 : vector<16x1xf32> to vector<16x32xf32>
    %236 = arith.mulf %226, %235 : vector<16x32xf32>
    %237 = arith.index_cast %c1_i32 : i32 to index
    %c0_84 = arith.constant 0 : index
    %c0_85 = arith.constant 0 : index
    %238 = vector.load %arg13[%237, %c0_84, %c0_85] : memref<2x1x32xf32, #tpu.memory_space<vmem>>, vector<1x1x32xf32>
    %239 = vector.shape_cast %238 : vector<1x1x32xf32> to vector<1x32xf32>
    %240 = vector.broadcast %239 : vector<1x32xf32> to vector<16x32xf32>
    %241 = arith.mulf %236, %240 : vector<16x32xf32>
    %242 = arith.index_cast %c1_i32 : i32 to index
    %c0_86 = arith.constant 0 : index
    %c0_87 = arith.constant 0 : index
    %243 = vector.load %arg14[%242, %c0_86, %c0_87] : memref<2x1x32xf32, #tpu.memory_space<vmem>>, vector<1x1x32xf32>
    %244 = vector.shape_cast %243 : vector<1x1x32xf32> to vector<1x32xf32>
    %245 = vector.broadcast %244 : vector<1x32xf32> to vector<16x32xf32>
    %246 = arith.addf %241, %245 : vector<16x32xf32>
    %c2_i32 = arith.constant 2 : i32
    %c0_88 = arith.constant 0 : index
    %c0_89 = arith.constant 0 : index
    %247 = vector.load %arg15[%c0_88, %c0_89] : memref<16x32xf32, #tpu.memory_space<vmem>>, vector<16x32xf32>
    tpu.vector_store %arg15[%c0_88, %c0_89], %246 {strides = array<i32>} : memref<16x32xf32, #tpu.memory_space<vmem>>, vector<16x32xf32>,
    return
  }
  func.func @transform_0(%arg0: i32) -> (i32, i32) {
    %c0_i32 = arith.constant 0 : i32
    %c0_i32_0 = arith.constant 0 : i32
    return %arg0, %c0_i32 : i32, i32
  }
  func.func @transform_1(%arg0: i32) -> (i32, i32) {
    %c0_i32 = arith.constant 0 : i32
    return %arg0, %arg0 : i32, i32
  }
  func.func @transform_2(%arg0: i32) -> (i32, i32, i32) {
    %c0_i32 = arith.constant 0 : i32
    %c0_i32_0 = arith.constant 0 : i32
    %c0_i32_1 = arith.constant 0 : i32
    %c0_i32_2 = arith.constant 0 : i32
    return %c0_i32, %c0_i32_0, %c0_i32_1 : i32, i32, i32
  }
  func.func @transform_3(%arg0: i32) -> (i32, i32, i32) {
    %c0_i32 = arith.constant 0 : i32
    %c0_i32_0 = arith.constant 0 : i32
    %c0_i32_1 = arith.constant 0 : i32
    %c0_i32_2 = arith.constant 0 : i32
    return %c0_i32, %c0_i32_0, %c0_i32_1 : i32, i32, i32
  }
  func.func @transform_4(%arg0: i32) -> (i32, i32, i32) {
    %c0_i32 = arith.constant 0 : i32
    %c0_i32_0 = arith.constant 0 : i32
    %c0_i32_1 = arith.constant 0 : i32
    %c0_i32_2 = arith.constant 0 : i32
    return %c0_i32, %c0_i32_0, %c0_i32_1 : i32, i32, i32
  }
  func.func @transform_5(%arg0: i32) -> (i32, i32, i32) {
    %c0_i32 = arith.constant 0 : i32
    %c0_i32_0 = arith.constant 0 : i32
    %c0_i32_1 = arith.constant 0 : i32
    %c0_i32_2 = arith.constant 0 : i32
    return %c0_i32, %c0_i32_0, %c0_i32_1 : i32, i32, i32
  }
  func.func @transform_6(%arg0: i32) -> (i32, i32, i32) {
    %c0_i32 = arith.constant 0 : i32
    %c0_i32_0 = arith.constant 0 : i32
    %c0_i32_1 = arith.constant 0 : i32
    %c0_i32_2 = arith.constant 0 : i32
    return %c0_i32, %c0_i32_0, %c0_i32_1 : i32, i32, i32
  }
  func.func @transform_7(%arg0: i32) -> (i32, i32, i32) {
    %c0_i32 = arith.constant 0 : i32
    %c0_i32_0 = arith.constant 0 : i32
    %c0_i32_1 = arith.constant 0 : i32
    %c0_i32_2 = arith.constant 0 : i32
    return %c0_i32, %c0_i32_0, %c0_i32_1 : i32, i32, i32
  }
  func.func @transform_8(%arg0: i32) -> (i32, i32, i32) {
    %c0_i32 = arith.constant 0 : i32
    %c0_i32_0 = arith.constant 0 : i32
    %c0_i32_1 = arith.constant 0 : i32
    %c0_i32_2 = arith.constant 0 : i32
    return %c0_i32, %c0_i32_0, %c0_i32_1 : i32, i32, i32
  }
  func.func @transform_9(%arg0: i32) -> (i32, i32, i32) {
    %c0_i32 = arith.constant 0 : i32
    %c0_i32_0 = arith.constant 0 : i32
    %c0_i32_1 = arith.constant 0 : i32
    %c0_i32_2 = arith.constant 0 : i32
    return %c0_i32, %c0_i32_0, %c0_i32_1 : i32, i32, i32
  }
  func.func @transform_10(%arg0: i32) -> (i32, i32, i32) {
    %c0_i32 = arith.constant 0 : i32
    %c0_i32_0 = arith.constant 0 : i32
    %c0_i32_1 = arith.constant 0 : i32
    %c0_i32_2 = arith.constant 0 : i32
    return %c0_i32, %c0_i32_0, %c0_i32_1 : i32, i32, i32
  }
  func.func @transform_11(%arg0: i32) -> (i32, i32, i32) {
    %c0_i32 = arith.constant 0 : i32
    %c0_i32_0 = arith.constant 0 : i32
    %c0_i32_1 = arith.constant 0 : i32
    %c0_i32_2 = arith.constant 0 : i32
    return %c0_i32, %c0_i32_0, %c0_i32_1 : i32, i32, i32
  }
  func.func @transform_12(%arg0: i32) -> (i32, i32, i32) {
    %c0_i32 = arith.constant 0 : i32
    %c0_i32_0 = arith.constant 0 : i32
    %c0_i32_1 = arith.constant 0 : i32
    %c0_i32_2 = arith.constant 0 : i32
    return %c0_i32, %c0_i32_0, %c0_i32_1 : i32, i32, i32
  }
  func.func @transform_13(%arg0: i32) -> (i32, i32, i32) {
    %c0_i32 = arith.constant 0 : i32
    %c0_i32_0 = arith.constant 0 : i32
    %c0_i32_1 = arith.constant 0 : i32
    %c0_i32_2 = arith.constant 0 : i32
    return %c0_i32, %c0_i32_0, %c0_i32_1 : i32, i32, i32
  }
  func.func @transform_14(%arg0: i32) -> (i32, i32) {
    %c0_i32 = arith.constant 0 : i32
    %c0_i32_0 = arith.constant 0 : i32
    return %arg0, %c0_i32 : i32, i32
  }
}

</mosaic_0001>

<bundles_post_ra>
// kernel: tpu_custom_call.1
= control target key start
LH: loop header
LB: loop body
LE: loop exit
PB: predicated region body
PF: predicated region fallthrough
CT: control target
= control target key end

     0   :  { %19 = vsyncpa [#allocation3], 0  ;;  %s8046_s0 = inlined_call_operand.hbm [shape: f32[16,32], index: 0, kind: input, shape index: {}]   ;;  %s8047_s1 = inlined_call_operand.hbm [shape: f32[16,16], index: 1, kind: input, shape index: {}]   ;;  %s8048_s2 = inlined_call_operand.vmem [shape: bf16[2,32,96], index: 2, kind: input, shape index: {}]   ;;  %s8049_s3 = inlined_call_operand.vmem [shape: f32[2,1,96], index: 3, kind: input, shape index: {}]   ;;  %s8050_s4 = inlined_call_operand.vmem [shape: bf16[2,32,32], index: 4, kind: input, shape index: {}]   ;;  %s8051_s5 = inlined_call_operand.vmem [shape: f32[2,1,32], index: 5, kind: input, shape index: {}]   ;;  %s8052_s6 = inlined_call_operand.vmem [shape: bf16[2,32,64], index: 6, kind: input, shape index: {}]   ;;  %s8053_s7 = inlined_call_operand.vmem [shape: f32[2,1,64], index: 7, kind: input, shape index: {}]   ;;  %s8054_s8 = inlined_call_operand.vmem [shape: bf16[2,64,32], index: 8, kind: input, shape index: {}]   ;;  %s8055_s9 = inlined_call_operand.vmem [shape: f32[2,1,32], index: 9, kind: input, shape index: {}]   ;;  %s8056_s10 = inlined_call_operand.vmem [shape: f32[2,1,32], index: 10, kind: input, shape index: {}]   ;;  %s8057_s11 = inlined_call_operand.vmem [shape: f32[2,1,32], index: 11, kind: input, shape index: {}]   ;;  %s8058_s12 = inlined_call_operand.vmem [shape: f32[2,1,32], index: 12, kind: input, shape index: {}]   ;;  %s8059_s13 = inlined_call_operand.vmem [shape: f32[2,1,32], index: 13, kind: input, shape index: {}]   ;;  %s8060_s14 = inlined_call_operand.hbm [shape: f32[16,32], index: 14, kind: output, shape index: {}]  }
   0x1   :  { %20 = vsyncpa [#allocation6], 0 }
   0x2   :  { %21 = vsyncpa [#allocation4], 0  ;;  %s6957_s29 = smov [#allocation2]  }
   0x3   :  { %s27_s30 = sshll.u32 %s6957_s29, 4  ;;  %s28_s30 = int_to_ptr.vmem [resolvable:$true] %s27_s30 }
   0x4   :  { %s6899_s15 = scalar_lea.vmem %s28_s30, 256  ;;  %p6904_p1 = scmp.lt.s32.totalorder %s28_s30, %s28_s30 }
   0x5   :  { %p6900_p0 = scmp.ne.s32.totalorder %s28_s30, %s6899_s15  ;;  %p6905_p2 = scmp.lt.s32.totalorder %s6899_s15, %s6899_s15 }
   0x7   :  { %p6906_p3 = por %p6905_p2, %p6904_p1 }
   0x9   :  { %p6907_p4 = pnand %p6906_p3, %p6900_p0 }
   0xb   :  { %6910 = shalt.err (!%p6907_p4)
}
   0xc   :  { %s6958_s16 = smov 128   ;;  %s6959_s17 = smov 8  }
   0xd   :  { %33 = dma.hbm_to_vmem [thread:$0]  %s8046_s0, 256, %s28_s30, [#allocation3], %s6958_s16, %s6958_s16, %s6959_s17  }
   0xe   :  { %s6960_s20 = smov [#allocation5]  }
   0xf   :  { %s39_s21 = sshll.u32 %s6960_s20, 4  ;;  %s40_s21 = int_to_ptr.vmem [resolvable:$true] %s39_s21 }
  0x10   :  { %s6919_s22 = scalar_lea.vmem %s40_s21, 256  ;;  %p6924_p6 = scmp.lt.s32.totalorder %s40_s21, %s40_s21 }
  0x11   :  { %p6920_p5 = scmp.ne.s32.totalorder %s40_s21, %s6919_s22  ;;  %p6925_p7 = scmp.lt.s32.totalorder %s6919_s22, %s6919_s22 }
  0x13   :  { %p6926_p8 = por %p6925_p7, %p6924_p6 }
  0x15   :  { %p6927_p9 = pnand %p6926_p8, %p6920_p5 }
  0x17   :  { %6930 = shalt.err (!%p6927_p9)
}
  0x18   :  { %45 = dma.hbm_to_vmem [thread:$0]  %s8047_s1, 256, %s40_s21, [#allocation6], %s6958_s16, %s6958_s16, %s6959_s17  }
  0x19   :  { %6951 = dma.done.wait [#allocation3], 256  }
  0x1a   :  { %6952 = vsyncadd [#allocation3], 4294967040 }
  0x1b   :  { %6953 = dma.done.wait [#allocation6], 256  }
  0x1c   :  { %6954 = vsyncadd [#allocation6], 4294967040  ;;  %v6961_v0 = vmov 0.0   ;;  %vm6962_vm0 = vmmov 0   ;;  %v6787_v1 = vld [vmem:[%s8048_s2 + $0x8] sm:$0xff]   ;;  %v6788_v2 = vld [vmem:[%s8048_s2] sm:$0xff]   ;;  %v175_v24 = vlaneseq }
  0x1d   :  { %6572 = vmatprep.subr.bf16.mxu0 %v6961_v0  ;;  %6576 = vmatprep.mubr.msk.bf16.mxu0 %vm6962_vm0, %v6961_v0  ;;  %v77_v3 = vld [vmem:[#allocation2] sm:$0xff]  ;;  %v78_v4 = vld [vmem:[#allocation2 + $0x8] sm:$0xff]  ;;  %vm105_vm1 = vcmask 261120   ;;  %s6963_s29 = smov 112   ;;  %s6964_s30 = smov 120   ;;  %vm1404_vm2 = vcmask 1043456  }
  0x1e   :  { %6586 = vmatprep.subr.bf16.mxu1 %v6961_v0  ;;  %6588 = vmatprep.mubr.msk.bf16.mxu1 %vm6962_vm0, %v6961_v0  ;;  %v81_v5 = vpack.c.bf16 %v78_v4, %v77_v3  ;;  %v6400_v6 = vld [vmem:[%s8049_s3] ss:$0 sm:$0xff]  ;;  %s6965_s15 = smov 104   ;;  %s6966_s18 = smov 96   ;;  %v6967_v22 = vmov 1983009808  }
  0x1f   :  { %6573 = vmatpush3.bf16.msra.mxu0 %v6787_v1  ;;  %v173_v23 = vunpack.c.l.s4 %v6967_v22  ;;  %v6968_v27 = vmov 1934713408   ;;  %v176_v30 = vshrl.u32 %v175_v24, 7  ;;  %s6969_s19 = smov 64   ;;  %vm1400_vm3 = vcmask 64512   ;;  %s6971_s24 = smov 16  }
  0x20   :  { %6574 = vmatprep.subr.bf16.mxu0 %v6961_v0  ;;  %v205_v28 = vunpack.c.l.s4 %v6968_v27  ;;  %vm1590_vm4 = vcmask 130048   ;;  %s6972_s0 = smov 24   ;;  %vm2909_vm5 = vcmask 195584   ;;  %vm3137_vm6 = vcmask 523264  }
  0x21   :  { %v174_v29 = vunpack.c.0.s8 %v173_v23 }
  0x22   :  { %v206_v34 = vunpack.c.0.s8 %v205_v28 }
  0x23   :  { %6575 = vmatpush3.bf16.msra.mxu0 %v6788_v2  ;;  %v7125_v36 = vsub.s32 %v174_v29, %v176_v30 }
  0x24   :  { %6580 = vmatprep.subr.bf16.mxu0 %v6961_v0  ;;  %v7131_v44 = vsub.s32 %v206_v34, %v176_v30 }
  0x26   :  { %6577 = vmatmul.mubr.msk.bf16.vlgmr.msra.gmra.mxu0 %vm105_vm1, %v81_v5 }
  0x27   :  { %6582 = vmatprep.mubr.msk.bf16.mxu0 %vm6962_vm0, %v6961_v0 }
  0xe6   :  { %v143_v7 = vpop.f32.mrf.mxu0 }
  0xe7   :  { %v7081_v8 = vadd.f32 %v6400_v6, %v143_v7 }
  0xe8   :  { %v6578_v9 = vpop.f32.mrf.mxu0 }
  0xe9   :  { %158 = vrot.lane.b32.xlu1 %v7081_v8, %s6963_s29  ;;  %152 = vrot.lane.b32.xlu0 %v7081_v8, %s6964_s30 }
  0xea   :  { %v146_v10 = vpop.f32.mrf.mxu0 }
  0xeb   :  { %v7087_v11 = vadd.f32 %v6400_v6, %v146_v10 }
  0xec   :  { %v6579_v12 = vpop.f32.mrf.mxu0 }
  0xed   :  { %160 = vrot.lane.b32.xlu1 %v7087_v11, %s6963_s29  ;;  %154 = vrot.lane.b32.xlu0 %v7087_v11, %s6964_s30 }
  0xf1   :  { %166 = vrot.lane.b32.xlu1 %v7087_v11, %s6965_s15  ;;  %164 = vrot.lane.b32.xlu0 %v7081_v8, %s6965_s15 }
  0xf5   :  { %324 = vrot.lane.b32.xlu1 %v7087_v11, %s6966_s18  ;;  %322 = vrot.lane.b32.xlu0 %v7081_v8, %s6966_s18 }
 0x15b   :  { %v7101_v13 = vpop.permute.xlu1 %158  ;;  %v7103_v14 = vpop.permute.xlu0 %152 }
 0x15c   :  { %326 = vrot.lane.b32.xlu0 %v7103_v14, %s6966_s18 }
 0x15f   :  { %v7107_v15 = vpop.permute.xlu0 %154  ;;  %v7113_v16 = vpop.permute.xlu1 %160 }
 0x160   :  { %330 = vrot.lane.b32.xlu0 %v7101_v13, %s6966_s18  ;;  %328 = vrot.lane.b32.xlu1 %v7107_v15, %s6966_s18 }
 0x163   :  { %v7115_v17 = vpop.permute.xlu0 %164  ;;  %v7121_v18 = vpop.permute.xlu1 %166 }
 0x164   :  { %332 = vrot.lane.b32.xlu1 %v7113_v16, %s6966_s18  ;;  %334 = vrot.lane.b32.xlu0 %v7115_v17, %s6966_s18 }
 0x167   :  { %v323_v19 = vpop.permute.xlu0 %322  ;;  %v325_v20 = vpop.permute.xlu1 %324 }
 0x168   :  { %336 = vrot.lane.b32.xlu1 %v7121_v18, %s6966_s18 }
 0x1ce   :  { %v327_v21 = vpop.permute.xlu0 %326 }
 0x1d2   :  { %v329_v25 = vpop.permute.xlu1 %328  ;;  %v331_v26 = vpop.permute.xlu0 %330 }
 0x1d3   :  { %v346_v31 = vcombine.low %v323_v19, %v331_v26  ;;  %v347_v32 = vcombine.high %v323_v19, %v331_v26 }
 0x1d5   :  { %v354_v39 = vrot.slane %v346_v31, %v7125_v36  ;;  %v361_v40 = vrot.slane %v347_v32, %v7125_v36 }
 0x1d6   :  { %v333_v33 = vpop.permute.xlu1 %332  ;;  %v335_v35 = vpop.permute.xlu0 %334 }
 0x1d7   :  { %v362_v37 = vcombine.low %v327_v21, %v335_v35  ;;  %v363_v38 = vcombine.high %v327_v21, %v335_v35  ;;  %v414_v50 = vcombine.low %v325_v20, %v333_v33  ;;  %v415_v2 = vcombine.high %v325_v20, %v333_v33 }
 0x1d9   :  { %v370_v41 = vrot.slane %v362_v37, %v7125_v36  ;;  %v377_v42 = vrot.slane %v363_v38, %v7125_v36  ;;  %v422_v58 = vrot.slane %v414_v50, %v7125_v36  ;;  %v429_v10 = vrot.slane %v415_v2, %v7125_v36 }
 0x1da   :  { %v337_v43 = vpop.permute.xlu1 %336 }
 0x1db   :  { %v430_v45 = vcombine.low %v329_v25, %v337_v43  ;;  %v394_v46 = vcombine.low %v361_v40, %v377_v42  ;;  %v378_v47 = vcombine.low %v354_v39, %v370_v41  ;;  %v395_v48 = vcombine.high %v361_v40, %v377_v42 }
 0x1dc   :  { %v379_v49 = vcombine.high %v354_v39, %v370_v41  ;;  %v431_v59 = vcombine.high %v329_v25, %v337_v43 }
 0x1dd   :  { %v402_v51 = vrot.slane %v394_v46, %v7131_v44  ;;  %v386_v52 = vrot.slane %v378_v47, %v7131_v44  ;;  %v438_v53 = vrot.slane %v430_v45, %v7125_v36  ;;  %v409_v56 = vrot.slane %v395_v48, %v7131_v44 }
 0x1de   :  { %v393_v57 = vrot.slane %v379_v49, %v7131_v44  ;;  %v445_v3 = vrot.slane %v431_v59, %v7125_v36 }
 0x1df   :  { %v486_v54 = vpack.c.bf16 %v402_v51, %v402_v51  ;;  %v482_v55 = vpack.c.bf16 %v386_v52, %v386_v52  ;;  %v446_v60 = vcombine.low %v422_v58, %v438_v53  ;;  %v488_v61 = vpack.c.bf16 %v409_v56, %v409_v56 }
 0x1e0   :  { %v484_v62 = vpack.c.bf16 %v393_v57, %v393_v57  ;;  %v411_v63 = vcombine.high %v393_v57, %v6961_v0  ;;  %v410_v1 = vcombine.high %v386_v52, %v6961_v0  ;;  %v447_v4 = vcombine.high %v422_v58, %v438_v53 }
 0x1e1   :  { %850 = vxpose.xlu1.c.b16.start.end [1/1] (short) (narrow) %v486_v54, 16  ;;  %786 = vxpose.xlu0.c.b16.start.end [1/1] (short) (narrow) %v482_v55, 16  ;;  %v412_v7 = vcombine.high %v402_v51, %v6961_v0  ;;  %v454_v9 = vrot.slane %v446_v60, %v7131_v44  ;;  %v462_v12 = vcombine.low %v429_v10, %v445_v3 }
 0x1e2   :  { %v485_v5 = vpack.c.bf16 %v411_v63, %v411_v63  ;;  %v483_v6 = vpack.c.bf16 %v410_v1, %v410_v1  ;;  %v413_v20 = vcombine.high %v409_v56, %v6961_v0  ;;  %v461_v22 = vrot.slane %v447_v4, %v7131_v44 }
 0x1e3   :  { %v487_v19 = vpack.c.bf16 %v412_v7, %v412_v7  ;;  %v490_v21 = vpack.c.bf16 %v454_v9, %v454_v9  ;;  %v463_v23 = vcombine.high %v429_v10, %v445_v3  ;;  %v478_v26 = vcombine.high %v454_v9, %v6961_v0 }
 0x1e4   :  { %v489_v24 = vpack.c.bf16 %v413_v20, %v413_v20  ;;  %v492_v25 = vpack.c.bf16 %v461_v22, %v461_v22  ;;  %v470_v27 = vrot.slane %v462_v12, %v7131_v44  ;;  %v479_v30 = vcombine.high %v461_v22, %v6961_v0 }
 0x1e5   :  { %882 = vxpose.xlu1.c.b16.start.end [1/1] (short) (narrow) %v488_v61, 16  ;;  %818 = vxpose.xlu0.c.b16.start.end [1/1] (short) (narrow) %v484_v62, 16  ;;  %v491_v28 = vpack.c.bf16 %v478_v26, %v478_v26  ;;  %v477_v31 = vrot.slane %v463_v23, %v7131_v44 }
 0x1e6   :  { %v494_v29 = vpack.c.bf16 %v470_v27, %v470_v27  ;;  %v493_v32 = vpack.c.bf16 %v479_v30, %v479_v30  ;;  %v480_v34 = vcombine.high %v470_v27, %v6961_v0 }
 0x1e7   :  { %v496_v33 = vpack.c.bf16 %v477_v31, %v477_v31  ;;  %v481_v37 = vcombine.high %v477_v31, %v6961_v0 }
 0x1e8   :  { %v495_v35 = vpack.c.bf16 %v480_v34, %v480_v34 }
 0x1e9   :  { %834 = vxpose.xlu0.c.b16.start.end [1/1] (short) (narrow) %v485_v5, 16  ;;  %802 = vxpose.xlu1.c.b16.start.end [1/1] (short) (narrow) %v483_v6, 16  ;;  %v497_v38 = vpack.c.bf16 %v481_v37, %v481_v37 }
 0x1ed   :  { %866 = vxpose.xlu0.c.b16.start.end [1/1] (short) (narrow) %v487_v19, 16  ;;  %914 = vxpose.xlu1.c.b16.start.end [1/1] (short) (narrow) %v490_v21, 16 }
 0x1f1   :  { %898 = vxpose.xlu0.c.b16.start.end [1/1] (short) (narrow) %v489_v24, 16  ;;  %946 = vxpose.xlu1.c.b16.start.end [1/1] (short) (narrow) %v492_v25, 16 }
 0x1f5   :  { %930 = vxpose.xlu0.c.b16.start.end [1/1] (short) (narrow) %v491_v28, 16  ;;  %978 = vxpose.xlu1.c.b16.start.end [1/1] (short) (narrow) %v494_v29, 16 }
 0x1f9   :  { %962 = vxpose.xlu0.c.b16.start.end [1/1] (short) (narrow) %v493_v32, 16  ;;  %1010 = vxpose.xlu1.c.b16.start.end [1/1] (short) (narrow) %v496_v33, 16 }
 0x1fd   :  { %994 = vxpose.xlu0.c.b16.start.end [1/1] (short) (narrow) %v495_v35, 16 }
 0x201   :  { %1026 = vxpose.xlu0.c.b16.start.end [1/1] (short) (narrow) %v497_v38, 16 }
 0x243   :  { %v858_v39 = vpop.trf.xlu1  ;;  %v794_v40 = vpop.trf.xlu0 }
 0x244   :  { %v1042_v57 = vcombine.low %v794_v40, %v858_v39 }
 0x246   :  { %v1049_v1 = vrot.slane %v1042_v57, %v7125_v36 }
 0x247   :  { %v890_v41 = vpop.trf.xlu1  ;;  %v826_v42 = vpop.trf.xlu0 }
 0x248   :  { %v1050_v54 = vcombine.low %v826_v42, %v890_v41 }
 0x24a   :  { %v1057_v61 = vrot.slane %v1050_v54, %v7125_v36 }
 0x24b   :  { %v842_v43 = vpop.trf.xlu0  ;;  %v810_v45 = vpop.trf.xlu1 }
 0x24c   :  { %v1074_v6 = vcombine.low %v1049_v1, %v1057_v61  ;;  %v1075_v29 = vcombine.high %v1049_v1, %v1057_v61  ;;  %v186_v61 = vcombine.low %v7103_v14, %v7115_v17  ;;  %v239_v1 = vcombine.high %v7087_v11, %v7113_v16 }
 0x24e   :  { %v1082_v23 = vrot.slane %v1074_v6, %v7131_v44  ;;  %v1089_v42 = vrot.slane %v1075_v29, %v7131_v44 }
 0x24f   :  { %v874_v46 = vpop.trf.xlu0  ;;  %v922_v47 = vpop.trf.xlu1 }
 0x250   :  { %v1110_v62 = vcombine.low %v810_v45, %v874_v46 }
 0x252   :  { %v1117_v7 = vrot.slane %v1110_v62, %v7125_v36  ;;  %v187_v62 = vcombine.high %v7103_v14, %v7115_v17 }
 0x253   :  { %v906_v48 = vpop.trf.xlu0  ;;  %v954_v49 = vpop.trf.xlu1 }
 0x254   :  { %v1118_v58 = vcombine.low %v842_v43, %v906_v48 }
 0x256   :  { %v1125_v2 = vrot.slane %v1118_v58, %v7125_v36 }
 0x257   :  { %v938_v50 = vpop.trf.xlu0  ;;  %v986_v51 = vpop.trf.xlu1 }
 0x258   :  { %v1058_v55 = vcombine.low %v922_v47, %v986_v51  ;;  %v1142_v10 = vcombine.low %v1117_v7, %v1125_v2  ;;  %v1143_v24 = vcombine.high %v1117_v7, %v1125_v2  ;;  %v170_v2 = vcombine.low %v7081_v8, %v7101_v13 }
 0x25a   :  { %v1065_v63 = vrot.slane %v1058_v55, %v7125_v36  ;;  %v1150_v27 = vrot.slane %v1142_v10, %v7131_v44  ;;  %v1157_v34 = vrot.slane %v1143_v24, %v7131_v44 }
 0x25b   :  { %v970_v52 = vpop.trf.xlu0  ;;  %v1018_v53 = vpop.trf.xlu1 }
 0x25c   :  { %v1066_v56 = vcombine.low %v954_v49, %v1018_v53 }
 0x25e   :  { %v1073_v59 = vrot.slane %v1066_v56, %v7125_v36 }
 0x25f   :  { %v1002_v60 = vpop.trf.xlu0 }
 0x260   :  { %v1090_v3 = vcombine.low %v1065_v63, %v1073_v59  ;;  %v1126_v4 = vcombine.low %v938_v50, %v1002_v60  ;;  %v1091_v25 = vcombine.high %v1065_v63, %v1073_v59  ;;  %v254_v59 = vcombine.low %v7107_v15, %v7121_v18 }
 0x261   :  { %v255_v60 = vcombine.high %v7107_v15, %v7121_v18  ;;  %v238_v63 = vcombine.low %v7087_v11, %v7113_v16 }
 0x262   :  { %v1133_v12 = vrot.slane %v1126_v4, %v7125_v36  ;;  %v1098_v21 = vrot.slane %v1090_v3, %v7131_v44  ;;  %v1105_v33 = vrot.slane %v1091_v25, %v7131_v44  ;;  %v171_v3 = vcombine.high %v7081_v8, %v7101_v13 }
 0x263   :  { %v1034_v5 = vpop.trf.xlu0  ;;  %v194_v4 = vrot.slane %v186_v61, %v7125_v36 }
 0x264   :  { %v1134_v9 = vcombine.low %v970_v52, %v1034_v5  ;;  %v1106_v26 = vcombine.low %v1082_v23, %v1098_v21  ;;  %v1107_v39 = vcombine.high %v1082_v23, %v1098_v21  ;;  %v1108_v47 = vcombine.low %v1089_v42, %v1105_v33 }
 0x265   :  { %v1109_v53 = vcombine.high %v1089_v42, %v1105_v33  ;;  %v253_v5 = vrot.slane %v239_v1, %v7125_v36 }
 0x266   :  { %v1141_v19 = vrot.slane %v1134_v9, %v7125_v36  ;;  %v1182_v37 = vshrl.u32 %v1106_v26, 16  ;;  %v1190_v46 = vshrl.u32 %v1107_v39, 16  ;;  %v1198_v52 = vshrl.u32 %v1108_v47, 16 }
 0x267   :  { %v1206_v57 = vshrl.u32 %v1109_v53, 16 }
 0x268   :  { %v1158_v20 = vcombine.low %v1133_v12, %v1141_v19  ;;  %v1159_v22 = vcombine.high %v1133_v12, %v1141_v19 }
 0x26a   :  { %v1166_v28 = vrot.slane %v1158_v20, %v7131_v44  ;;  %v1173_v32 = vrot.slane %v1159_v22, %v7131_v44 }
 0x26c   :  { %v1174_v30 = vcombine.low %v1150_v27, %v1166_v28  ;;  %v1175_v31 = vcombine.high %v1150_v27, %v1166_v28  ;;  %v1176_v43 = vcombine.low %v1157_v34, %v1173_v32  ;;  %v1177_v50 = vcombine.high %v1157_v34, %v1173_v32 }
 0x26e   :  { %v1180_v35 = vpack.i.b16 %v1174_v30, %v1106_v26  ;;  %v1183_v38 = vshrl.u32 %v1174_v30, 16  ;;  %v1191_v41 = vshrl.u32 %v1175_v31, 16  ;;  %v1188_v45 = vpack.i.b16 %v1175_v31, %v1107_v39 }
 0x26f   :  { %v1199_v49 = vshrl.u32 %v1176_v43, 16  ;;  %v1196_v51 = vpack.i.b16 %v1176_v43, %v1108_v47  ;;  %v1207_v55 = vshrl.u32 %v1177_v50, 16  ;;  %v1204_v56 = vpack.i.b16 %v1177_v50, %v1109_v53 }
 0x270   :  { %1210 = vxpose.xlu1.c.b16.start.end [1/1] (short) (narrow) %v1180_v35, 16  ;;  %v1184_v40 = vpack.i.b16 %v1183_v38, %v1182_v37  ;;  %v1192_v48 = vpack.i.b16 %v1191_v41, %v1190_v46 }
 0x271   :  { %v1200_v54 = vpack.i.b16 %v1199_v49, %v1198_v52  ;;  %v1208_v58 = vpack.i.b16 %v1207_v55, %v1206_v57 }
 0x272   :  { %1226 = vxpose.xlu0.c.b16.start.end [1/1] (short) (narrow) %v1184_v40, 16 }
 0x274   :  { %1242 = vxpose.xlu1.c.b16.start.end [1/1] (short) (narrow) %v1188_v45, 16 }
 0x276   :  { %1258 = vxpose.xlu0.c.b16.start.end [1/1] (short) (narrow) %v1192_v48, 16 }
 0x278   :  { %1274 = vxpose.xlu1.c.b16.start.end [1/1] (short) (narrow) %v1196_v51, 16 }
 0x27a   :  { %1290 = vxpose.xlu0.c.b16.start.end [1/1] (short) (narrow) %v1200_v54, 16 }
 0x27c   :  { %1306 = vxpose.xlu1.c.b16.start.end [1/1] (short) (narrow) %v1204_v56, 16 }
 0x27e   :  { %1322 = vxpose.xlu0.c.b16.start.end [1/1] (short) (narrow) %v1208_v58, 16 }
 0x280   :  { %498 = vrot.lane.b32.xlu1 %v7081_v8, %s6969_s19 }
 0x284   :  { %502 = vrot.lane.b32.xlu1 %v7103_v14, %s6969_s19  ;;  %v201_v14 = vrot.slane %v187_v62, %v7125_v36 }
 0x287   :  { %500 = vrot.lane.b32.xlu0 %v7087_v11, %s6969_s19  ;;  %v178_v11 = vrot.slane %v170_v2, %v7125_v36 }
 0x288   :  { %504 = vrot.lane.b32.xlu1 %v7107_v15, %s6969_s19  ;;  %v262_v15 = vrot.slane %v254_v59, %v7125_v36 }
 0x289   :  { %v203_v10 = vcombine.high %v178_v11, %v194_v4 }
 0x28b   :  { %506 = vrot.lane.b32.xlu0 %v7101_v13, %s6969_s19  ;;  %v202_v13 = vcombine.low %v178_v11, %v194_v4  ;;  %v217_v25 = vrot.slane %v203_v10, %v7131_v44 }
 0x28c   :  { %508 = vrot.lane.b32.xlu1 %v7113_v16, %s6969_s19  ;;  %v185_v16 = vrot.slane %v171_v3, %v7125_v36 }
 0x28d   :  { %v210_v24 = vrot.slane %v202_v13, %v7131_v44  ;;  %v235_v33 = vcombine.high %v217_v25, %v6961_v0 }
 0x28e   :  { %v218_v12 = vcombine.low %v185_v16, %v201_v14  ;;  %v219_v19 = vcombine.high %v185_v16, %v201_v14 }
 0x28f   :  { %510 = vrot.lane.b32.xlu0 %v7115_v17, %s6969_s19  ;;  %v246_v17 = vrot.slane %v238_v63, %v7125_v36  ;;  %v234_v32 = vcombine.high %v210_v24, %v6961_v0 }
 0x290   :  { %512 = vrot.lane.b32.xlu1 %v7121_v18, %s6969_s19  ;;  %v269_v18 = vrot.slane %v255_v60, %v7125_v36  ;;  %v226_v26 = vrot.slane %v218_v12, %v7131_v44  ;;  %v233_v27 = vrot.slane %v219_v19, %v7131_v44 }
 0x291   :  { %v270_v6 = vcombine.low %v246_v17, %v262_v15  ;;  %v271_v7 = vcombine.high %v246_v17, %v262_v15 }
 0x292   :  { %v286_v9 = vcombine.low %v253_v5, %v269_v18  ;;  %v287_v8 = vcombine.high %v253_v5, %v269_v18  ;;  %v236_v34 = vcombine.high %v226_v26, %v6961_v0  ;;  %v237_v35 = vcombine.high %v233_v27, %v6961_v0 }
 0x293   :  { %v278_v21 = vrot.slane %v270_v6, %v7131_v44  ;;  %v285_v20 = vrot.slane %v271_v7, %v7131_v44  ;;  %v6404_v47 = vpack.c.bf16 %v226_v26, %v210_v24  ;;  %v6405_v48 = vpack.c.bf16 %v233_v27, %v217_v25 }
 0x294   :  { %v294_v22 = vrot.slane %v286_v9, %v7131_v44  ;;  %v301_v23 = vrot.slane %v287_v8, %v7131_v44  ;;  %v6408_v41 = vpack.c.bf16 %v236_v34, %v234_v32  ;;  %v6409_v42 = vpack.c.bf16 %v237_v35, %v235_v33 }
 0x295   :  { %v302_v28 = vcombine.high %v278_v21, %v6961_v0  ;;  %v303_v29 = vcombine.high %v285_v20, %v6961_v0  ;;  %v681_v57 = vrot.slane %v6404_v47, %v7125_v36  ;;  %v689_v58 = vrot.slane %v6405_v48, %v7125_v36 }
 0x296   :  { %v304_v30 = vcombine.high %v294_v22, %v6961_v0  ;;  %v305_v31 = vcombine.high %v301_v23, %v6961_v0  ;;  %v6406_v45 = vpack.c.bf16 %v294_v22, %v278_v21  ;;  %v6407_v46 = vpack.c.bf16 %v301_v23, %v285_v20 }
 0x297   :  { %v731_v51 = vrot.slane %v6408_v41, %v7125_v36  ;;  %v739_v52 = vrot.slane %v6409_v42, %v7125_v36  ;;  %v706_v15 = vcombine.low %v681_v57, %v689_v58  ;;  %v6970_v21 = vmov 0  }
 0x298   :  { %v6410_v39 = vpack.c.bf16 %v304_v30, %v302_v28  ;;  %v6411_v40 = vpack.c.bf16 %v305_v31, %v303_v29  ;;  %v697_v55 = vrot.slane %v6406_v45, %v7125_v36  ;;  %v705_v56 = vrot.slane %v6407_v46, %v7125_v36 }
 0x299   :  { %v756_v62 = vcombine.low %v731_v51, %v739_v52  ;;  %v713_v9 = vrot.slane %v706_v15, %v7131_v44 }
 0x29a   :  { %v747_v53 = vrot.slane %v6410_v39, %v7125_v36  ;;  %v755_v54 = vrot.slane %v6411_v40, %v7125_v36  ;;  %v714_v18 = vcombine.low %v697_v55, %v705_v56 }
 0x29b   :  { %v763_v5 = vrot.slane %v756_v62, %v7131_v44 }
 0x29c   :  { %v764_v63 = vcombine.low %v747_v53, %v755_v54  ;;  %v721_v8 = vrot.slane %v714_v18, %v7131_v44 }
 0x29e   :  { %v771_v11 = vrot.slane %v764_v63, %v7131_v44  ;;  %v722_v22 = vcombine.low %v713_v9, %v721_v8  ;;  %v723_v42 = vcombine.high %v713_v9, %v721_v8 }
 0x2a0   :  { %v772_v12 = vcombine.low %v763_v5, %v771_v11  ;;  %v777_v35 = vshrl.u32 %v722_v22, 16  ;;  %v773_v40 = vcombine.high %v763_v5, %v771_v11  ;;  %v783_v47 = vshrl.u32 %v723_v42, 16 }
 0x2a2   :  { %v778_v27 = vshrl.u32 %v772_v12, 16  ;;  %v776_v34 = vpack.i.b16 %v772_v12, %v722_v22  ;;  %v784_v45 = vshrl.u32 %v773_v40, 16  ;;  %v782_v46 = vpack.i.b16 %v773_v40, %v723_v42  ;;  %v80_v42 = vld [vmem:[#allocation5 + $0x8] sm:$0xff] }
 0x2a4   :  { %v779_v39 = vpack.i.b16 %v778_v27, %v777_v35 }
 0x2d2   :  { %v1218_v37 = vpop.trf.xlu1 }
 0x2d4   :  { %v1234_v38 = vpop.trf.xlu0 }
 0x2d6   :  { %v1250_v43 = vpop.trf.xlu1 }
 0x2d8   :  { %v1266_v49 = vpop.trf.xlu0 }
 0x2da   :  { %v1282_v50 = vpop.trf.xlu1 }
 0x2db   :  { %v1338_v60 = vcombine.low %v1218_v37, %v1282_v50 }
 0x2dc   :  { %v1298_v59 = vpop.trf.xlu0 }
 0x2dd   :  { %v1363_v1 = vcombine.low %v1234_v38, %v1298_v59  ;;  %v1345_v4 = vrot.slane %v1338_v60, %v7125_v36 }
 0x2de   :  { %v1314_v61 = vpop.trf.xlu1 }
 0x2df   :  { %v1346_v2 = vcombine.low %v1250_v43, %v1314_v61  ;;  %v1370_v16 = vrot.slane %v1363_v1, %v7125_v36 }
 0x2e0   :  { %v1330_v3 = vpop.trf.xlu0 }
 0x2e1   :  { %v1353_v14 = vrot.slane %v1346_v2, %v7125_v36  ;;  %v1371_v17 = vcombine.low %v1266_v49, %v1330_v3  ;;  %v785_v49 = vpack.i.b16 %v784_v45, %v783_v47 }
 0x2e3   :  { %v1354_v6 = vcombine.low %v1345_v4, %v1353_v14  ;;  %v1378_v7 = vrot.slane %v1371_v17, %v7125_v36 }
 0x2e5   :  { %v1361_v13 = vrot.slane %v1354_v6, %v7131_v44  ;;  %v1379_v10 = vcombine.low %v1370_v16, %v1378_v7 }
 0x2e7   :  { %v1386_v19 = vrot.slane %v1379_v10, %v7131_v44  ;;  %v1362_v20 = vcombine.high %v1361_v13, %v6970_v21  ;;  %v1391_v24 = vshrl.u32 %v1361_v13, 16 }
 0x2e9   :  { %v1390_v23 = vpack.i.b16 %v1386_v19, %v1361_v13  ;;  %v1392_v25 = vshrl.u32 %v1386_v19, 16  ;;  %v1387_v26 = vcombine.high %v1386_v19, %v6970_v21  ;;  %v1397_v28 = vshrl.u32 %v1362_v20, 16 }
 0x2eb   :  { %v1406_v29 = vsel %vm1404_vm2, %v1390_v23, 0  ;;  %v1393_v30 = vpack.i.b16 %v1392_v25, %v1391_v24  ;;  %v1396_v31 = vpack.i.b16 %v1387_v26, %v1362_v20  ;;  %v1398_v32 = vshrl.u32 %v1387_v26, 16 }
 0x2ec   :  { %6581 = vmatpush3.bf16.msra.mxu0 %v1406_v29 }
 0x2ed   :  { %v1453_v33 = vsel %vm1404_vm2, %v1393_v30, 0  ;;  %6592 = vmatprep.subr.bf16.mxu0 %v6961_v0  ;;  %v1399_v37 = vpack.i.b16 %v1398_v32, %v1397_v28  ;;  %v1500_v38 = vsel %vm1404_vm2, %v1396_v31, 0 }
 0x2ee   :  { %6587 = vmatpush3.bf16.msra.mxu1 %v1453_v33 }
 0x2ef   :  { %6583 = vmatmul.mubr.msk.bf16.vlgmr.msra.gmra.mxu0 %vm1400_vm3, %v776_v34  ;;  %6598 = vmatprep.subr.bf16.mxu1 %v6961_v0  ;;  %v1547_v41 = vsel %vm1404_vm2, %v1399_v37, 0  ;;  %v79_v37 = vld [vmem:[#allocation5] sm:$0xff] }
 0x2f0   :  { %6593 = vmatpush3.bf16.msra.mxu0 %v1500_v38  ;;  %6594 = vmatprep.mubr.msk.bf16.mxu0 %vm6962_vm0, %v6961_v0 }
 0x2f1   :  { %6589 = vmatmul.mubr.msk.bf16.vlgmr.msra.gmra.mxu1 %vm1400_vm3, %v779_v39  ;;  %6604 = vmatprep.subr.bf16.mxu0 %v6961_v0 }
 0x2f2   :  { %6599 = vmatpush3.bf16.msra.mxu1 %v1547_v41  ;;  %v499_v43 = vpop.permute.xlu1 %498  ;;  %6600 = vmatprep.mubr.msk.bf16.mxu1 %vm6962_vm0, %v6961_v0 }
 0x2f3   :  { %6610 = vmatprep.subr.bf16.mxu1 %v6961_v0 }
 0x2f6   :  { %v503_v48 = vpop.permute.xlu1 %502 }
 0x2f7   :  { %6595 = vmatmul.mubr.msk.bf16.vlgmr.msra.gmra.mxu0 %vm1400_vm3, %v782_v46 }
 0x2f8   :  { %6606 = vmatprep.mubr.msk.bf16.mxu0 %vm6962_vm0, %v6961_v0 }
 0x2f9   :  { %v7262_v50 = vpop.permute.xlu0 %500  ;;  %6601 = vmatmul.mubr.msk.bf16.vlgmr.msra.gmra.mxu1 %vm1400_vm3, %v785_v49 }
 0x2fa   :  { %v7265_v51 = vpop.permute.xlu1 %504  ;;  %6612 = vmatprep.mubr.msk.bf16.mxu1 %vm6962_vm0, %v6961_v0 }
 0x2fd   :  { %v507_v52 = vpop.permute.xlu0 %506 }
 0x2fe   :  { %v7269_v53 = vpop.permute.xlu1 %508  ;;  %v522_v54 = vcombine.low %v499_v43, %v507_v52  ;;  %v523_v56 = vcombine.high %v499_v43, %v507_v52 }
 0x2ff   :  { %v590_v4 = vcombine.low %v7262_v50, %v7269_v53 }
 0x300   :  { %v530_v59 = vrot.slane %v522_v54, %v7125_v36  ;;  %v537_v63 = vrot.slane %v523_v56, %v7125_v36 }
 0x301   :  { %v511_v55 = vpop.permute.xlu0 %510  ;;  %v598_v9 = vrot.slane %v590_v4, %v7125_v36 }
 0x302   :  { %v538_v57 = vcombine.low %v503_v48, %v511_v55  ;;  %v539_v58 = vcombine.high %v503_v48, %v511_v55  ;;  %v7274_v62 = vpop.permute.xlu1 %512 }
 0x303   :  { %v606_v3 = vcombine.low %v7265_v51, %v7274_v62 }
 0x304   :  { %v546_v60 = vrot.slane %v538_v57, %v7125_v36  ;;  %v553_v61 = vrot.slane %v539_v58, %v7125_v36 }
 0x305   :  { %v614_v11 = vrot.slane %v606_v3, %v7125_v36 }
 0x306   :  { %v554_v1 = vcombine.low %v530_v59, %v546_v60  ;;  %v555_v2 = vcombine.high %v530_v59, %v546_v60  ;;  %v570_v18 = vcombine.low %v537_v63, %v553_v61  ;;  %v571_v7 = vcombine.high %v537_v63, %v553_v61 }
 0x307   :  { %v622_v19 = vcombine.low %v598_v9, %v614_v11  ;;  %v623_v25 = vcombine.high %v598_v9, %v614_v11  ;;  %v591_v9 = vcombine.high %v7262_v50, %v7269_v53 }
 0x308   :  { %v562_v15 = vrot.slane %v554_v1, %v7131_v44  ;;  %v569_v5 = vrot.slane %v555_v2, %v7131_v44  ;;  %v578_v6 = vrot.slane %v570_v18, %v7131_v44  ;;  %v585_v12 = vrot.slane %v571_v7, %v7131_v44 }
 0x309   :  { %v630_v24 = vrot.slane %v622_v19, %v7131_v44  ;;  %v637_v29 = vrot.slane %v623_v25, %v7131_v44  ;;  %v607_v7 = vcombine.high %v7265_v51, %v7274_v62 }
 0x30a   :  { %v658_v14 = vpack.c.bf16 %v562_v15, %v562_v15  ;;  %v586_v17 = vcombine.high %v562_v15, %v6961_v0  ;;  %v660_v8 = vpack.c.bf16 %v569_v5, %v569_v5  ;;  %v587_v13 = vcombine.high %v569_v5, %v6961_v0 }
 0x30b   :  { %v662_v10 = vpack.c.bf16 %v578_v6, %v578_v6  ;;  %v588_v22 = vcombine.high %v578_v6, %v6961_v0  ;;  %v664_v23 = vpack.c.bf16 %v585_v12, %v585_v12  ;;  %v589_v27 = vcombine.high %v585_v12, %v6961_v0 }
 0x30c   :  { %1683 = vxpose.xlu0.c.b16.start.end [1/1] (short) (narrow) %v658_v14, 16  ;;  %v659_v16 = vpack.c.bf16 %v586_v17, %v586_v17  ;;  %v661_v20 = vpack.c.bf16 %v587_v13, %v587_v13  ;;  %v666_v28 = vpack.c.bf16 %v630_v24, %v630_v24  ;;  %v654_v31 = vcombine.high %v630_v24, %v6961_v0 }
 0x30d   :  { %v663_v26 = vpack.c.bf16 %v588_v22, %v588_v22  ;;  %v665_v30 = vpack.c.bf16 %v589_v27, %v589_v27  ;;  %v668_v32 = vpack.c.bf16 %v637_v29, %v637_v29  ;;  %v655_v34 = vcombine.high %v637_v29, %v6961_v0 }
 0x30e   :  { %1699 = vxpose.xlu1.c.b16.start.end [1/1] (short) (narrow) %v659_v16, 16  ;;  %v667_v33 = vpack.c.bf16 %v654_v31, %v654_v31  ;;  %v605_v13 = vrot.slane %v591_v9, %v7125_v36 }
 0x30f   :  { %v669_v35 = vpack.c.bf16 %v655_v34, %v655_v34 }
 0x310   :  { %1715 = vxpose.xlu0.c.b16.start.end [1/1] (short) (narrow) %v660_v8, 16  ;;  %v621_v8 = vrot.slane %v607_v7, %v7125_v36 }
 0x312   :  { %1747 = vxpose.xlu1.c.b16.start.end [1/1] (short) (narrow) %v662_v10, 16  ;;  %v638_v10 = vcombine.low %v605_v13, %v621_v8  ;;  %v639_v19 = vcombine.high %v605_v13, %v621_v8 }
 0x314   :  { %1731 = vxpose.xlu0.c.b16.start.end [1/1] (short) (narrow) %v661_v20, 16  ;;  %v646_v12 = vrot.slane %v638_v10, %v7131_v44  ;;  %v653_v22 = vrot.slane %v639_v19, %v7131_v44 }
 0x316   :  { %1779 = vxpose.xlu1.c.b16.start.end [1/1] (short) (narrow) %v664_v23, 16  ;;  %v670_v20 = vpack.c.bf16 %v646_v12, %v646_v12  ;;  %v656_v23 = vcombine.high %v646_v12, %v6961_v0  ;;  %v672_v24 = vpack.c.bf16 %v653_v22, %v653_v22  ;;  %v657_v51 = vcombine.high %v653_v22, %v6961_v0 }
 0x318   :  { %1763 = vxpose.xlu0.c.b16.start.end [1/1] (short) (narrow) %v663_v26, 16  ;;  %v671_v25 = vpack.c.bf16 %v656_v23, %v656_v23  ;;  %v673_v50 = vpack.c.bf16 %v657_v51, %v657_v51 }
 0x31a   :  { %1811 = vxpose.xlu1.c.b16.start.end [1/1] (short) (narrow) %v666_v28, 16 }
 0x31c   :  { %1795 = vxpose.xlu0.c.b16.start.end [1/1] (short) (narrow) %v665_v30, 16 }
 0x31e   :  { %1843 = vxpose.xlu1.c.b16.start.end [1/1] (short) (narrow) %v668_v32, 16 }
 0x320   :  { %1827 = vxpose.xlu0.c.b16.start.end [1/1] (short) (narrow) %v667_v33, 16 }
 0x324   :  { %1859 = vxpose.xlu0.c.b16.start.end [1/1] (short) (narrow) %v669_v35, 16 }
 0x36e   :  { %v1691_v53 = vpop.trf.xlu0 }
 0x370   :  { %v1707_v26 = vpop.trf.xlu1 }
 0x372   :  { %v1723_v62 = vpop.trf.xlu0 }
 0x374   :  { %v1755_v28 = vpop.trf.xlu1 }
 0x376   :  { %v1739_v27 = vpop.trf.xlu0 }
 0x378   :  { %v1787_v30 = vpop.trf.xlu1 }
 0x37a   :  { %v1771_v29 = vpop.trf.xlu0 }
 0x37c   :  { %v1819_v32 = vpop.trf.xlu1 }
 0x37e   :  { %v1803_v31 = vpop.trf.xlu0 }
 0x380   :  { %v1851_v34 = vpop.trf.xlu1 }
 0x382   :  { %v1835_v33 = vpop.trf.xlu0 }
 0x386   :  { %v1867_v35 = vpop.trf.xlu0 }
 0x3af   :  { %v1442_v38 = vpop.f32.mrf.mxu0 }
 0x3b0   :  { %v7295_v39 = vadd.f32 %v1442_v38, %v79_v37 }
 0x3b1   :  { %v6584_v40 = vpop.f32.mrf.mxu0  ;;  %v1489_v41 = vpop.f32.mrf.mxu1 }
 0x3b2   :  { %v7297_v43 = vadd.f32 %v1489_v41, %v79_v37  ;;  %v1591_v45 = vsel %vm1590_vm4, %v7295_v39, -inf }
 0x3b3   :  { %v6590_v46 = vpop.f32.mrf.mxu1  ;;  %1592 = vmax.xlane.f32.xlu1 %v1591_v45  ;;  %v1445_v47 = vpop.f32.mrf.mxu0 }
 0x3b4   :  { %v7301_v48 = vadd.f32 %v1445_v47, %v80_v42  ;;  %v1597_v55 = vsel %vm1590_vm4, %v7297_v43, -inf  ;;  %v1939_v47 = vcombine.low %v1691_v53, %v1755_v28 }
 0x3b5   :  { %v6585_v49 = vpop.f32.mrf.mxu0  ;;  %v1492_v52 = vpop.f32.mrf.mxu1 }
 0x3b6   :  { %v7303_v54 = vadd.f32 %v1492_v52, %v80_v42  ;;  %v1594_v56 = vsel %vm1590_vm4, %v7301_v48, -inf  ;;  %v1947_v49 = vcombine.low %v1723_v62, %v1787_v30 }
 0x3b7   :  { %v6591_v57 = vpop.f32.mrf.mxu1  ;;  %1598 = vmax.xlane.f32.xlu1 %v1597_v55  ;;  %1595 = vmax.xlane.f32.xlu0 %v1594_v56  ;;  %v1536_v58 = vpop.f32.mrf.mxu0  ;;  %v2007_v56 = vcombine.low %v1707_v26, %v1771_v29 }
 0x3b8   :  { %v7309_v59 = vadd.f32 %v1536_v58, %v79_v37  ;;  %v1600_v1 = vsel %vm1590_vm4, %v7303_v54, -inf  ;;  %v2015_v57 = vcombine.low %v1739_v27, %v1803_v31 }
 0x3b9   :  { %v6596_v60 = vpop.f32.mrf.mxu0  ;;  %v1583_v61 = vpop.f32.mrf.mxu1 }
 0x3ba   :  { %v7311_v63 = vadd.f32 %v1583_v61, %v79_v37  ;;  %v1603_v2 = vsel %vm1590_vm4, %v7309_v59, -inf  ;;  %v1946_v60 = vrot.slane %v1939_v47, %v7125_v36  ;;  %v1954_v61 = vrot.slane %v1947_v49, %v7125_v36 }
 0x3bb   :  { %v6602_v3 = vpop.f32.mrf.mxu1  ;;  %1601 = vmax.xlane.f32.xlu0 %v1600_v1  ;;  %1604 = vmax.xlane.f32.xlu1 %v1603_v2  ;;  %v1539_v15 = vpop.f32.mrf.mxu0 }
 0x3bc   :  { %v7317_v18 = vadd.f32 %v1539_v15, %v80_v42  ;;  %v1609_v5 = vsel %vm1590_vm4, %v7311_v63, -inf  ;;  %v2014_v15 = vrot.slane %v2007_v56, %v7125_v36  ;;  %v1971_v7 = vcombine.low %v1946_v60, %v1954_v61 }
 0x3bd   :  { %v6597_v4 = vpop.f32.mrf.mxu0  ;;  %v1586_v14 = vpop.f32.mrf.mxu1 }
 0x3be   :  { %v7319_v17 = vadd.f32 %v1586_v14, %v80_v42  ;;  %v1606_v11 = vsel %vm1590_vm4, %v7317_v18, -inf  ;;  %v2022_v4 = vrot.slane %v2015_v57, %v7125_v36 }
 0x3bf   :  { %v6603_v16 = vpop.f32.mrf.mxu1  ;;  %1610 = vmax.xlane.f32.xlu1 %v1609_v5  ;;  %1607 = vmax.xlane.f32.xlu0 %v1606_v11 }
 0x3c0   :  { %v1612_v6 = vsel %vm1590_vm4, %v7319_v17, -inf  ;;  %v1972_v16 = vcombine.high %v1946_v60, %v1954_v61  ;;  %v2039_v10 = vcombine.low %v2014_v15, %v2022_v4  ;;  %v2040_v23 = vcombine.high %v2014_v15, %v2022_v4 }
 0x3c2   :  { %v2047_v26 = vrot.slane %v2039_v10, %v7131_v44  ;;  %v2054_v30 = vrot.slane %v2040_v23, %v7131_v44 }
 0x3c3   :  { %1613 = vmax.xlane.f32.xlu0 %v1612_v6 }
 0x3ec   :  { %1875 = vxpose.xlu1.c.b16.start.end [1/1] (short) (narrow) %v670_v20, 16 }
 0x3f0   :  { %1907 = vxpose.xlu1.c.b16.start.end [1/1] (short) (narrow) %v672_v24, 16  ;;  %1891 = vxpose.xlu0.c.b16.start.end [1/1] (short) (narrow) %v671_v25, 16  ;;  %v1986_v24 = vrot.slane %v1972_v16, %v7131_v44 }
 0x3f4   :  { %1923 = vxpose.xlu0.c.b16.start.end [1/1] (short) (narrow) %v673_v50, 16  ;;  %v1979_v50 = vrot.slane %v1971_v7, %v7131_v44 }
 0x43c   :  { %v1593_v37 = vpop.xlane.xlu1 %1592 }
 0x43d   :  { %v1615_v29 = vsub.f32 %v7295_v39, %v1593_v37 }
 0x43f   :  { %v1623_v56 = vmul.f32 1.442695, %v1615_v29 }
 0x440   :  { %v7337_v38 = vpop.xlane.xlu1 %1598  ;;  %v1596_v40 = vpop.xlane.xlu0 %1595 }
 0x441   :  { %v1617_v37 = vsub.f32 %v7297_v43, %v7337_v38  ;;  %6807 = vpow2.f32 %v1623_v56 }
 0x444   :  { %v7339_v41 = vpop.xlane.xlu0 %1601  ;;  %v7341_v42 = vpop.xlane.xlu1 %1604 }
 0x448   :  { %v7343_v45 = vpop.xlane.xlu0 %1607  ;;  %v7345_v46 = vpop.xlane.xlu1 %1610 }
 0x449   :  { %v1620_v16 = vsub.f32 %v7317_v18, %v7343_v45  ;;  %v1621_v7 = vsub.f32 %v7311_v63, %v7345_v46 }
 0x44c   :  { %v7347_v52 = vpop.xlane.xlu0 %1613 }
 0x44e   :  { %v1883_v55 = vpop.trf.xlu1  ;;  %v6808_v45 = vpop.eup %6807 }
 0x44f   :  { %v1955_v58 = vcombine.low %v1819_v32, %v1883_v55  ;;  %v1639_v10 = vsel %vm1590_vm4, %v6808_v45, 0.0 }
 0x451   :  { %v1962_v14 = vrot.slane %v1955_v58, %v7125_v36 }
 0x452   :  { %v1915_v1 = vpop.trf.xlu1  ;;  %v1899_v2 = vpop.trf.xlu0 }
 0x453   :  { %v1963_v3 = vcombine.low %v1851_v34, %v1915_v1  ;;  %v2023_v11 = vcombine.low %v1835_v33, %v1899_v2  ;;  %v1616_v33 = vsub.f32 %v7301_v48, %v1596_v40  ;;  %v1618_v2 = vsub.f32 %v7303_v54, %v7339_v41 }
 0x455   :  { %v1970_v5 = vrot.slane %v1963_v3, %v7125_v36  ;;  %v2030_v12 = vrot.slane %v2023_v11, %v7125_v36  ;;  %v1625_v61 = vmul.f32 1.442695, %v1616_v33  ;;  %v1629_v11 = vmul.f32 1.442695, %v1618_v2 }
 0x456   :  { %v1931_v6 = vpop.trf.xlu0 }
 0x457   :  { %v1987_v9 = vcombine.low %v1962_v14, %v1970_v5  ;;  %v1988_v8 = vcombine.high %v1962_v14, %v1970_v5  ;;  %v2031_v13 = vcombine.low %v1867_v35, %v1931_v6  ;;  %v1627_v14 = vmul.f32 1.442695, %v1617_v37 }
 0x458   :  { %v1619_v5 = vsub.f32 %v7309_v59, %v7341_v42  ;;  %6809 = vpow2.f32 %v1625_v61  ;;  %v1633_v59 = vmul.f32 1.442695, %v1620_v16  ;;  %v1622_v42 = vsub.f32 %v7319_v17, %v7347_v52 }
 0x459   :  { %v2038_v19 = vrot.slane %v2031_v13, %v7125_v36  ;;  %v1995_v20 = vrot.slane %v1987_v9, %v7131_v44  ;;  %v2002_v22 = vrot.slane %v1988_v8, %v7131_v44  ;;  %6811 = vpow2.f32 %v1627_v14 }
 0x45a   :  { %v1631_v41 = vmul.f32 1.442695, %v1619_v5  ;;  %6813 = vpow2.f32 %v1629_v11  ;;  %v1635_v8 = vmul.f32 1.442695, %v1621_v7  ;;  %v1637_v18 = vmul.f32 1.442695, %v1622_v42 }
 0x45b   :  { %v2055_v25 = vcombine.low %v2030_v12, %v2038_v19  ;;  %v2056_v51 = vcombine.high %v2030_v12, %v2038_v19  ;;  %v7361_v53 = vcombine.high %v1986_v24, %v2002_v22  ;;  %v2003_v62 = vcombine.low %v1979_v50, %v1995_v20 }
 0x45c   :  { %v2004_v55 = vcombine.high %v1979_v50, %v1995_v20  ;;  %v2005_v4 = vcombine.low %v1986_v24, %v2002_v22  ;;  %6815 = vpow2.f32 %v1631_v41 }
 0x45d   :  { %v2063_v27 = vrot.slane %v2055_v25, %v7131_v44  ;;  %v2070_v28 = vrot.slane %v2056_v51, %v7131_v44  ;;  %v2079_v47 = vshrl.u32 %v2003_v62, 16  ;;  %v2103_v58 = vshrl.u32 %v7361_v53, 16 }
 0x45e   :  { %v2087_v15 = vshrl.u32 %v2004_v55, 16  ;;  %v2095_v54 = vshrl.u32 %v2005_v4, 16  ;;  %6817 = vpow2.f32 %v1633_v59 }
 0x45f   :  { %v2071_v31 = vcombine.low %v2047_v26, %v2063_v27  ;;  %v2072_v32 = vcombine.high %v2047_v26, %v2063_v27  ;;  %v7369_v34 = vcombine.high %v2054_v30, %v2070_v28  ;;  %v2073_v40 = vcombine.low %v2054_v30, %v2070_v28 }
 0x460   :  { %6819 = vpow2.f32 %v1635_v8 }
 0x461   :  { %v2077_v35 = vpack.i.b16 %v2071_v31, %v2003_v62  ;;  %v2080_v49 = vshrl.u32 %v2071_v31, 16  ;;  %v2101_v57 = vpack.i.b16 %v7369_v34, %v7361_v53  ;;  %v2104_v39 = vshrl.u32 %v7369_v34, 16 }
 0x462   :  { %v2088_v48 = vshrl.u32 %v2072_v32, 16  ;;  %v2085_v3 = vpack.i.b16 %v2072_v32, %v2004_v55  ;;  %v2096_v38 = vshrl.u32 %v2073_v40, 16  ;;  %v2093_v6 = vpack.i.b16 %v2073_v40, %v2005_v4 }
 0x463   :  { %2107 = vxpose.xlu1.c.b16.start.end [1/1] (short) (narrow) %v2077_v35, 16  ;;  %v2081_v60 = vpack.i.b16 %v2080_v49, %v2079_v47  ;;  %v2105_v1 = vpack.i.b16 %v2104_v39, %v2103_v58  ;;  %6821 = vpow2.f32 %v1637_v18 }
 0x464   :  { %v2089_v43 = vpack.i.b16 %v2088_v48, %v2087_v15  ;;  %v2097_v9 = vpack.i.b16 %v2096_v38, %v2095_v54 }
 0x465   :  { %2123 = vxpose.xlu0.c.b16.start.end [1/1] (short) (narrow) %v2081_v60, 16  ;;  %v6810_v13 = vpop.eup %6809 }
 0x466   :  { %v6812_v12 = vpop.eup %6811  ;;  %v1642_v63 = vsel %vm1590_vm4, %v6810_v13, 0.0 }
 0x467   :  { %2139 = vxpose.xlu1.c.b16.start.end [1/1] (short) (narrow) %v2085_v3, 16  ;;  %v6814_v46 = vpop.eup %6813  ;;  %v1645_v19 = vsel %vm1590_vm4, %v6812_v12, 0.0 }
 0x468   :  { %v1648_v52 = vsel %vm1590_vm4, %v6814_v46, 0.0 }
 0x469   :  { %2155 = vxpose.xlu0.c.b16.start.end [1/1] (short) (narrow) %v2089_v43, 16  ;;  %v7390_v17 = vpop.eup %6815 }
 0x46a   :  { %v1651_v22 = vsel %vm1590_vm4, %v7390_v17, 0.0 }
 0x46b   :  { %2171 = vxpose.xlu1.c.b16.start.end [1/1] (short) (narrow) %v2093_v6, 16  ;;  %v7393_v20 = vpop.eup %6817 }
 0x46c   :  { %v1654_v24 = vsel %vm1590_vm4, %v7393_v20, 0.0 }
 0x46d   :  { %2187 = vxpose.xlu0.c.b16.start.end [1/1] (short) (narrow) %v2097_v9, 16  ;;  %v7397_v23 = vpop.eup %6819 }
 0x46e   :  { %v1657_v51 = vsel %vm1590_vm4, %v7397_v23, 0.0 }
 0x470   :  { %v7401_v25 = vpop.eup %6821 }
 0x471   :  { %v1660_v50 = vsel %vm1590_vm4, %v7401_v25, 0.0 }
 0x478   :  { %1640 = vadd.xlane.f32.xlu1 %v1639_v10 }
 0x47a   :  { %1643 = vadd.xlane.f32.xlu0 %v1642_v63 }
 0x47c   :  { %1646 = vadd.xlane.f32.xlu1 %v1645_v19 }
 0x47e   :  { %1649 = vadd.xlane.f32.xlu0 %v1648_v52 }
 0x480   :  { %1652 = vadd.xlane.f32.xlu1 %v1651_v22 }
 0x482   :  { %1655 = vadd.xlane.f32.xlu0 %v1654_v24 }
 0x484   :  { %1658 = vadd.xlane.f32.xlu1 %v1657_v51 }
 0x486   :  { %1661 = vadd.xlane.f32.xlu0 %v1660_v50 }
 0x4b1   :  { %2203 = vxpose.xlu1.c.b16.start.end [1/1] (short) (narrow) %v2101_v57, 16 }
 0x4b3   :  { %2219 = vxpose.xlu0.c.b16.start.end [1/1] (short) (narrow) %v2105_v1, 16 }
 0x4c5   :  { %v2115_v62 = vpop.trf.xlu1 }
 0x4c7   :  { %v2131_v26 = vpop.trf.xlu0 }
 0x4c9   :  { %v2147_v27 = vpop.trf.xlu1 }
 0x4cb   :  { %v2163_v28 = vpop.trf.xlu0 }
 0x4cd   :  { %v2179_v29 = vpop.trf.xlu1 }
 0x4ce   :  { %v2235_v57 = vcombine.low %v2115_v62, %v2179_v29 }
 0x4cf   :  { %v2195_v30 = vpop.trf.xlu0 }
 0x4d0   :  { %v2260_v48 = vcombine.low %v2131_v26, %v2195_v30  ;;  %v2242_v2 = vrot.slane %v2235_v57, %v7125_v36 }
 0x4d2   :  { %v2267_v11 = vrot.slane %v2260_v48, %v7125_v36 }
 0x501   :  { %v1641_v31 = vpop.xlane.xlu1 %1640 }
 0x502   :  { %6823 = vrcp.f32 %v1641_v31 }
 0x503   :  { %v1644_v32 = vpop.xlane.xlu0 %1643 }
 0x504   :  { %6825 = vrcp.f32 %v1644_v32 }
 0x505   :  { %v1647_v33 = vpop.xlane.xlu1 %1646 }
 0x506   :  { %6827 = vrcp.f32 %v1647_v33 }
 0x507   :  { %v1650_v35 = vpop.xlane.xlu0 %1649 }
 0x508   :  { %6829 = vrcp.f32 %v1650_v35 }
 0x509   :  { %v1653_v47 = vpop.xlane.xlu1 %1652 }
 0x50a   :  { %6831 = vrcp.f32 %v1653_v47 }
 0x50b   :  { %v1656_v49 = vpop.xlane.xlu0 %1655 }
 0x50c   :  { %6833 = vrcp.f32 %v1656_v49 }
 0x50d   :  { %v1659_v53 = vpop.xlane.xlu1 %1658 }
 0x50e   :  { %6835 = vrcp.f32 %v1659_v53 }
 0x50f   :  { %v6824_v34 = vpop.eup %6823  ;;  %v1662_v55 = vpop.xlane.xlu0 %1661 }
 0x510   :  { %6837 = vrcp.f32 %v1662_v55  ;;  %v1671_v58 = vmul.f32 %v6824_v34, %v6808_v45 }
 0x511   :  { %v6826_v56 = vpop.eup %6825 }
 0x512   :  { %v1672_v39 = vmul.f32 %v6826_v56, %v6810_v13 }
 0x513   :  { %v6828_v37 = vpop.eup %6827  ;;  %v2211_v60 = vpop.trf.xlu1 }
 0x514   :  { %v2243_v40 = vcombine.low %v2147_v27, %v2211_v60  ;;  %v1679_v61 = vpack.c.bf16 %v1672_v39, %v1671_v58  ;;  %v1673_v15 = vmul.f32 %v6828_v37, %v6812_v12 }
 0x515   :  { %v6830_v1 = vpop.eup %6829  ;;  %v2227_v3 = vpop.trf.xlu0 }
 0x516   :  { %v2250_v4 = vrot.slane %v2243_v40, %v7125_v36  ;;  %v2268_v14 = vcombine.low %v2163_v28, %v2227_v3  ;;  %v2301_v5 = vsel %vm1590_vm4, %v1679_v61, 0  ;;  %v1674_v43 = vmul.f32 %v6830_v1, %v6814_v46 }
 0x517   :  { %v6832_v38 = vpop.eup %6831  ;;  %6605 = vmatpush3.bf16.xpose.msra.mxu0 %v2301_v5 }
 0x518   :  { %v2251_v16 = vcombine.low %v2242_v2, %v2250_v4  ;;  %v2275_v6 = vrot.slane %v2268_v14, %v7125_v36  ;;  %v1680_v54 = vpack.c.bf16 %v1674_v43, %v1673_v15  ;;  %6616 = vmatprep.subr.bf16.mxu0 %v6961_v0  ;;  %v1675_v7 = vmul.f32 %v6832_v38, %v7390_v17 }
 0x519   :  { %v6834_v41 = vpop.eup %6833 }
 0x51a   :  { %v2258_v9 = vrot.slane %v2251_v16, %v7131_v44  ;;  %v2276_v59 = vcombine.low %v2267_v11, %v2275_v6  ;;  %v2347_v42 = vsel %vm1590_vm4, %v1680_v54, 0  ;;  %v1676_v8 = vmul.f32 %v6834_v41, %v7393_v20 }
 0x51b   :  { %6611 = vmatpush3.bf16.xpose.msra.mxu1 %v2347_v42  ;;  %v6836_v18 = vpop.eup %6835 }
 0x51c   :  { %v2283_v45 = vrot.slane %v2276_v59, %v7131_v44  ;;  %v1681_v13 = vpack.c.bf16 %v1676_v8, %v1675_v7  ;;  %6622 = vmatprep.subr.bf16.mxu1 %v6961_v0  ;;  %v2288_v12 = vshrl.u32 %v2258_v9, 16  ;;  %v1677_v17 = vmul.f32 %v6836_v18, %v7397_v23 }
 0x51d   :  { %v6838_v10 = vpop.eup %6837  ;;  %v2259_v51 = vcombine.high %v2258_v9, %v6970_v21 }
 0x51e   :  { %v2289_v63 = vshrl.u32 %v2283_v45, 16  ;;  %v2287_v46 = vpack.i.b16 %v2283_v45, %v2258_v9  ;;  %v2393_v19 = vsel %vm1590_vm4, %v1681_v13, 0  ;;  %v1678_v52 = vmul.f32 %v6838_v10, %v7401_v25 }
 0x51f   :  { %v2284_v22 = vcombine.high %v2283_v45, %v6970_v21  ;;  %v2294_v62 = vshrl.u32 %v2259_v51, 16 }
 0x520   :  { %6607 = vmatmul.mubr.msk.bf16.vlgmr.msra.gmra.mxu0 %vm1590_vm4, %v2287_v46  ;;  %v2290_v20 = vpack.i.b16 %v2289_v63, %v2288_v12  ;;  %v1682_v24 = vpack.c.bf16 %v1678_v52, %v1677_v17 }
 0x521   :  { %6617 = vmatpush3.bf16.xpose.msra.mxu0 %v2393_v19  ;;  %6618 = vmatprep.mubr.msk.bf16.mxu0 %vm6962_vm0, %v6961_v0  ;;  %v2295_v25 = vshrl.u32 %v2284_v22, 16  ;;  %v2293_v50 = vpack.i.b16 %v2284_v22, %v2259_v51 }
 0x522   :  { %6613 = vmatmul.mubr.msk.bf16.vlgmr.msra.gmra.mxu1 %vm1590_vm4, %v2290_v20  ;;  %6628 = vmatprep.subr.bf16.mxu0 %v6961_v0  ;;  %v2439_v23 = vsel %vm1590_vm4, %v1682_v24, 0 }
 0x523   :  { %6624 = vmatprep.mubr.msk.bf16.mxu1 %vm6962_vm0, %v6961_v0  ;;  %6623 = vmatpush3.bf16.xpose.msra.mxu1 %v2439_v23  ;;  %v2296_v26 = vpack.i.b16 %v2295_v25, %v2294_v62 }
 0x524   :  { %6636 = vmatprep.subr.bf16.mxu1 %v6961_v0 }
 0x528   :  { %6619 = vmatmul.mubr.msk.bf16.vlgmr.msra.gmra.mxu0 %vm1590_vm4, %v2293_v50 }
 0x529   :  { %6632 = vmatprep.mubr.msk.bf16.mxu0 %vm6962_vm0, %v6961_v0 }
 0x52a   :  { %6625 = vmatmul.mubr.msk.bf16.vlgmr.msra.gmra.mxu1 %vm1590_vm4, %v2296_v26 }
 0x52b   :  { %6640 = vmatprep.mubr.msk.bf16.mxu1 %vm6962_vm0, %v6961_v0 }
 0x5e0   :  { %v2337_v27 = vpop.f32.mrf.mxu0 }
 0x5e1   :  { %2481 = vxpose.xlu1.b32.start.end [1/1] (short) (narrow) %v2337_v27, 16 }
 0x5e2   :  { %v6608_v28 = vpop.f32.mrf.mxu0  ;;  %v2383_v29 = vpop.f32.mrf.mxu1 }
 0x5e3   :  { %2513 = vxpose.xlu0.b32.start.end [1/1] (short) (narrow) %v2383_v29, 16 }
 0x5e4   :  { %v2340_v30 = vpop.f32.mrf.mxu0  ;;  %v6614_v31 = vpop.f32.mrf.mxu1 }
 0x5e6   :  { %v6609_v32 = vpop.f32.mrf.mxu0  ;;  %v2386_v33 = vpop.f32.mrf.mxu1 }
 0x5e8   :  { %v6615_v35 = vpop.f32.mrf.mxu1  ;;  %v2429_v47 = vpop.f32.mrf.mxu0 }
 0x5e9   :  { %2545 = vxpose.xlu0.b32.start.end [1/1] (short) (narrow) %v2429_v47, 16 }
 0x5ea   :  { %v6620_v49 = vpop.f32.mrf.mxu0  ;;  %v2475_v53 = vpop.f32.mrf.mxu1 }
 0x5eb   :  { %2577 = vxpose.xlu1.b32.start.end [1/1] (short) (narrow) %v2475_v53, 16 }
 0x5ec   :  { %v2432_v34 = vpop.f32.mrf.mxu0  ;;  %v6626_v55 = vpop.f32.mrf.mxu1 }
 0x5ee   :  { %v6621_v56 = vpop.f32.mrf.mxu0  ;;  %v2478_v57 = vpop.f32.mrf.mxu1 }
 0x5ef   :  { %v6789_v57 = vld [vmem:[%s8050_s4 + $0x8] sm:$0xff]  }
 0x5f0   :  { %v6627_v58 = vpop.f32.mrf.mxu1  ;;  %6629 = vmatpush3.bf16.msra.mxu0 %v6789_v57 }
 0x5f1   :  { %6630 = vmatprep.subr.bf16.mxu0 %v6961_v0 }
 0x65d   :  { %v2497_v39 = vpop.trf.xlu1 }
 0x65f   :  { %v2529_v37 = vpop.trf.xlu0 }
 0x661   :  { %v2498_v60 = vpop.trf.xlu1 }
 0x663   :  { %v2530_v48 = vpop.trf.xlu0 }
 0x667   :  { %v2561_v40 = vpop.trf.xlu0  ;;  %v2593_v61 = vpop.trf.xlu1 }
 0x668   :  { %v2609_v1 = vcombine.low %v2497_v39, %v2561_v40  ;;  %v2610_v2 = vcombine.high %v2497_v39, %v2561_v40  ;;  %v2625_v3 = vcombine.low %v2529_v37, %v2593_v61  ;;  %v2626_v15 = vcombine.high %v2529_v37, %v2593_v61 }
 0x66a   :  { %v2617_v4 = vrot.slane %v2609_v1, %v7125_v36  ;;  %v2624_v14 = vrot.slane %v2610_v2, %v7125_v36  ;;  %v2633_v5 = vrot.slane %v2625_v3, %v7125_v36  ;;  %v2640_v43 = vrot.slane %v2626_v15, %v7125_v36 }
 0x66b   :  { %v2562_v38 = vpop.trf.xlu0  ;;  %v2594_v11 = vpop.trf.xlu1 }
 0x66c   :  { %v2677_v16 = vcombine.low %v2498_v60, %v2562_v38  ;;  %v2678_v6 = vcombine.high %v2498_v60, %v2562_v38  ;;  %v2641_v54 = vcombine.low %v2617_v4, %v2633_v5  ;;  %v2642_v41 = vcombine.high %v2617_v4, %v2633_v5  ;;  %v6790_v4 = vld [vmem:[%s8050_s4] sm:$0xff]  }
 0x66d   :  { %v2657_v7 = vcombine.low %v2624_v14, %v2640_v43  ;;  %v2658_v9 = vcombine.high %v2624_v14, %v2640_v43  ;;  %v2693_v59 = vcombine.low %v2530_v48, %v2594_v11  ;;  %v2694_v42 = vcombine.high %v2530_v48, %v2594_v11  ;;  %6631 = vmatpush3.bf16.msra.mxu0 %v6790_v4 }
 0x66e   :  { %v2685_v8 = vrot.slane %v2677_v16, %v7125_v36  ;;  %v2692_v18 = vrot.slane %v2678_v6, %v7125_v36  ;;  %v2649_v45 = vrot.slane %v2641_v54, %v7131_v44  ;;  %v2656_v13 = vrot.slane %v2642_v41, %v7131_v44  ;;  %6644 = vmatprep.subr.bf16.mxu0 %v6961_v0 }
 0x66f   :  { %v2665_v10 = vrot.slane %v2657_v7, %v7131_v44  ;;  %v2672_v12 = vrot.slane %v2658_v9, %v7131_v44  ;;  %v2701_v63 = vrot.slane %v2693_v59, %v7125_v36  ;;  %v2708_v46 = vrot.slane %v2694_v42, %v7125_v36 }
 0x670   :  { %v2745_v19 = vcombine.low %v2649_v45, %v2656_v13  ;;  %v6420_v17 = vcombine.high %v2649_v45, %v2656_v13 }
 0x671   :  { %v2761_v52 = vcombine.low %v2665_v10, %v2672_v12  ;;  %v6421_v20 = vcombine.high %v2665_v10, %v2672_v12  ;;  %v2709_v22 = vcombine.low %v2685_v8, %v2701_v63  ;;  %v2710_v24 = vcombine.high %v2685_v8, %v2701_v63 }
 0x672   :  { %v2725_v51 = vcombine.low %v2692_v18, %v2708_v46  ;;  %v2726_v23 = vcombine.high %v2692_v18, %v2708_v46  ;;  %v2752_v25 = vrot.slane %v2745_v19, %v7125_v36  ;;  %v2760_v50 = vrot.slane %v6420_v17, %v7125_v36 }
 0x673   :  { %v2768_v62 = vrot.slane %v2761_v52, %v7125_v36  ;;  %v2776_v26 = vrot.slane %v6421_v20, %v7125_v36  ;;  %v2717_v27 = vrot.slane %v2709_v22, %v7131_v44  ;;  %v2724_v28 = vrot.slane %v2710_v24, %v7131_v44 }
 0x674   :  { %v2733_v29 = vrot.slane %v2725_v51, %v7131_v44  ;;  %v2740_v30 = vrot.slane %v2726_v23, %v7131_v44  ;;  %v2778_v31 = vcombine.high %v2752_v25, %v2760_v50  ;;  %v2777_v33 = vcombine.low %v2752_v25, %v2760_v50  ;;  %v6424_v50 = vld [vmem:[%s8051_s5] ss:$0 sm:$0xff] }
 0x675   :  { %v2794_v32 = vcombine.high %v2768_v62, %v2776_v26  ;;  %v2793_v35 = vcombine.low %v2768_v62, %v2776_v26  ;;  %v2813_v47 = vcombine.low %v2717_v27, %v2724_v28  ;;  %v6422_v49 = vcombine.high %v2717_v27, %v2724_v28  ;;  %v6887_v28 = vld [vmem:[#allocation2] sm:$0xff] }
 0x676   :  { %v2829_v53 = vcombine.low %v2733_v29, %v2740_v30  ;;  %v6423_v34 = vcombine.high %v2733_v29, %v2740_v30  ;;  %v2785_v55 = vrot.slane %v2777_v33, %v7131_v44  ;;  %v2792_v48 = vrot.slane %v2778_v31, %v7131_v44 }
 0x677   :  { %v2801_v56 = vrot.slane %v2793_v35, %v7131_v44  ;;  %v2820_v58 = vrot.slane %v2813_v47, %v7125_v36  ;;  %v2828_v39 = vrot.slane %v6422_v49, %v7125_v36  ;;  %v2808_v40 = vrot.slane %v2794_v32, %v7131_v44  ;;  %v6888_v35 = vld [vmem:[#allocation2 + $0x8] sm:$0xff] }
 0x678   :  { %v2836_v37 = vrot.slane %v2829_v53, %v7125_v36  ;;  %v2844_v60 = vrot.slane %v6423_v34, %v7125_v36 }
 0x679   :  { %v2809_v61 = vcombine.low %v2785_v55, %v2801_v56  ;;  %v2846_v1 = vcombine.high %v2820_v58, %v2828_v39  ;;  %v2845_v3 = vcombine.low %v2820_v58, %v2828_v39  ;;  %v2811_v11 = vcombine.low %v2792_v48, %v2808_v40 }
 0x67a   :  { %v2862_v2 = vcombine.high %v2836_v37, %v2844_v60  ;;  %v2861_v15 = vcombine.low %v2836_v37, %v2844_v60  ;;  %v2810_v6 = vcombine.high %v2785_v55, %v2801_v56  ;;  %v2812_v42 = vcombine.high %v2792_v48, %v2808_v40  ;;  %v6791_v40 = vld [vmem:[%s8052_s6 + $0x8] sm:$0xff]  }
 0x67b   :  { %v2860_v14 = vrot.slane %v2846_v1, %v7131_v44  ;;  %v2853_v43 = vrot.slane %v2845_v3, %v7131_v44  ;;  %6637 = vmatpush3.bf16.msra.mxu1 %v6791_v40  ;;  %v6793_v1 = vld [vmem:[%s8054_s8 + $0x18] sm:$0xff]  }
 0x67c   :  { %v2876_v5 = vrot.slane %v2862_v2, %v7131_v44  ;;  %v2869_v38 = vrot.slane %v2861_v15, %v7131_v44  ;;  %6638 = vmatprep.subr.bf16.mxu1 %v6961_v0 }
 0x67e   :  { %v2879_v16 = vcombine.low %v2860_v14, %v2876_v5  ;;  %v2878_v54 = vcombine.high %v2853_v43, %v2869_v38  ;;  %v2877_v41 = vcombine.low %v2853_v43, %v2869_v38  ;;  %v2880_v59 = vcombine.high %v2860_v14, %v2876_v5 }
 0x680   :  { %v6762_v7 = vpack.i.bf16 %v2879_v16, %v2811_v11  ;;  %v6757_v9 = vpack.i.bf16 %v2878_v54, %v2810_v6  ;;  %v6767_v8 = vpack.i.bf16 %v2880_v59, %v2812_v42  ;;  %v6428_v11 = vld [vmem:[%s8056_s10] ss:$0 sm:$0xff] }
 0x682   :  { %6763 = vrot.lane.b32.xlu1 %v6762_v7, %s6971_s24  ;;  %6758 = vrot.lane.b32.xlu0 %v6757_v9, %s6959_s17 }
 0x686   :  { %6768 = vrot.lane.b32.xlu1 %v6767_v8, %s6972_s0  ;;  %v6794_v8 = vld [vmem:[%s8054_s8 + $0x10] sm:$0xff]  }
 0x6f4   :  { %v6764_v18 = vpop.permute.xlu1 %6763  ;;  %v6759_v45 = vpop.permute.xlu0 %6758 }
 0x6f5   :  { %v6761_v13 = vunpack.i.h.bf16 %v6759_v45  ;;  %v6760_v10 = vunpack.i.l.bf16 %v6759_v45  ;;  %v6766_v12 = vunpack.i.h.bf16 %v6764_v18  ;;  %v6765_v63 = vunpack.i.l.bf16 %v6764_v18  ;;  %v6795_v18 = vld [vmem:[%s8054_s8 + $0x8] sm:$0xff]   ;;  %v6796_v45 = vld [vmem:[%s8054_s8] sm:$0xff]  }
 0x6f7   :  { %v2905_v46 = vsel %vm1400_vm3, %v2809_v61, %v6760_v10  ;;  %v2906_v19 = vsel %vm1400_vm3, %v2877_v41, %v6761_v13  ;;  %v6792_v61 = vld [vmem:[%s8052_s6] sm:$0xff]  }
 0x6f8   :  { %v6769_v17 = vpop.permute.xlu1 %6768  ;;  %v2907_v22 = vsel %vm1590_vm4, %v2905_v46, %v6765_v63  ;;  %v2908_v24 = vsel %vm1590_vm4, %v2906_v19, %v6766_v12  ;;  %6639 = vmatpush3.bf16.msra.mxu1 %v6792_v61  ;;  %v6429_v41 = vld [vmem:[%s8057_s11] ss:$0 sm:$0xff] }
 0x6f9   :  { %v6771_v52 = vunpack.i.h.bf16 %v6769_v17  ;;  %v6770_v20 = vunpack.i.l.bf16 %v6769_v17  ;;  %6656 = vmatprep.subr.bf16.mxu1 %v6961_v0  ;;  %v6430_v13 = vld [vmem:[%s8053_s7] ss:$0 sm:$0xff] }
 0x6fb   :  { %v2910_v51 = vsel %vm2909_vm5, %v2907_v22, %v6770_v20  ;;  %v2911_v23 = vsel %vm2909_vm5, %v2908_v24, %v6771_v52  ;;  %v6434_v24 = vld [vmem:[%s8055_s9] ss:$0 sm:$0xff] }
 0x6fc   :  { %v2912_v25 = vpack.c.bf16 %v2911_v23, %v2910_v51 }
 0x6fe   :  { %6633 = vmatmul.mubr.msk.bf16.vlgmr.msra.gmra.mxu0 %vm105_vm1, %v2912_v25 }
 0x6ff   :  { %6652 = vmatprep.mubr.msk.bf16.mxu0 %vm6962_vm0, %v6961_v0  ;;  %6645 = vmatpush3.bf16.msra.mxu0 %v6793_v1 }
 0x700   :  { %6646 = vmatprep.subr.bf16.mxu0 %v6961_v0 }
 0x703   :  { %6647 = vmatpush3.bf16.msra.mxu0 %v6794_v8 }
 0x704   :  { %6648 = vmatprep.subr.bf16.mxu0 %v6961_v0 }
 0x707   :  { %6649 = vmatpush3.bf16.msra.mxu0 %v6795_v18 }
 0x708   :  { %6650 = vmatprep.subr.bf16.mxu0 %v6961_v0 }
 0x70b   :  { %6651 = vmatpush3.bf16.msra.mxu0 %v6796_v45 }
 0x70c   :  { %6670 = vmatprep.subr.bf16.mxu0 %v6961_v0 }
 0x7be   :  { %v2973_v62 = vpop.f32.mrf.mxu0 }
 0x7bf   :  { %v2974_v26 = vadd.f32 %v6424_v50, %v2973_v62 }
 0x7c0   :  { %v6634_v27 = vpop.f32.mrf.mxu0 }
 0x7c1   :  { %v2980_v29 = vadd.f32 %v6887_v28, %v2974_v26 }
 0x7c2   :  { %v2976_v30 = vpop.f32.mrf.mxu0 }
 0x7c3   :  { %v2977_v31 = vadd.f32 %v6424_v50, %v2976_v30  ;;  %v2982_v32 = vsel %vm105_vm1, %v2980_v29, 0.0 }
 0x7c4   :  { %2983 = vadd.xlane.f32.xlu1 %v2982_v32  ;;  %v6635_v33 = vpop.f32.mrf.mxu0 }
 0x7c5   :  { %v2981_v47 = vadd.f32 %v6888_v35, %v2977_v31 }
 0x7c7   :  { %v2985_v49 = vsel %vm105_vm1, %v2981_v47, 0.0 }
 0x7c8   :  { %2986 = vadd.xlane.f32.xlu0 %v2985_v49 }
 0x84d   :  { %v2984_v53 = vpop.xlane.xlu1 %2983 }
 0x84e   :  { %v2989_v34 = vmul.f32 0.03125, %v2984_v53 }
 0x850   :  { %v2991_v55 = vsub.f32 %v2980_v29, %v2989_v34 }
 0x851   :  { %v2987_v56 = vpop.xlane.xlu0 %2986 }
 0x852   :  { %v2990_v57 = vmul.f32 0.03125, %v2987_v56  ;;  %v2993_v58 = vmul.f32 %v2991_v55, %v2991_v55 }
 0x854   :  { %v2992_v39 = vsub.f32 %v2981_v47, %v2990_v57  ;;  %v2995_v37 = vsel %vm105_vm1, %v2993_v58, 0.0  ;;  %v6797_v57 = vld [vmem:[%s8048_s2 + $0x18] sm:$0xff]   ;;  %v6798_v58 = vld [vmem:[%s8048_s2 + $0x10] sm:$0xff]  }
 0x855   :  { %2996 = vadd.xlane.f32.xlu0 %v2995_v37 }
 0x856   :  { %v2994_v60 = vmul.f32 %v2992_v39, %v2992_v39 }
 0x858   :  { %v2998_v48 = vsel %vm105_vm1, %v2994_v60, 0.0 }
 0x859   :  { %2999 = vadd.xlane.f32.xlu1 %v2998_v48 }
 0x8de   :  { %v2997_v2 = vpop.xlane.xlu0 %2996 }
 0x8df   :  { %v3001_v3 = vmul.f32 0.03125, %v2997_v2 }
 0x8e1   :  { %v3003_v15 = vadd.f32 1e-06, %v3001_v3  ;;  %v6440_v3 = vld [vmem:[%s8058_s12] ss:$0 sm:$0xff] }
 0x8e2   :  { %v3000_v4 = vpop.xlane.xlu1 %2999 }
 0x8e3   :  { %6839 = vrsqrt.f32 %v3003_v15  ;;  %v3002_v14 = vmul.f32 0.03125, %v3000_v4 }
 0x8e5   :  { %v3004_v5 = vadd.f32 1e-06, %v3002_v14 }
 0x8e7   :  { %6841 = vrsqrt.f32 %v3004_v5  ;;  %v6441_v5 = vld [vmem:[%s8059_s13] ss:$0 sm:$0xff] }
 0x8f0   :  { %v6840_v43 = vpop.eup %6839 }
 0x8f1   :  { %v3007_v38 = vmul.f32 %v6840_v43, %v2991_v55 }
 0x8f3   :  { %v3016_v54 = vmul.f32 %v6428_v11, %v3007_v38 }
 0x8f4   :  { %v6842_v16 = vpop.eup %6841 }
 0x8f5   :  { %v3008_v6 = vmul.f32 %v6842_v16, %v2992_v39  ;;  %v3025_v9 = vadd.f32 %v6429_v41, %v3016_v54 }
 0x8f7   :  { %v3017_v7 = vmul.f32 %v6428_v11, %v3008_v6  ;;  %v6447_v6 = vld [vmem:[%s8049_s3 + $0x1] ss:$0 sm:$0xff] }
 0x8f9   :  { %v3026_v59 = vadd.f32 %v6429_v41, %v3017_v7 }
 0x8fb   :  { %v3027_v42 = vpack.c.bf16 %v3026_v59, %v3025_v9 }
 0x8fd   :  { %6641 = vmatmul.mubr.msk.bf16.vlgmr.msra.gmra.mxu1 %vm105_vm1, %v3027_v42 }
 0x8fe   :  { %6660 = vmatprep.mubr.msk.bf16.mxu1 %vm6962_vm0, %v6961_v0  ;;  %6657 = vmatpush3.bf16.msra.mxu1 %v6797_v57 }
 0x8ff   :  { %6658 = vmatprep.subr.bf16.mxu1 %v6961_v0 }
 0x902   :  { %6659 = vmatpush3.bf16.msra.mxu1 %v6798_v58 }
 0x903   :  { %6664 = vmatprep.subr.bf16.mxu1 %v6961_v0 }
 0x9bd   :  { %v3088_v10 = vpop.f32.mrf.mxu1 }
 0x9be   :  { %v3089_v63 = vadd.f32 %v6430_v13, %v3088_v10 }
 0x9bf   :  { %v6642_v12 = vpop.f32.mrf.mxu1 }
 0x9c0   :  { %v3095_v52 = vmax.f32 %v3089_v63, 0.0 }
 0x9c1   :  { %v3091_v46 = vpop.f32.mrf.mxu1 }
 0x9c2   :  { %v3092_v19 = vadd.f32 %v6430_v13, %v3091_v46 }
 0x9c3   :  { %v6643_v17 = vpop.f32.mrf.mxu1 }
 0x9c4   :  { %v3096_v20 = vmax.f32 %v3092_v19, 0.0 }
 0x9c6   :  { %v3097_v22 = vpack.c.bf16 %v3096_v20, %v3095_v52 }
 0x9c8   :  { %6653 = vmatmul.mubr.msk.bf16.vlgmr.msra.gmra.mxu0 %vm3137_vm6, %v3097_v22 }
 0x9c9   :  { %6672 = vmatprep.mubr.msk.bf16.mxu0 %vm6962_vm0, %v6961_v0 }
 0xa88   :  { %v3175_v51 = vpop.f32.mrf.mxu0 }
 0xa89   :  { %v3176_v23 = vadd.f32 %v6434_v24, %v3175_v51 }
 0xa8a   :  { %v6654_v25 = vpop.f32.mrf.mxu0 }
 0xa8b   :  { %v3182_v50 = vadd.f32 %v3176_v23, %v3025_v9 }
 0xa8c   :  { %v3178_v62 = vpop.f32.mrf.mxu0 }
 0xa8d   :  { %v3179_v26 = vadd.f32 %v6434_v24, %v3178_v62  ;;  %v3184_v27 = vsel %vm105_vm1, %v3182_v50, 0.0 }
 0xa8e   :  { %3185 = vadd.xlane.f32.xlu0 %v3184_v27  ;;  %v6655_v28 = vpop.f32.mrf.mxu0 }
 0xa8f   :  { %v3183_v29 = vadd.f32 %v3179_v26, %v3026_v59 }
 0xa91   :  { %v3187_v30 = vsel %vm105_vm1, %v3183_v29, 0.0 }
 0xa92   :  { %3188 = vadd.xlane.f32.xlu1 %v3187_v30 }
 0xb17   :  { %v3186_v31 = vpop.xlane.xlu0 %3185 }
 0xb18   :  { %v3190_v32 = vmul.f32 0.03125, %v3186_v31 }
 0xb1a   :  { %v3192_v33 = vsub.f32 %v3182_v50, %v3190_v32 }
 0xb1b   :  { %v3189_v35 = vpop.xlane.xlu1 %3188 }
 0xb1c   :  { %v3191_v47 = vmul.f32 0.03125, %v3189_v35  ;;  %v3194_v49 = vmul.f32 %v3192_v33, %v3192_v33 }
 0xb1e   :  { %v3193_v53 = vsub.f32 %v3183_v29, %v3191_v47  ;;  %v3196_v34 = vsel %vm105_vm1, %v3194_v49, 0.0 }
 0xb1f   :  { %3197 = vadd.xlane.f32.xlu0 %v3196_v34 }
 0xb20   :  { %v3195_v55 = vmul.f32 %v3193_v53, %v3193_v53 }
 0xb22   :  { %v3199_v56 = vsel %vm105_vm1, %v3195_v55, 0.0 }
 0xb23   :  { %3200 = vadd.xlane.f32.xlu1 %v3199_v56 }
 0xba8   :  { %v3198_v39 = vpop.xlane.xlu0 %3197 }
 0xba9   :  { %v3202_v37 = vmul.f32 0.03125, %v3198_v39 }
 0xbab   :  { %v3204_v60 = vadd.f32 1e-06, %v3202_v37 }
 0xbac   :  { %v3201_v48 = vpop.xlane.xlu1 %3200 }
 0xbad   :  { %6843 = vrsqrt.f32 %v3204_v60  ;;  %v3203_v40 = vmul.f32 0.03125, %v3201_v48 }
 0xbaf   :  { %v3205_v61 = vadd.f32 1e-06, %v3203_v40 }
 0xbb1   :  { %6845 = vrsqrt.f32 %v3205_v61 }
 0xbba   :  { %v6844_v1 = vpop.eup %6843 }
 0xbbb   :  { %v3208_v2 = vmul.f32 %v6844_v1, %v3192_v33 }
 0xbbd   :  { %v3217_v14 = vmul.f32 %v6440_v3, %v3208_v2 }
 0xbbe   :  { %v6846_v15 = vpop.eup %6845 }
 0xbbf   :  { %v3209_v4 = vmul.f32 %v6846_v15, %v3193_v53  ;;  %v7561_v38 = vadd.f32 %v6441_v5, %v3217_v14 }
 0xbc1   :  { %v3218_v43 = vmul.f32 %v6440_v3, %v3209_v4 }
 0xbc3   :  { %v7563_v11 = vadd.f32 %v6441_v5, %v3218_v43 }
 0xbc5   :  { %v3228_v16 = vpack.c.bf16 %v7563_v11, %v7561_v38 }
 0xbc7   :  { %6661 = vmatmul.mubr.msk.bf16.vlgmr.msra.gmra.mxu1 %vm105_vm1, %v3228_v16 }
 0xbc8   :  { %6666 = vmatprep.mubr.msk.bf16.mxu1 %vm6962_vm0, %v6961_v0 }
 0xc87   :  { %v3291_v54 = vpop.f32.mrf.mxu1 }
 0xc88   :  { %v7573_v41 = vadd.f32 %v6447_v6, %v3291_v54 }
 0xc89   :  { %v6662_v7 = vpop.f32.mrf.mxu1 }
 0xc8a   :  { %3306 = vrot.lane.b32.xlu1 %v7573_v41, %s6963_s29  ;;  %3300 = vrot.lane.b32.xlu0 %v7573_v41, %s6964_s30 }
 0xc8b   :  { %v3294_v9 = vpop.f32.mrf.mxu1 }
 0xc8c   :  { %v7579_v59 = vadd.f32 %v6447_v6, %v3294_v9 }
 0xc8d   :  { %v6663_v42 = vpop.f32.mrf.mxu1 }
 0xc8e   :  { %3308 = vrot.lane.b32.xlu0 %v7579_v59, %s6963_s29  ;;  %3302 = vrot.lane.b32.xlu1 %v7579_v59, %s6964_s30 }
 0xc92   :  { %3314 = vrot.lane.b32.xlu0 %v7579_v59, %s6965_s15  ;;  %3312 = vrot.lane.b32.xlu1 %v7573_v41, %s6965_s15 }
 0xc96   :  { %3472 = vrot.lane.b32.xlu0 %v7579_v59, %s6966_s18  ;;  %3470 = vrot.lane.b32.xlu1 %v7573_v41, %s6966_s18 }
 0xcfc   :  { %v7593_v8 = vpop.permute.xlu1 %3306  ;;  %v7595_v18 = vpop.permute.xlu0 %3300 }
 0xcfd   :  { %3474 = vrot.lane.b32.xlu1 %v7595_v18, %s6966_s18 }
 0xd00   :  { %v7599_v45 = vpop.permute.xlu1 %3302  ;;  %v7605_v13 = vpop.permute.xlu0 %3308 }
 0xd01   :  { %3478 = vrot.lane.b32.xlu1 %v7593_v8, %s6966_s18  ;;  %3476 = vrot.lane.b32.xlu0 %v7599_v45, %s6966_s18 }
 0xd04   :  { %v7607_v10 = vpop.permute.xlu1 %3312  ;;  %v7613_v12 = vpop.permute.xlu0 %3314 }
 0xd05   :  { %3480 = vrot.lane.b32.xlu0 %v7605_v13, %s6966_s18  ;;  %3482 = vrot.lane.b32.xlu1 %v7607_v10, %s6966_s18 }
 0xd08   :  { %v3471_v63 = vpop.permute.xlu1 %3470  ;;  %v3473_v46 = vpop.permute.xlu0 %3472 }
 0xd09   :  { %3484 = vrot.lane.b32.xlu0 %v7613_v12, %s6966_s18 }
 0xd6f   :  { %v3475_v19 = vpop.permute.xlu1 %3474 }
 0xd73   :  { %v3477_v17 = vpop.permute.xlu0 %3476  ;;  %v3479_v52 = vpop.permute.xlu1 %3478 }
 0xd74   :  { %v3494_v20 = vcombine.low %v3471_v63, %v3479_v52  ;;  %v3495_v22 = vcombine.high %v3471_v63, %v3479_v52 }
 0xd76   :  { %v3502_v50 = vrot.slane %v3494_v20, %v7125_v36  ;;  %v3509_v62 = vrot.slane %v3495_v22, %v7125_v36 }
 0xd77   :  { %v3481_v24 = vpop.permute.xlu0 %3480  ;;  %v3483_v51 = vpop.permute.xlu1 %3482 }
 0xd78   :  { %v3510_v23 = vcombine.low %v3475_v19, %v3483_v51  ;;  %v3511_v25 = vcombine.high %v3475_v19, %v3483_v51  ;;  %v3562_v33 = vcombine.low %v3473_v46, %v3481_v24  ;;  %v3563_v1 = vcombine.high %v3473_v46, %v3481_v24 }
 0xd7a   :  { %v3518_v26 = vrot.slane %v3510_v23, %v7125_v36  ;;  %v3525_v27 = vrot.slane %v3511_v25, %v7125_v36  ;;  %v3570_v58 = vrot.slane %v3562_v33, %v7125_v36  ;;  %v3577_v16 = vrot.slane %v3563_v1, %v7125_v36 }
 0xd7b   :  { %v3485_v28 = vpop.permute.xlu0 %3484 }
 0xd7c   :  { %v3578_v29 = vcombine.low %v3477_v17, %v3485_v28  ;;  %v3526_v30 = vcombine.low %v3502_v50, %v3518_v26  ;;  %v3527_v31 = vcombine.high %v3502_v50, %v3518_v26  ;;  %v3542_v32 = vcombine.low %v3509_v62, %v3525_v27 }
 0xd7d   :  { %v3543_v49 = vcombine.high %v3509_v62, %v3525_v27  ;;  %v3579_v39 = vcombine.high %v3477_v17, %v3485_v28 }
 0xd7e   :  { %v3534_v35 = vrot.slane %v3526_v30, %v7131_v44  ;;  %v3541_v47 = vrot.slane %v3527_v31, %v7131_v44  ;;  %v3586_v53 = vrot.slane %v3578_v29, %v7125_v36  ;;  %v3550_v56 = vrot.slane %v3542_v32, %v7131_v44 }
 0xd7f   :  { %v3557_v37 = vrot.slane %v3543_v49, %v7131_v44  ;;  %v3593_v2 = vrot.slane %v3579_v39, %v7125_v36 }
 0xd80   :  { %v3632_v34 = vpack.c.bf16 %v3541_v47, %v3541_v47  ;;  %v3630_v55 = vpack.c.bf16 %v3534_v35, %v3534_v35  ;;  %v3559_v57 = vcombine.high %v3541_v47, %v6961_v0  ;;  %v3594_v60 = vcombine.low %v3570_v58, %v3586_v53 }
 0xd81   :  { %v3634_v48 = vpack.c.bf16 %v3550_v56, %v3550_v56  ;;  %v3560_v61 = vcombine.high %v3550_v56, %v6961_v0  ;;  %v3595_v3 = vcombine.high %v3570_v58, %v3586_v53  ;;  %v3636_v15 = vpack.c.bf16 %v3557_v37, %v3557_v37 }
 0xd82   :  { %3966 = vxpose.xlu0.c.b16.start.end [1/1] (short) (narrow) %v3632_v34, 16  ;;  %3934 = vxpose.xlu1.c.b16.start.end [1/1] (short) (narrow) %v3630_v55, 16  ;;  %v3633_v40 = vpack.c.bf16 %v3559_v57, %v3559_v57  ;;  %v3561_v14 = vcombine.high %v3557_v37, %v6961_v0  ;;  %v3558_v5 = vcombine.high %v3534_v35, %v6961_v0 }
 0xd83   :  { %v3635_v4 = vpack.c.bf16 %v3560_v61, %v3560_v61  ;;  %v3602_v43 = vrot.slane %v3594_v60, %v7131_v44  ;;  %v3610_v6 = vcombine.low %v3577_v16, %v3593_v2  ;;  %v3609_v42 = vrot.slane %v3595_v3, %v7131_v44 }
 0xd84   :  { %v3637_v54 = vpack.c.bf16 %v3561_v14, %v3561_v14  ;;  %v3631_v7 = vpack.c.bf16 %v3558_v5, %v3558_v5  ;;  %v3611_v63 = vcombine.high %v3577_v16, %v3593_v2 }
 0xd85   :  { %v3626_v9 = vcombine.high %v3602_v43, %v6961_v0  ;;  %v3638_v19 = vpack.c.bf16 %v3602_v43, %v3602_v43  ;;  %v3627_v17 = vcombine.high %v3609_v42, %v6961_v0  ;;  %v3618_v52 = vrot.slane %v3610_v6, %v7131_v44 }
 0xd86   :  { %3998 = vxpose.xlu0.c.b16.start.end [1/1] (short) (narrow) %v3634_v48, 16  ;;  %3982 = vxpose.xlu1.c.b16.start.end [1/1] (short) (narrow) %v3633_v40, 16  ;;  %v3640_v22 = vpack.c.bf16 %v3609_v42, %v3609_v42  ;;  %v3625_v51 = vrot.slane %v3611_v63, %v7131_v44 }
 0xd87   :  { %v3639_v46 = vpack.c.bf16 %v3626_v9, %v3626_v9  ;;  %v3641_v20 = vpack.c.bf16 %v3627_v17, %v3627_v17  ;;  %v3628_v24 = vcombine.high %v3618_v52, %v6961_v0  ;;  %v3642_v25 = vpack.c.bf16 %v3618_v52, %v3618_v52 }
 0xd88   :  { %v3629_v50 = vcombine.high %v3625_v51, %v6961_v0  ;;  %v3644_v26 = vpack.c.bf16 %v3625_v51, %v3625_v51 }
 0xd89   :  { %v3643_v23 = vpack.c.bf16 %v3628_v24, %v3628_v24 }
 0xd8a   :  { %4030 = vxpose.xlu0.c.b16.start.end [1/1] (short) (narrow) %v3636_v15, 16  ;;  %4014 = vxpose.xlu1.c.b16.start.end [1/1] (short) (narrow) %v3635_v4, 16  ;;  %v3645_v62 = vpack.c.bf16 %v3629_v50, %v3629_v50 }
 0xd8e   :  { %4046 = vxpose.xlu1.c.b16.start.end [1/1] (short) (narrow) %v3637_v54, 16  ;;  %3950 = vxpose.xlu0.c.b16.start.end [1/1] (short) (narrow) %v3631_v7, 16 }
 0xd92   :  { %4078 = vxpose.xlu1.c.b16.start.end [1/1] (short) (narrow) %v3639_v46, 16  ;;  %4062 = vxpose.xlu0.c.b16.start.end [1/1] (short) (narrow) %v3638_v19, 16 }
 0xd96   :  { %4110 = vxpose.xlu1.c.b16.start.end [1/1] (short) (narrow) %v3641_v20, 16  ;;  %4094 = vxpose.xlu0.c.b16.start.end [1/1] (short) (narrow) %v3640_v22, 16 }
 0xd9a   :  { %4142 = vxpose.xlu1.c.b16.start.end [1/1] (short) (narrow) %v3643_v23, 16  ;;  %4126 = vxpose.xlu0.c.b16.start.end [1/1] (short) (narrow) %v3642_v25, 16 }
 0xd9e   :  { %4174 = vxpose.xlu1.c.b16.start.end [1/1] (short) (narrow) %v3645_v62, 16  ;;  %4158 = vxpose.xlu0.c.b16.start.end [1/1] (short) (narrow) %v3644_v26, 16 }
 0xde4   :  { %v3974_v27 = vpop.trf.xlu0  ;;  %v3942_v28 = vpop.trf.xlu1 }
 0xde8   :  { %v4006_v29 = vpop.trf.xlu0  ;;  %v3990_v30 = vpop.trf.xlu1 }
 0xde9   :  { %v4190_v58 = vcombine.low %v3942_v28, %v4006_v29 }
 0xdeb   :  { %v4197_v2 = vrot.slane %v4190_v58, %v7125_v36 }
 0xdec   :  { %v4038_v31 = vpop.trf.xlu0  ;;  %v4022_v32 = vpop.trf.xlu1 }
 0xded   :  { %v4198_v55 = vcombine.low %v3974_v27, %v4038_v31 }
 0xdef   :  { %v4205_v60 = vrot.slane %v4198_v55, %v7125_v36 }
 0xdf0   :  { %v4054_v33 = vpop.trf.xlu1  ;;  %v3958_v35 = vpop.trf.xlu0 }
 0xdf1   :  { %v4266_v56 = vcombine.low %v3990_v30, %v4054_v33  ;;  %v4258_v57 = vcombine.low %v3958_v35, %v4022_v32  ;;  %v4222_v5 = vcombine.low %v4197_v2, %v4205_v60  ;;  %v4223_v19 = vcombine.high %v4197_v2, %v4205_v60 }
 0xdf2   :  { %v3403_v2 = vcombine.high %v7599_v45, %v7613_v12 }
 0xdf3   :  { %v4273_v48 = vrot.slane %v4266_v56, %v7125_v36  ;;  %v4265_v40 = vrot.slane %v4258_v57, %v7125_v36  ;;  %v4230_v17 = vrot.slane %v4222_v5, %v7131_v44  ;;  %v4237_v27 = vrot.slane %v4223_v19, %v7131_v44 }
 0xdf4   :  { %v4086_v47 = vpop.trf.xlu1  ;;  %v4070_v49 = vpop.trf.xlu0  ;;  %v3318_v5 = vcombine.low %v7573_v41, %v7593_v8 }
 0xdf5   :  { %v4290_v43 = vcombine.low %v4265_v40, %v4273_v48  ;;  %v4291_v52 = vcombine.high %v4265_v40, %v4273_v48 }
 0xdf7   :  { %v4298_v20 = vrot.slane %v4290_v43, %v7131_v44  ;;  %v4305_v28 = vrot.slane %v4291_v52, %v7131_v44  ;;  %v3319_v43 = vcombine.high %v7573_v41, %v7593_v8 }
 0xdf8   :  { %v4118_v53 = vpop.trf.xlu1  ;;  %v4102_v34 = vpop.trf.xlu0 }
 0xdfc   :  { %v4150_v39 = vpop.trf.xlu1  ;;  %v4134_v37 = vpop.trf.xlu0 }
 0xdfd   :  { %v4274_v61 = vcombine.low %v4086_v47, %v4150_v39  ;;  %v4206_v1 = vcombine.low %v4070_v49, %v4134_v37 }
 0xdff   :  { %v4281_v16 = vrot.slane %v4274_v61, %v7125_v36  ;;  %v4213_v6 = vrot.slane %v4206_v1, %v7125_v36  ;;  %v3402_v1 = vcombine.low %v7599_v45, %v7613_v12 }
 0xe00   :  { %v4182_v3 = vpop.trf.xlu1  ;;  %v4166_v15 = vpop.trf.xlu0 }
 0xe01   :  { %v4282_v4 = vcombine.low %v4118_v53, %v4182_v3  ;;  %v4214_v14 = vcombine.low %v4102_v34, %v4166_v15  ;;  %v3334_v3 = vcombine.low %v7595_v18, %v7607_v10  ;;  %v3335_v15 = vcombine.high %v7595_v18, %v7607_v10 }
 0xe03   :  { %v4289_v54 = vrot.slane %v4282_v4, %v7125_v36  ;;  %v4221_v7 = vrot.slane %v4214_v14, %v7125_v36  ;;  %v3386_v4 = vcombine.low %v7579_v59, %v7605_v13  ;;  %v3387_v14 = vcombine.high %v7579_v59, %v7605_v13 }
 0xe05   :  { %v4306_v9 = vcombine.low %v4281_v16, %v4289_v54  ;;  %v4307_v42 = vcombine.high %v4281_v16, %v4289_v54  ;;  %v4238_v63 = vcombine.low %v4213_v6, %v4221_v7  ;;  %v4239_v46 = vcombine.high %v4213_v6, %v4221_v7 }
 0xe06   :  { %v3342_v16 = vrot.slane %v3334_v3, %v7125_v36  ;;  %v3401_v6 = vrot.slane %v3387_v14, %v7125_v36 }
 0xe07   :  { %v4314_v22 = vrot.slane %v4306_v9, %v7131_v44  ;;  %v4246_v24 = vrot.slane %v4238_v63, %v7131_v44  ;;  %v4321_v51 = vrot.slane %v4307_v42, %v7131_v44  ;;  %v4253_v23 = vrot.slane %v4239_v46, %v7131_v44 }
 0xe09   :  { %v4254_v25 = vcombine.low %v4230_v17, %v4246_v24  ;;  %v4322_v50 = vcombine.low %v4298_v20, %v4314_v22  ;;  %v4255_v62 = vcombine.high %v4230_v17, %v4246_v24  ;;  %v4323_v26 = vcombine.high %v4298_v20, %v4314_v22 }
 0xe0a   :  { %v4256_v32 = vcombine.low %v4237_v27, %v4253_v23  ;;  %v4324_v49 = vcombine.low %v4305_v28, %v4321_v51  ;;  %v4257_v34 = vcombine.high %v4237_v27, %v4253_v23  ;;  %v4325_v58 = vcombine.high %v4305_v28, %v4321_v51 }
 0xe0b   :  { %v4328_v29 = vpack.i.b16 %v4322_v50, %v4254_v25  ;;  %v4330_v30 = vshrl.u32 %v4254_v25, 16  ;;  %v4331_v31 = vshrl.u32 %v4322_v50, 16  ;;  %v4338_v35 = vshrl.u32 %v4255_v62, 16 }
 0xe0c   :  { %v4339_v47 = vshrl.u32 %v4323_v26, 16  ;;  %v4336_v53 = vpack.i.b16 %v4323_v26, %v4255_v62  ;;  %v4346_v56 = vshrl.u32 %v4256_v32, 16  ;;  %v4347_v57 = vshrl.u32 %v4324_v49, 16 }
 0xe0d   :  { %4358 = vxpose.xlu0.c.b16.start.end [1/1] (short) (narrow) %v4328_v29, 16  ;;  %v4332_v33 = vpack.i.b16 %v4331_v31, %v4330_v30  ;;  %v4344_v39 = vpack.i.b16 %v4324_v49, %v4256_v32  ;;  %v4354_v60 = vshrl.u32 %v4257_v34, 16  ;;  %v4355_v48 = vshrl.u32 %v4325_v58, 16 }
 0xe0e   :  { %v4340_v55 = vpack.i.b16 %v4339_v47, %v4338_v35  ;;  %v4348_v37 = vpack.i.b16 %v4347_v57, %v4346_v56  ;;  %v4352_v40 = vpack.i.b16 %v4325_v58, %v4257_v34 }
 0xe0f   :  { %4374 = vxpose.xlu1.c.b16.start.end [1/1] (short) (narrow) %v4332_v33, 16  ;;  %v4356_v61 = vpack.i.b16 %v4355_v48, %v4354_v60 }
 0xe11   :  { %4390 = vxpose.xlu0.c.b16.start.end [1/1] (short) (narrow) %v4336_v53, 16 }
 0xe13   :  { %4406 = vxpose.xlu1.c.b16.start.end [1/1] (short) (narrow) %v4340_v55, 16 }
 0xe15   :  { %4422 = vxpose.xlu0.c.b16.start.end [1/1] (short) (narrow) %v4344_v39, 16 }
 0xe17   :  { %4438 = vxpose.xlu1.c.b16.start.end [1/1] (short) (narrow) %v4348_v37, 16 }
 0xe19   :  { %4454 = vxpose.xlu0.c.b16.start.end [1/1] (short) (narrow) %v4352_v40, 16 }
 0xe1b   :  { %4470 = vxpose.xlu1.c.b16.start.end [1/1] (short) (narrow) %v4356_v61, 16 }
 0xe1f   :  { %3648 = vrot.lane.b32.xlu1 %v7579_v59, %s6969_s19  ;;  %v3326_v59 = vrot.slane %v3318_v5, %v7125_v36 }
 0xe21   :  { %v3351_v42 = vcombine.high %v3326_v59, %v3342_v16 }
 0xe22   :  { %3646 = vrot.lane.b32.xlu0 %v7573_v41, %s6969_s19 }
 0xe23   :  { %3650 = vrot.lane.b32.xlu1 %v7595_v18, %s6969_s19  ;;  %v3349_v18 = vrot.slane %v3335_v15, %v7125_v36  ;;  %v3365_v24 = vrot.slane %v3351_v42, %v7131_v44 }
 0xe25   :  { %v3383_v28 = vcombine.high %v3365_v24, %v6961_v0 }
 0xe26   :  { %3652 = vrot.lane.b32.xlu0 %v7599_v45, %s6969_s19  ;;  %v3410_v45 = vrot.slane %v3402_v1, %v7125_v36 }
 0xe27   :  { %3654 = vrot.lane.b32.xlu1 %v7593_v8, %s6969_s19  ;;  %v3350_v8 = vcombine.low %v3326_v59, %v3342_v16 }
 0xe29   :  { %v3358_v22 = vrot.slane %v3350_v8, %v7131_v44 }
 0xe2a   :  { %3656 = vrot.lane.b32.xlu0 %v7605_v13, %s6969_s19  ;;  %v3333_v13 = vrot.slane %v3319_v43, %v7125_v36 }
 0xe2b   :  { %3658 = vrot.lane.b32.xlu1 %v7607_v10, %s6969_s19  ;;  %v3394_v10 = vrot.slane %v3386_v4, %v7125_v36  ;;  %v3382_v27 = vcombine.high %v3358_v22, %v6961_v0 }
 0xe2c   :  { %v3366_v63 = vcombine.low %v3333_v13, %v3349_v18  ;;  %v3367_v46 = vcombine.high %v3333_v13, %v3349_v18 }
 0xe2d   :  { %v3418_v54 = vcombine.low %v3394_v10, %v3410_v45  ;;  %v3419_v7 = vcombine.high %v3394_v10, %v3410_v45 }
 0xe2e   :  { %3660 = vrot.lane.b32.xlu0 %v7613_v12, %s6969_s19  ;;  %v3417_v12 = vrot.slane %v3403_v2, %v7125_v36  ;;  %v3374_v51 = vrot.slane %v3366_v63, %v7131_v44  ;;  %v3381_v23 = vrot.slane %v3367_v46, %v7131_v44 }
 0xe2f   :  { %v3426_v19 = vrot.slane %v3418_v54, %v7131_v44  ;;  %v3433_v17 = vrot.slane %v3419_v7, %v7131_v44 }
 0xe30   :  { %v3434_v9 = vcombine.low %v3401_v6, %v3417_v12  ;;  %v3435_v41 = vcombine.high %v3401_v6, %v3417_v12  ;;  %v3384_v29 = vcombine.high %v3374_v51, %v6961_v0  ;;  %v3385_v30 = vcombine.high %v3381_v23, %v6961_v0 }
 0xe31   :  { %v3450_v25 = vcombine.high %v3426_v19, %v6961_v0  ;;  %v3451_v50 = vcombine.high %v3433_v17, %v6961_v0  ;;  %v6451_v56 = vpack.c.bf16 %v3374_v51, %v3358_v22  ;;  %v6452_v57 = vpack.c.bf16 %v3381_v23, %v3365_v24 }
 0xe32   :  { %v3442_v52 = vrot.slane %v3434_v9, %v7131_v44  ;;  %v3449_v20 = vrot.slane %v3435_v41, %v7131_v44  ;;  %v6455_v47 = vpack.c.bf16 %v3384_v29, %v3382_v27  ;;  %v6456_v49 = vpack.c.bf16 %v3385_v30, %v3383_v28 }
 0xe33   :  { %v3829_v2 = vrot.slane %v6451_v56, %v7125_v36  ;;  %v3837_v3 = vrot.slane %v6452_v57, %v7125_v36 }
 0xe34   :  { %v3452_v62 = vcombine.high %v3442_v52, %v6961_v0  ;;  %v3453_v26 = vcombine.high %v3449_v20, %v6961_v0  ;;  %v6453_v34 = vpack.c.bf16 %v3442_v52, %v3426_v19  ;;  %v6454_v55 = vpack.c.bf16 %v3449_v20, %v3433_v17 }
 0xe35   :  { %v3879_v37 = vrot.slane %v6455_v47, %v7125_v36  ;;  %v3887_v60 = vrot.slane %v6456_v49, %v7125_v36  ;;  %v3854_v18 = vcombine.low %v3829_v2, %v3837_v3 }
 0xe36   :  { %v6457_v33 = vpack.c.bf16 %v3452_v62, %v3450_v25  ;;  %v6458_v35 = vpack.c.bf16 %v3453_v26, %v3451_v50  ;;  %v3845_v61 = vrot.slane %v6453_v34, %v7125_v36  ;;  %v3853_v1 = vrot.slane %v6454_v55, %v7125_v36 }
 0xe37   :  { %v3904_v5 = vcombine.low %v3879_v37, %v3887_v60  ;;  %v3861_v42 = vrot.slane %v3854_v18, %v7131_v44 }
 0xe38   :  { %v3895_v48 = vrot.slane %v6457_v33, %v7125_v36  ;;  %v3903_v40 = vrot.slane %v6458_v35, %v7125_v36  ;;  %v3862_v10 = vcombine.low %v3845_v61, %v3853_v1 }
 0xe39   :  { %v3911_v54 = vrot.slane %v3904_v5, %v7131_v44 }
 0xe3a   :  { %v3912_v43 = vcombine.low %v3895_v48, %v3903_v40  ;;  %v3869_v63 = vrot.slane %v3862_v10, %v7131_v44 }
 0xe3c   :  { %v3919_v7 = vrot.slane %v3912_v43, %v7131_v44  ;;  %v3870_v22 = vcombine.low %v3861_v42, %v3869_v63  ;;  %v3871_v34 = vcombine.high %v3861_v42, %v3869_v63 }
 0xe3e   :  { %v3920_v17 = vcombine.low %v3911_v54, %v3919_v7  ;;  %v3921_v49 = vcombine.high %v3911_v54, %v3919_v7 }
 0xe40   :  { %v3926_v50 = vshrl.u32 %v3920_v17, 16  ;;  %v3932_v55 = vshrl.u32 %v3921_v49, 16  ;;  %v3930_v57 = vpack.i.b16 %v3921_v49, %v3871_v34 }
 0xe6f   :  { %v4366_v31 = vpop.trf.xlu0 }
 0xe71   :  { %v4382_v32 = vpop.trf.xlu1 }
 0xe73   :  { %v4398_v53 = vpop.trf.xlu0 }
 0xe75   :  { %v4414_v58 = vpop.trf.xlu1 }
 0xe77   :  { %v4430_v39 = vpop.trf.xlu0 }
 0xe78   :  { %v4486_v4 = vcombine.low %v4366_v31, %v4430_v39  ;;  %v3924_v31 = vpack.i.b16 %v3920_v17, %v3870_v22 }
 0xe79   :  { %v4446_v15 = vpop.trf.xlu1 }
 0xe7a   :  { %v4511_v45 = vcombine.low %v4382_v32, %v4446_v15  ;;  %v4493_v6 = vrot.slane %v4486_v4, %v7125_v36  ;;  %v3925_v32 = vshrl.u32 %v3870_v22, 16 }
 0xe7b   :  { %v4462_v14 = vpop.trf.xlu0 }
 0xe7c   :  { %v4494_v12 = vcombine.low %v4398_v53, %v4462_v14  ;;  %v4518_v9 = vrot.slane %v4511_v45, %v7125_v36  ;;  %v3927_v47 = vpack.i.b16 %v3926_v50, %v3925_v32 }
 0xe7d   :  { %v4478_v16 = vpop.trf.xlu1 }
 0xe7e   :  { %v4501_v59 = vrot.slane %v4494_v12, %v7125_v36  ;;  %v4519_v13 = vcombine.low %v4414_v58, %v4478_v16  ;;  %v3931_v58 = vshrl.u32 %v3871_v34, 16 }
 0xe80   :  { %v4502_v41 = vcombine.low %v4493_v6, %v4501_v59  ;;  %v4526_v8 = vrot.slane %v4519_v13, %v7125_v36  ;;  %v3933_v37 = vpack.i.b16 %v3932_v55, %v3931_v58  ;;  %v6889_v58 = vld [vmem:[#allocation5] sm:$0xff] }
 0xe82   :  { %v4509_v46 = vrot.slane %v4502_v41, %v7131_v44  ;;  %v4527_v19 = vcombine.low %v4518_v9, %v4526_v8 }
 0xe84   :  { %v4534_v52 = vrot.slane %v4527_v19, %v7131_v44  ;;  %v4510_v20 = vcombine.high %v4509_v46, %v6970_v21  ;;  %v4539_v51 = vshrl.u32 %v4509_v46, 16 }
 0xe86   :  { %v4538_v24 = vpack.i.b16 %v4534_v52, %v4509_v46  ;;  %v4540_v23 = vshrl.u32 %v4534_v52, 16  ;;  %v4535_v25 = vcombine.high %v4534_v52, %v6970_v21  ;;  %v4545_v62 = vshrl.u32 %v4510_v20, 16 }
 0xe88   :  { %v4552_v26 = vsel %vm1404_vm2, %v4538_v24, 0  ;;  %v4541_v27 = vpack.i.b16 %v4540_v23, %v4539_v51  ;;  %v4544_v28 = vpack.i.b16 %v4535_v25, %v4510_v20  ;;  %v4546_v29 = vshrl.u32 %v4535_v25, 16 }
 0xe89   :  { %6665 = vmatpush3.bf16.msra.mxu1 %v4552_v26 }
 0xe8a   :  { %v4599_v30 = vsel %vm1404_vm2, %v4541_v27, 0  ;;  %6676 = vmatprep.subr.bf16.mxu1 %v6961_v0  ;;  %v4547_v33 = vpack.i.b16 %v4546_v29, %v4545_v62  ;;  %v4646_v35 = vsel %vm1404_vm2, %v4544_v28, 0 }
 0xe8b   :  { %6671 = vmatpush3.bf16.msra.mxu0 %v4599_v30 }
 0xe8c   :  { %6667 = vmatmul.mubr.msk.bf16.vlgmr.msra.gmra.mxu1 %vm1400_vm3, %v3924_v31  ;;  %6682 = vmatprep.subr.bf16.mxu0 %v6961_v0  ;;  %v4693_v53 = vsel %vm1404_vm2, %v4547_v33, 0 }
 0xe8d   :  { %6677 = vmatpush3.bf16.msra.mxu1 %v4646_v35  ;;  %6678 = vmatprep.mubr.msk.bf16.mxu1 %vm6962_vm0, %v6961_v0 }
 0xe8e   :  { %6673 = vmatmul.mubr.msk.bf16.vlgmr.msra.gmra.mxu0 %vm1400_vm3, %v3927_v47  ;;  %6688 = vmatprep.subr.bf16.mxu1 %v6961_v0 }
 0xe8f   :  { %6683 = vmatpush3.bf16.msra.mxu0 %v4693_v53  ;;  %6684 = vmatprep.mubr.msk.bf16.mxu0 %vm6962_vm0, %v6961_v0 }
 0xe90   :  { %6694 = vmatprep.subr.bf16.mxu0 %v6961_v0 }
 0xe91   :  { %v3649_v56 = vpop.permute.xlu1 %3648 }
 0xe94   :  { %6679 = vmatmul.mubr.msk.bf16.vlgmr.msra.gmra.mxu1 %vm1400_vm3, %v3930_v57  ;;  %v3647_v39 = vpop.permute.xlu0 %3646 }
 0xe95   :  { %v3651_v60 = vpop.permute.xlu1 %3650  ;;  %6690 = vmatprep.mubr.msk.bf16.mxu1 %vm6962_vm0, %v6961_v0 }
 0xe96   :  { %6685 = vmatmul.mubr.msk.bf16.vlgmr.msra.gmra.mxu0 %vm1400_vm3, %v3933_v37 }
 0xe97   :  { %6696 = vmatprep.mubr.msk.bf16.mxu0 %vm6962_vm0, %v6961_v0 }
 0xe98   :  { %v3653_v48 = vpop.permute.xlu0 %3652 }
 0xe99   :  { %v3655_v40 = vpop.permute.xlu1 %3654 }
 0xe9a   :  { %v3670_v61 = vcombine.low %v3647_v39, %v3655_v40  ;;  %v3671_v1 = vcombine.high %v3647_v39, %v3655_v40 }
 0xe9c   :  { %v3657_v2 = vpop.permute.xlu0 %3656  ;;  %v3678_v5 = vrot.slane %v3670_v61, %v7125_v36  ;;  %v3685_v43 = vrot.slane %v3671_v1, %v7125_v36 }
 0xe9d   :  { %v3739_v3 = vcombine.high %v3649_v56, %v3657_v2  ;;  %v3659_v15 = vpop.permute.xlu1 %3658  ;;  %v3738_v9 = vcombine.low %v3649_v56, %v3657_v2  ;;  %v6890_v2 = vld [vmem:[#allocation5 + $0x8] sm:$0xff] }
 0xe9e   :  { %v3686_v4 = vcombine.low %v3651_v60, %v3659_v15  ;;  %v3687_v14 = vcombine.high %v3651_v60, %v3659_v15 }
 0xe9f   :  { %v7758_v54 = vrot.slane %v3739_v3, %v7125_v36  ;;  %v3746_v24 = vrot.slane %v3738_v9, %v7125_v36 }
 0xea0   :  { %v3694_v45 = vrot.slane %v3686_v4, %v7125_v36  ;;  %v3701_v12 = vrot.slane %v3687_v14, %v7125_v36  ;;  %v3661_v16 = vpop.permute.xlu0 %3660 }
 0xea1   :  { %v3754_v18 = vcombine.low %v3653_v48, %v3661_v16  ;;  %v3755_v10 = vcombine.high %v3653_v48, %v3661_v16 }
 0xea2   :  { %v3702_v6 = vcombine.low %v3678_v5, %v3694_v45  ;;  %v3703_v59 = vcombine.high %v3678_v5, %v3694_v45  ;;  %v3718_v13 = vcombine.low %v3685_v43, %v3701_v12  ;;  %v3719_v42 = vcombine.high %v3685_v43, %v3701_v12 }
 0xea3   :  { %v7761_v7 = vrot.slane %v3755_v10, %v7125_v36  ;;  %v3762_v63 = vrot.slane %v3754_v18, %v7125_v36 }
 0xea4   :  { %v3710_v41 = vrot.slane %v3702_v6, %v7131_v44  ;;  %v3717_v8 = vrot.slane %v3703_v59, %v7131_v44  ;;  %v3726_v22 = vrot.slane %v3718_v13, %v7131_v44  ;;  %v3733_v62 = vrot.slane %v3719_v42, %v7131_v44 }
 0xea5   :  { %v3786_v46 = vcombine.low %v7758_v54, %v7761_v7  ;;  %v3787_v19 = vcombine.high %v7758_v54, %v7761_v7  ;;  %v3770_v23 = vcombine.low %v3746_v24, %v3762_v63  ;;  %v3771_v27 = vcombine.high %v3746_v24, %v3762_v63 }
 0xea6   :  { %v3806_v17 = vpack.c.bf16 %v3710_v41, %v3710_v41  ;;  %v3734_v52 = vcombine.high %v3710_v41, %v6961_v0  ;;  %v3735_v20 = vcombine.high %v3717_v8, %v6961_v0  ;;  %v3736_v50 = vcombine.high %v3726_v22, %v6961_v0 }
 0xea7   :  { %v3808_v26 = vpack.c.bf16 %v3717_v8, %v3717_v8  ;;  %v3737_v29 = vcombine.high %v3733_v62, %v6961_v0  ;;  %v3778_v30 = vrot.slane %v3770_v23, %v7131_v44  ;;  %v3810_v31 = vpack.c.bf16 %v3726_v22, %v3726_v22 }
 0xea8   :  { %4828 = vxpose.xlu1.c.b16.start.end [1/1] (short) (narrow) %v3806_v17, 16  ;;  %v3807_v51 = vpack.c.bf16 %v3734_v52, %v3734_v52  ;;  %v3809_v25 = vpack.c.bf16 %v3735_v20, %v3735_v20  ;;  %v3811_v28 = vpack.c.bf16 %v3736_v50, %v3736_v50  ;;  %v3785_v35 = vrot.slane %v3771_v27, %v7131_v44 }
 0xea9   :  { %v3813_v32 = vpack.c.bf16 %v3737_v29, %v3737_v29  ;;  %v3802_v33 = vcombine.high %v3778_v30, %v6961_v0  ;;  %v3812_v47 = vpack.c.bf16 %v3733_v62, %v3733_v62  ;;  %v3814_v34 = vpack.c.bf16 %v3778_v30, %v3778_v30 }
 0xeaa   :  { %4844 = vxpose.xlu0.c.b16.start.end [1/1] (short) (narrow) %v3807_v51, 16  ;;  %v3803_v53 = vcombine.high %v3785_v35, %v6961_v0  ;;  %v3816_v56 = vpack.c.bf16 %v3785_v35, %v3785_v35  ;;  %v3794_v51 = vrot.slane %v3786_v46, %v7131_v44 }
 0xeab   :  { %v3815_v49 = vpack.c.bf16 %v3802_v33, %v3802_v33 }
 0xeac   :  { %4876 = vxpose.xlu1.c.b16.start.end [1/1] (short) (narrow) %v3809_v25, 16  ;;  %v3817_v55 = vpack.c.bf16 %v3803_v53, %v3803_v53  ;;  %v3818_v23 = vpack.c.bf16 %v3794_v51, %v3794_v51  ;;  %v3801_v25 = vrot.slane %v3787_v19, %v7131_v44  ;;  %v3804_v50 = vcombine.high %v3794_v51, %v6961_v0 }
 0xeae   :  { %4860 = vxpose.xlu0.c.b16.start.end [1/1] (short) (narrow) %v3808_v26, 16  ;;  %v3820_v62 = vpack.c.bf16 %v3801_v25, %v3801_v25  ;;  %v3819_v26 = vpack.c.bf16 %v3804_v50, %v3804_v50  ;;  %v3805_v27 = vcombine.high %v3801_v25, %v6961_v0 }
 0xeb0   :  { %4908 = vxpose.xlu1.c.b16.start.end [1/1] (short) (narrow) %v3811_v28, 16  ;;  %v3821_v28 = vpack.c.bf16 %v3805_v27, %v3805_v27 }
 0xeb2   :  { %4892 = vxpose.xlu0.c.b16.start.end [1/1] (short) (narrow) %v3810_v31, 16 }
 0xeb4   :  { %4940 = vxpose.xlu1.c.b16.start.end [1/1] (short) (narrow) %v3813_v32, 16 }
 0xeb6   :  { %4924 = vxpose.xlu0.c.b16.start.end [1/1] (short) (narrow) %v3812_v47, 16 }
 0xeb8   :  { %4972 = vxpose.xlu1.c.b16.start.end [1/1] (short) (narrow) %v3815_v49, 16 }
 0xeba   :  { %4956 = vxpose.xlu0.c.b16.start.end [1/1] (short) (narrow) %v3814_v34, 16 }
 0xebc   :  { %5004 = vxpose.xlu1.c.b16.start.end [1/1] (short) (narrow) %v3817_v55, 16 }
 0xebe   :  { %4988 = vxpose.xlu0.c.b16.start.end [1/1] (short) (narrow) %v3816_v56, 16 }
 0xf0a   :  { %v4836_v30 = vpop.trf.xlu1 }
 0xf0c   :  { %v4852_v29 = vpop.trf.xlu0 }
 0xf0e   :  { %v4884_v31 = vpop.trf.xlu1 }
 0xf10   :  { %v4868_v46 = vpop.trf.xlu0 }
 0xf12   :  { %v4916_v33 = vpop.trf.xlu1 }
 0xf14   :  { %v4900_v32 = vpop.trf.xlu0 }
 0xf16   :  { %v4948_v54 = vpop.trf.xlu1 }
 0xf18   :  { %v4932_v35 = vpop.trf.xlu0 }
 0xf1a   :  { %v4980_v19 = vpop.trf.xlu1 }
 0xf1c   :  { %v4964_v7 = vpop.trf.xlu0 }
 0xf1e   :  { %v5012_v49 = vpop.trf.xlu1 }
 0xf20   :  { %v4996_v47 = vpop.trf.xlu0 }
 0xf4c   :  { %v4588_v57 = vpop.f32.mrf.mxu1 }
 0xf4d   :  { %v7781_v39 = vadd.f32 %v6889_v58, %v4588_v57 }
 0xf4e   :  { %v6668_v37 = vpop.f32.mrf.mxu1  ;;  %v4635_v60 = vpop.f32.mrf.mxu0 }
 0xf4f   :  { %v7783_v48 = vadd.f32 %v6889_v58, %v4635_v60  ;;  %v4736_v40 = vsel %vm1590_vm4, %v7781_v39, -inf  ;;  %v5084_v60 = vcombine.low %v4836_v30, %v4900_v32 }
 0xf50   :  { %4737 = vmax.xlane.f32.xlu0 %v4736_v40  ;;  %v4591_v61 = vpop.f32.mrf.mxu1  ;;  %v6674_v1 = vpop.f32.mrf.mxu0  ;;  %v5092_v40 = vcombine.low %v4868_v46, %v4932_v35 }
 0xf51   :  { %v7787_v3 = vadd.f32 %v6890_v2, %v4591_v61  ;;  %v4742_v43 = vsel %vm1590_vm4, %v7783_v48, -inf }
 0xf52   :  { %v6669_v15 = vpop.f32.mrf.mxu1  ;;  %v4638_v4 = vpop.f32.mrf.mxu0 }
 0xf53   :  { %v7789_v14 = vadd.f32 %v6890_v2, %v4638_v4  ;;  %v4739_v5 = vsel %vm1590_vm4, %v7787_v3, -inf  ;;  %v5091_v15 = vrot.slane %v5084_v60, %v7125_v36  ;;  %v5160_v4 = vcombine.low %v4884_v31, %v4948_v54 }
 0xf54   :  { %4740 = vmax.xlane.f32.xlu1 %v4739_v5  ;;  %v4682_v45 = vpop.f32.mrf.mxu1  ;;  %4743 = vmax.xlane.f32.xlu0 %v4742_v43  ;;  %v6675_v12 = vpop.f32.mrf.mxu0  ;;  %v5099_v5 = vrot.slane %v5092_v40, %v7125_v36 }
 0xf55   :  { %v7795_v16 = vadd.f32 %v6889_v58, %v4682_v45  ;;  %v4745_v13 = vsel %vm1590_vm4, %v7789_v14, -inf }
 0xf56   :  { %v6680_v18 = vpop.f32.mrf.mxu1  ;;  %v4729_v10 = vpop.f32.mrf.mxu0 }
 0xf57   :  { %v7797_v6 = vadd.f32 %v6889_v58, %v4729_v10  ;;  %v4748_v59 = vsel %vm1590_vm4, %v7795_v16, -inf }
 0xf58   :  { %v4685_v9 = vpop.f32.mrf.mxu1  ;;  %4749 = vmax.xlane.f32.xlu0 %v4748_v59  ;;  %4746 = vmax.xlane.f32.xlu1 %v4745_v13  ;;  %v6686_v41 = vpop.f32.mrf.mxu0  ;;  %v5167_v59 = vrot.slane %v5160_v4, %v7125_v36  ;;  %v5117_v13 = vcombine.high %v5091_v15, %v5099_v5 }
 0xf59   :  { %v7803_v8 = vadd.f32 %v6890_v2, %v4685_v9  ;;  %v4754_v20 = vsel %vm1590_vm4, %v7797_v6, -inf }
 0xf5a   :  { %v6681_v42 = vpop.f32.mrf.mxu1  ;;  %v4732_v63 = vpop.f32.mrf.mxu0  ;;  %v5131_v25 = vrot.slane %v5117_v13, %v7131_v44 }
 0xf5b   :  { %v7805_v17 = vadd.f32 %v6890_v2, %v4732_v63  ;;  %v4751_v52 = vsel %vm1590_vm4, %v7803_v8, -inf  ;;  %v5152_v2 = vcombine.low %v4852_v29, %v4916_v33 }
 0xf5c   :  { %4752 = vmax.xlane.f32.xlu1 %v4751_v52  ;;  %4755 = vmax.xlane.f32.xlu0 %v4754_v20  ;;  %v6687_v22 = vpop.f32.mrf.mxu0  ;;  %v5116_v52 = vcombine.low %v5091_v15, %v5099_v5 }
 0xf5d   :  { %v4757_v24 = vsel %vm1590_vm4, %v7805_v17, -inf  ;;  %v5159_v10 = vrot.slane %v5152_v2, %v7125_v36 }
 0xf5f   :  { %v5184_v51 = vcombine.low %v5159_v10, %v5167_v59 }
 0xf60   :  { %4758 = vmax.xlane.f32.xlu1 %v4757_v24 }
 0xf61   :  { %v5192_v31 = vrot.slane %v5184_v51, %v7131_v44 }
 0xf89   :  { %5020 = vxpose.xlu0.c.b16.start.end [1/1] (short) (narrow) %v3818_v23, 16  ;;  %v5185_v23 = vcombine.high %v5159_v10, %v5167_v59 }
 0xf8b   :  { %v5199_v32 = vrot.slane %v5185_v23, %v7131_v44 }
 0xf8d   :  { %5052 = vxpose.xlu0.c.b16.start.end [1/1] (short) (narrow) %v3820_v62, 16  ;;  %5036 = vxpose.xlu1.c.b16.start.end [1/1] (short) (narrow) %v3819_v26, 16 }
 0xf91   :  { %5068 = vxpose.xlu1.c.b16.start.end [1/1] (short) (narrow) %v3821_v28, 16  ;;  %v5124_v28 = vrot.slane %v5116_v52, %v7131_v44 }
 0xfd9   :  { %v4738_v53 = vpop.xlane.xlu0 %4737 }
 0xfdd   :  { %v7823_v34 = vpop.xlane.xlu1 %4740  ;;  %v7825_v55 = vpop.xlane.xlu0 %4743 }
 0xfde   :  { %v4761_v60 = vsub.f32 %v7787_v3, %v7823_v34 }
 0xfe0   :  { %v4770_v3 = vmul.f32 1.442695, %v4761_v60 }
 0xfe1   :  { %v7827_v56 = vpop.xlane.xlu0 %4749  ;;  %v7829_v57 = vpop.xlane.xlu1 %4746 }
 0xfe2   :  { %v4763_v10 = vsub.f32 %v7789_v14, %v7829_v57 }
 0xfe5   :  { %v7831_v58 = vpop.xlane.xlu1 %4752  ;;  %v7833_v37 = vpop.xlane.xlu0 %4755 }
 0xfe6   :  { %v4765_v52 = vsub.f32 %v7803_v8, %v7831_v58 }
 0xfe9   :  { %v7835_v61 = vpop.xlane.xlu1 %4758 }
 0xfeb   :  { %v5028_v1 = vpop.trf.xlu0 }
 0xfec   :  { %v5100_v43 = vcombine.low %v4964_v7, %v5028_v1  ;;  %v4760_v7 = vsub.f32 %v7781_v39, %v4738_v53  ;;  %v4762_v39 = vsub.f32 %v7783_v48, %v7825_v55 }
 0xfee   :  { %v5107_v9 = vrot.slane %v5100_v43, %v7125_v36  ;;  %v4768_v4 = vmul.f32 1.442695, %v4760_v7 }
 0xfef   :  { %v5060_v45 = vpop.trf.xlu0  ;;  %v5044_v12 = vpop.trf.xlu1 }
 0xff0   :  { %v5108_v18 = vcombine.low %v4996_v47, %v5060_v45  ;;  %v5168_v42 = vcombine.low %v4980_v19, %v5044_v12  ;;  %6847 = vpow2.f32 %v4768_v4 }
 0xff1   :  { %6849 = vpow2.f32 %v4770_v3 }
 0xff2   :  { %v5115_v41 = vrot.slane %v5108_v18, %v7125_v36  ;;  %v5175_v26 = vrot.slane %v5168_v42, %v7125_v36  ;;  %v4764_v42 = vsub.f32 %v7795_v16, %v7827_v56  ;;  %v4778_v16 = vmul.f32 1.442695, %v4765_v52 }
 0xff3   :  { %v5076_v63 = vpop.trf.xlu1  ;;  %v4767_v56 = vsub.f32 %v7805_v17, %v7835_v61 }
 0xff4   :  { %v5132_v20 = vcombine.low %v5107_v9, %v5115_v41  ;;  %v5133_v22 = vcombine.high %v5107_v9, %v5115_v41  ;;  %v5176_v24 = vcombine.low %v5012_v49, %v5076_v63  ;;  %v4772_v41 = vmul.f32 1.442695, %v4762_v39 }
 0xff5   :  { %v4774_v63 = vmul.f32 1.442695, %v4763_v10  ;;  %v4776_v57 = vmul.f32 1.442695, %v4764_v42  ;;  %v4782_v8 = vmul.f32 1.442695, %v4767_v56 }
 0xff6   :  { %v5140_v50 = vrot.slane %v5132_v20, %v7131_v44  ;;  %v5147_v62 = vrot.slane %v5133_v22, %v7131_v44  ;;  %v5183_v27 = vrot.slane %v5176_v24, %v7125_v36  ;;  %6851 = vpow2.f32 %v4772_v41 }
 0xff7   :  { %v4766_v22 = vsub.f32 %v7797_v6, %v7833_v37  ;;  %6853 = vpow2.f32 %v4774_v63 }
 0xff8   :  { %v7849_v29 = vcombine.high %v5131_v25, %v5147_v62  ;;  %v5200_v30 = vcombine.low %v5175_v26, %v5183_v27  ;;  %v5201_v46 = vcombine.high %v5175_v26, %v5183_v27  ;;  %v5148_v54 = vcombine.low %v5124_v28, %v5140_v50 }
 0xff9   :  { %v5149_v15 = vcombine.high %v5124_v28, %v5140_v50  ;;  %v5150_v9 = vcombine.low %v5131_v25, %v5147_v62  ;;  %6855 = vpow2.f32 %v4776_v57  ;;  %v4780_v51 = vmul.f32 1.442695, %v4766_v22 }
 0xffa   :  { %v5208_v33 = vrot.slane %v5200_v30, %v7131_v44  ;;  %v5215_v35 = vrot.slane %v5201_v46, %v7131_v44  ;;  %v5224_v1 = vshrl.u32 %v5148_v54, 16  ;;  %v5248_v43 = vshrl.u32 %v7849_v29, 16 }
 0xffb   :  { %v5232_v13 = vshrl.u32 %v5149_v15, 16  ;;  %v5240_v14 = vshrl.u32 %v5150_v9, 16  ;;  %6857 = vpow2.f32 %v4778_v16 }
 0xffc   :  { %v7856_v19 = vcombine.high %v5199_v32, %v5215_v35  ;;  %v5216_v47 = vcombine.low %v5192_v31, %v5208_v33  ;;  %v5217_v49 = vcombine.high %v5192_v31, %v5208_v33  ;;  %v5218_v18 = vcombine.low %v5199_v32, %v5215_v35 }
 0xffd   :  { %v6848_v58 = vpop.eup %6847  ;;  %6859 = vpow2.f32 %v4780_v51 }
 0xffe   :  { %v5222_v40 = vpack.i.b16 %v5216_v47, %v5148_v54  ;;  %v5225_v2 = vshrl.u32 %v5216_v47, 16  ;;  %v5246_v5 = vpack.i.b16 %v7856_v19, %v7849_v29  ;;  %v5249_v45 = vshrl.u32 %v7856_v19, 16  ;;  %v6850_v23 = vpop.eup %6849 }
 0xfff   :  { %v5233_v12 = vshrl.u32 %v5217_v49, 16  ;;  %v5230_v59 = vpack.i.b16 %v5217_v49, %v5149_v15  ;;  %v5241_v55 = vshrl.u32 %v5218_v18, 16  ;;  %v5238_v20 = vpack.i.b16 %v5218_v18, %v5150_v9 }
0x1000   :  { %5252 = vxpose.xlu0.c.b16.start.end [1/1] (short) (narrow) %v5222_v40, 16  ;;  %v5226_v53 = vpack.i.b16 %v5225_v2, %v5224_v1  ;;  %v5250_v34 = vpack.i.b16 %v5249_v45, %v5248_v43  ;;  %6861 = vpow2.f32 %v4782_v8  ;;  %v4784_v25 = vsel %vm1590_vm4, %v6848_v58, 0.0 }
0x1001   :  { %v5234_v48 = vpack.i.b16 %v5233_v12, %v5232_v13  ;;  %v5242_v24 = vpack.i.b16 %v5241_v55, %v5240_v14  ;;  %v4787_v6 = vsel %vm1590_vm4, %v6850_v23, 0.0 }
0x1002   :  { %5268 = vxpose.xlu1.c.b16.start.end [1/1] (short) (narrow) %v5226_v53, 16 }
0x1003   :  { %v6852_v50 = vpop.eup %6851 }
0x1004   :  { %5284 = vxpose.xlu0.c.b16.start.end [1/1] (short) (narrow) %v5230_v59, 16  ;;  %v6854_v37 = vpop.eup %6853  ;;  %v4790_v62 = vsel %vm1590_vm4, %v6852_v50, 0.0 }
0x1005   :  { %v4793_v61 = vsel %vm1590_vm4, %v6854_v37, 0.0 }
0x1006   :  { %5300 = vxpose.xlu1.c.b16.start.end [1/1] (short) (narrow) %v5234_v48, 16  ;;  %v7879_v17 = vpop.eup %6855 }
0x1007   :  { %v4796_v27 = vsel %vm1590_vm4, %v7879_v17, 0.0 }
0x1008   :  { %5316 = vxpose.xlu0.c.b16.start.end [1/1] (short) (narrow) %v5238_v20, 16  ;;  %v7882_v26 = vpop.eup %6857 }
0x1009   :  { %v4799_v30 = vsel %vm1590_vm4, %v7882_v26, 0.0 }
0x100a   :  { %5332 = vxpose.xlu1.c.b16.start.end [1/1] (short) (narrow) %v5242_v24, 16  ;;  %v7886_v28 = vpop.eup %6859 }
0x100b   :  { %v4802_v31 = vsel %vm1590_vm4, %v7886_v28, 0.0 }
0x100d   :  { %v7890_v46 = vpop.eup %6861 }
0x100e   :  { %v4805_v32 = vsel %vm1590_vm4, %v7890_v46, 0.0 }
0x1015   :  { %4785 = vadd.xlane.f32.xlu0 %v4784_v25 }
0x1017   :  { %4788 = vadd.xlane.f32.xlu1 %v4787_v6 }
0x1019   :  { %4791 = vadd.xlane.f32.xlu0 %v4790_v62 }
0x101b   :  { %4794 = vadd.xlane.f32.xlu1 %v4793_v61 }
0x101d   :  { %4797 = vadd.xlane.f32.xlu0 %v4796_v27 }
0x101f   :  { %4800 = vadd.xlane.f32.xlu1 %v4799_v30 }
0x1021   :  { %4803 = vadd.xlane.f32.xlu0 %v4802_v31 }
0x1023   :  { %4806 = vadd.xlane.f32.xlu1 %v4805_v32 }
0x104e   :  { %5348 = vxpose.xlu0.c.b16.start.end [1/1] (short) (narrow) %v5246_v5, 16 }
0x1050   :  { %5364 = vxpose.xlu1.c.b16.start.end [1/1] (short) (narrow) %v5250_v34, 16 }
0x1062   :  { %v5260_v33 = vpop.trf.xlu0 }
0x1064   :  { %v5276_v35 = vpop.trf.xlu1 }
0x1066   :  { %v5292_v54 = vpop.trf.xlu0 }
0x1068   :  { %v5308_v7 = vpop.trf.xlu1 }
0x106a   :  { %v5324_v47 = vpop.trf.xlu0 }
0x106b   :  { %v5380_v45 = vcombine.low %v5260_v33, %v5324_v47 }
0x106c   :  { %v5340_v49 = vpop.trf.xlu1 }
0x106d   :  { %v5405_v3 = vcombine.low %v5276_v35, %v5340_v49  ;;  %v5387_v13 = vrot.slane %v5380_v45, %v7125_v36 }
0x106f   :  { %v5412_v20 = vrot.slane %v5405_v3, %v7125_v36 }
0x109e   :  { %v4786_v60 = vpop.xlane.xlu0 %4785 }
0x109f   :  { %6863 = vrcp.f32 %v4786_v60 }
0x10a0   :  { %v4789_v40 = vpop.xlane.xlu1 %4788 }
0x10a1   :  { %6865 = vrcp.f32 %v4789_v40 }
0x10a2   :  { %v4792_v1 = vpop.xlane.xlu0 %4791 }
0x10a3   :  { %6867 = vrcp.f32 %v4792_v1 }
0x10a4   :  { %v4795_v2 = vpop.xlane.xlu1 %4794 }
0x10a5   :  { %6869 = vrcp.f32 %v4795_v2 }
0x10a6   :  { %v4798_v15 = vpop.xlane.xlu0 %4797 }
0x10a7   :  { %6871 = vrcp.f32 %v4798_v15 }
0x10a8   :  { %v4801_v4 = vpop.xlane.xlu1 %4800 }
0x10a9   :  { %6873 = vrcp.f32 %v4801_v4 }
0x10aa   :  { %v4804_v29 = vpop.xlane.xlu0 %4803 }
0x10ab   :  { %6875 = vrcp.f32 %v4804_v29 }
0x10ac   :  { %v6864_v19 = vpop.eup %6863  ;;  %v4807_v5 = vpop.xlane.xlu1 %4806 }
0x10ad   :  { %6877 = vrcp.f32 %v4807_v5  ;;  %v4816_v39 = vmul.f32 %v6864_v19, %v6848_v58 }
0x10ae   :  { %v6866_v43 = vpop.eup %6865 }
0x10af   :  { %v4817_v53 = vmul.f32 %v6866_v43, %v6850_v23 }
0x10b0   :  { %v6868_v12 = vpop.eup %6867  ;;  %v5356_v18 = vpop.trf.xlu0 }
0x10b1   :  { %v5388_v34 = vcombine.low %v5292_v54, %v5356_v18  ;;  %v4824_v10 = vpack.c.bf16 %v4817_v53, %v4816_v39  ;;  %v4818_v41 = vmul.f32 %v6868_v12, %v6852_v50 }
0x10b2   :  { %v6870_v59 = vpop.eup %6869  ;;  %v5372_v9 = vpop.trf.xlu1 }
0x10b3   :  { %v5395_v42 = vrot.slane %v5388_v34, %v7125_v36  ;;  %v5413_v48 = vcombine.low %v5308_v7, %v5372_v9  ;;  %v5446_v55 = vsel %vm1590_vm4, %v4824_v10, 0  ;;  %v4819_v63 = vmul.f32 %v6870_v59, %v6854_v37 }
0x10b4   :  { %v6872_v52 = vpop.eup %6871  ;;  %6689 = vmatpush3.bf16.xpose.msra.mxu1 %v5446_v55 }
0x10b5   :  { %v5396_v14 = vcombine.low %v5387_v13, %v5395_v42  ;;  %v5420_v57 = vrot.slane %v5413_v48, %v7125_v36  ;;  %v4825_v22 = vpack.c.bf16 %v4819_v63, %v4818_v41  ;;  %6700 = vmatprep.subr.bf16.mxu1 %v6961_v0  ;;  %v4820_v16 = vmul.f32 %v6872_v52, %v7879_v17 }
0x10b6   :  { %v6874_v24 = vpop.eup %6873 }
0x10b7   :  { %v5403_v56 = vrot.slane %v5396_v14, %v7131_v44  ;;  %v5421_v51 = vcombine.low %v5412_v20, %v5420_v57  ;;  %v5492_v8 = vsel %vm1590_vm4, %v4825_v22, 0  ;;  %v4821_v58 = vmul.f32 %v6874_v24, %v7882_v26 }
0x10b8   :  { %6695 = vmatpush3.bf16.xpose.msra.mxu0 %v5492_v8  ;;  %v6876_v23 = vpop.eup %6875 }
0x10b9   :  { %v5428_v25 = vrot.slane %v5421_v51, %v7131_v44  ;;  %v4826_v50 = vpack.c.bf16 %v4821_v58, %v4820_v16  ;;  %6706 = vmatprep.subr.bf16.mxu0 %v6961_v0  ;;  %v5433_v37 = vshrl.u32 %v5403_v56, 16  ;;  %v4822_v27 = vmul.f32 %v6876_v23, %v7886_v28 }
0x10ba   :  { %v6878_v6 = vpop.eup %6877  ;;  %v5404_v33 = vcombine.high %v5403_v56, %v6970_v21 }
0x10bb   :  { %v5432_v62 = vpack.i.b16 %v5428_v25, %v5403_v56  ;;  %v5434_v61 = vshrl.u32 %v5428_v25, 16  ;;  %v5538_v17 = vsel %vm1590_vm4, %v4826_v50, 0  ;;  %v4823_v30 = vmul.f32 %v6878_v6, %v7890_v46 }
0x10bc   :  { %v5429_v31 = vcombine.high %v5428_v25, %v6970_v21  ;;  %v5439_v54 = vshrl.u32 %v5404_v33, 16 }
0x10bd   :  { %6691 = vmatmul.mubr.msk.bf16.vlgmr.msra.gmra.mxu1 %vm1590_vm4, %v5432_v62  ;;  %v5435_v26 = vpack.i.b16 %v5434_v61, %v5433_v37  ;;  %v4827_v32 = vpack.c.bf16 %v4823_v30, %v4822_v27 }
0x10be   :  { %6701 = vmatpush3.bf16.xpose.msra.mxu1 %v5538_v17  ;;  %6702 = vmatprep.mubr.msk.bf16.mxu1 %vm6962_vm0, %v6961_v0  ;;  %v5440_v46 = vshrl.u32 %v5429_v31, 16  ;;  %v5438_v35 = vpack.i.b16 %v5429_v31, %v5404_v33 }
0x10bf   :  { %6697 = vmatmul.mubr.msk.bf16.vlgmr.msra.gmra.mxu0 %vm1590_vm4, %v5435_v26  ;;  %6712 = vmatprep.subr.bf16.mxu1 %v6961_v0  ;;  %v5584_v28 = vsel %vm1590_vm4, %v4827_v32, 0 }
0x10c0   :  { %6708 = vmatprep.mubr.msk.bf16.mxu0 %vm6962_vm0, %v6961_v0  ;;  %6707 = vmatpush3.bf16.xpose.msra.mxu0 %v5584_v28  ;;  %v5441_v7 = vpack.i.b16 %v5440_v46, %v5439_v54 }
0x10c1   :  { %6720 = vmatprep.subr.bf16.mxu0 %v6961_v0 }
0x10c5   :  { %6703 = vmatmul.mubr.msk.bf16.vlgmr.msra.gmra.mxu1 %vm1590_vm4, %v5438_v35 }
0x10c6   :  { %6716 = vmatprep.mubr.msk.bf16.mxu1 %vm6962_vm0, %v6961_v0 }
0x10c7   :  { %6709 = vmatmul.mubr.msk.bf16.vlgmr.msra.gmra.mxu0 %vm1590_vm4, %v5441_v7 }
0x10c8   :  { %6724 = vmatprep.mubr.msk.bf16.mxu0 %vm6962_vm0, %v6961_v0 }
0x117d   :  { %v5482_v21 = vpop.f32.mrf.mxu1 }
0x117e   :  { %5626 = vxpose.xlu0.b32.start.end [1/1] (short) (narrow) %v5482_v21, 16 }
0x117f   :  { %v6692_v47 = vpop.f32.mrf.mxu1  ;;  %v5528_v49 = vpop.f32.mrf.mxu0 }
0x1180   :  { %5658 = vxpose.xlu1.b32.start.end [1/1] (short) (narrow) %v5528_v49, 16 }
0x1181   :  { %v5485_v60 = vpop.f32.mrf.mxu1  ;;  %v6698_v40 = vpop.f32.mrf.mxu0 }
0x1183   :  { %v6693_v1 = vpop.f32.mrf.mxu1  ;;  %v5531_v2 = vpop.f32.mrf.mxu0 }
0x1185   :  { %v6699_v15 = vpop.f32.mrf.mxu0  ;;  %v5574_v4 = vpop.f32.mrf.mxu1 }
0x1186   :  { %5690 = vxpose.xlu0.b32.start.end [1/1] (short) (narrow) %v5574_v4, 16 }
0x1187   :  { %v6704_v29 = vpop.f32.mrf.mxu1  ;;  %v5620_v19 = vpop.f32.mrf.mxu0 }
0x1189   :  { %v5577_v5 = vpop.f32.mrf.mxu1  ;;  %v6710_v43 = vpop.f32.mrf.mxu0 }
0x118b   :  { %v6705_v45 = vpop.f32.mrf.mxu1  ;;  %5722 = vxpose.xlu0.b32.start.end [1/1] (short) (narrow) %v5620_v19, 16  ;;  %v5623_v39 = vpop.f32.mrf.mxu0 }
0x118d   :  { %v6711_v53 = vpop.f32.mrf.mxu0 }
0x118e   :  { %v6799_v53 = vld [vmem:[%s8050_s4 + $0x18] sm:$0xff]  }
0x118f   :  { %6713 = vmatpush3.bf16.msra.mxu1 %v6799_v53 }
0x1190   :  { %6714 = vmatprep.subr.bf16.mxu1 %v6961_v0 }
0x11fa   :  { %v5642_v12 = vpop.trf.xlu0 }
0x11fc   :  { %v5674_v10 = vpop.trf.xlu1 }
0x11fe   :  { %v5643_v18 = vpop.trf.xlu0 }
0x1200   :  { %v5675_v20 = vpop.trf.xlu1 }
0x1202   :  { %v5706_v3 = vpop.trf.xlu0 }
0x1203   :  { %v5754_v59 = vcombine.low %v5642_v12, %v5706_v3  ;;  %v5755_v13 = vcombine.high %v5642_v12, %v5706_v3 }
0x1205   :  { %v5762_v48 = vrot.slane %v5754_v59, %v7125_v36  ;;  %v5769_v55 = vrot.slane %v5755_v13, %v7125_v36 }
0x1206   :  { %v5707_v34 = vpop.trf.xlu0 }
0x1207   :  { %v5822_v14 = vcombine.low %v5643_v18, %v5707_v34  ;;  %v5823_v57 = vcombine.high %v5643_v18, %v5707_v34 }
0x1209   :  { %v5830_v37 = vrot.slane %v5822_v14, %v7125_v36  ;;  %v5837_v62 = vrot.slane %v5823_v57, %v7125_v36 }
0x120a   :  { %v5738_v9 = vpop.trf.xlu0 }
0x120b   :  { %v5770_v41 = vcombine.low %v5674_v10, %v5738_v9  ;;  %v5771_v42 = vcombine.high %v5674_v10, %v5738_v9 }
0x120d   :  { %v5778_v63 = vrot.slane %v5770_v41, %v7125_v36  ;;  %v5785_v52 = vrot.slane %v5771_v42, %v7125_v36 }
0x120e   :  { %v5739_v22 = vpop.trf.xlu0 }
0x120f   :  { %v5786_v24 = vcombine.low %v5762_v48, %v5778_v63  ;;  %v5787_v16 = vcombine.high %v5762_v48, %v5778_v63  ;;  %v5802_v56 = vcombine.low %v5769_v55, %v5785_v52  ;;  %v5803_v51 = vcombine.high %v5769_v55, %v5785_v52  ;;  %v6800_v55 = vld [vmem:[%s8050_s4 + $0x10] sm:$0xff]   ;;  %s6973_s4 = smov [#allocation7]  }
0x1210   :  { %v5838_v8 = vcombine.low %v5675_v20, %v5739_v22  ;;  %v5839_v58 = vcombine.high %v5675_v20, %v5739_v22  ;;  %6715 = vmatpush3.bf16.msra.mxu1 %v6800_v55  ;;  %v6481_v55 = vld [vmem:[%s8056_s10 + $0x1] ss:$0 sm:$0xff]  ;;  %s6387_s18 = sshll.u32 %s6973_s4, 4  ;;  %s6388_s18 = int_to_ptr.vmem [resolvable:$true] %s6387_s18 }
0x1211   :  { %v5794_v23 = vrot.slane %v5786_v24, %v7131_v44  ;;  %v5801_v25 = vrot.slane %v5787_v16, %v7131_v44  ;;  %v5810_v50 = vrot.slane %v5802_v56, %v7131_v44  ;;  %v5817_v6 = vrot.slane %v5803_v51, %v7131_v44  ;;  %6728 = vmatprep.subr.bf16.mxu1 %v6961_v0  ;;  %p6936_p11 = scmp.lt.s32.totalorder %s6388_s18, %s6388_s18 }
0x1212   :  { %v5846_v61 = vrot.slane %v5838_v8, %v7125_v36  ;;  %v5853_v17 = vrot.slane %v5839_v58, %v7125_v36 }
0x1213   :  { %v5890_v27 = vcombine.low %v5794_v23, %v5801_v25  ;;  %v6467_v30 = vcombine.high %v5794_v23, %v5801_v25  ;;  %v5906_v26 = vcombine.low %v5810_v50, %v5817_v6  ;;  %v6468_v31 = vcombine.high %v5810_v50, %v5817_v6 }
0x1214   :  { %v5854_v32 = vcombine.low %v5830_v37, %v5846_v61  ;;  %v5855_v33 = vcombine.high %v5830_v37, %v5846_v61  ;;  %v5870_v28 = vcombine.low %v5837_v62, %v5853_v17  ;;  %v5871_v46 = vcombine.high %v5837_v62, %v5853_v17 }
0x1215   :  { %v5897_v35 = vrot.slane %v5890_v27, %v7125_v36  ;;  %v5905_v54 = vrot.slane %v6467_v30, %v7125_v36  ;;  %v5913_v7 = vrot.slane %v5906_v26, %v7125_v36  ;;  %v5921_v21 = vrot.slane %v6468_v31, %v7125_v36 }
0x1216   :  { %v5862_v47 = vrot.slane %v5854_v32, %v7131_v44  ;;  %v5869_v49 = vrot.slane %v5855_v33, %v7131_v44  ;;  %v5878_v60 = vrot.slane %v5870_v28, %v7131_v44  ;;  %v5885_v40 = vrot.slane %v5871_v46, %v7131_v44 }
0x1217   :  { %v5923_v1 = vcombine.high %v5897_v35, %v5905_v54  ;;  %v5939_v2 = vcombine.high %v5913_v7, %v5921_v21  ;;  %v5922_v15 = vcombine.low %v5897_v35, %v5905_v54  ;;  %v5938_v4 = vcombine.low %v5913_v7, %v5921_v21  ;;  %v6476_v35 = vld [vmem:[%s8051_s5 + $0x1] ss:$0 sm:$0xff]  ;;  %s6931_s5 = scalar_lea.vmem %s6388_s18, 256 }
0x1218   :  { %v5958_v29 = vcombine.low %v5862_v47, %v5869_v49  ;;  %v6469_v19 = vcombine.high %v5862_v47, %v5869_v49  ;;  %v5974_v5 = vcombine.low %v5878_v60, %v5885_v40  ;;  %v6470_v43 = vcombine.high %v5878_v60, %v5885_v40  ;;  %p6932_p10 = scmp.ne.s32.totalorder %s6388_s18, %s6931_s5  ;;  %p6937_p12 = scmp.lt.s32.totalorder %s6931_s5, %s6931_s5 }
0x1219   :  { %v5930_v45 = vrot.slane %v5922_v15, %v7131_v44  ;;  %v5946_v39 = vrot.slane %v5938_v4, %v7131_v44  ;;  %v5937_v10 = vrot.slane %v5923_v1, %v7131_v44  ;;  %v5953_v59 = vrot.slane %v5939_v2, %v7131_v44 }
0x121a   :  { %v5965_v12 = vrot.slane %v5958_v29, %v7125_v36  ;;  %v5973_v18 = vrot.slane %v6469_v19, %v7125_v36  ;;  %v5981_v3 = vrot.slane %v5974_v5, %v7125_v36  ;;  %v5989_v34 = vrot.slane %v6470_v43, %v7125_v36  ;;  %p6938_p13 = por %p6937_p12, %p6936_p11 }
0x121b   :  { %v5954_v13 = vcombine.low %v5930_v45, %v5946_v39  ;;  %v5956_v14 = vcombine.low %v5937_v10, %v5953_v59  ;;  %v5955_v22 = vcombine.high %v5930_v45, %v5946_v39  ;;  %v5957_v58 = vcombine.high %v5937_v10, %v5953_v59 }
0x121c   :  { %v5991_v9 = vcombine.high %v5965_v12, %v5973_v18  ;;  %v6007_v41 = vcombine.high %v5981_v3, %v5989_v34  ;;  %v5990_v42 = vcombine.low %v5965_v12, %v5973_v18  ;;  %v6006_v48 = vcombine.low %v5981_v3, %v5989_v34  ;;  %v6802_v18 = vld [vmem:[%s8052_s6 + $0x10] sm:$0xff]   ;;  %v6803_v3 = vld [vmem:[%s8054_s8 + $0x38] sm:$0xff]   ;;  %p6939_p0 = pnand %p6938_p13, %p6932_p10 }
0x121e   :  { %v6005_v63 = vrot.slane %v5991_v9, %v7131_v44  ;;  %v6021_v36 = vrot.slane %v6007_v41, %v7131_v44  ;;  %v5998_v52 = vrot.slane %v5990_v42, %v7131_v44  ;;  %v6014_v20 = vrot.slane %v6006_v48, %v7131_v44 }
0x1220   :  { %v6024_v57 = vcombine.low %v6005_v63, %v6021_v36  ;;  %v6023_v24 = vcombine.high %v5998_v52, %v6014_v20  ;;  %v6022_v16 = vcombine.low %v5998_v52, %v6014_v20  ;;  %v6025_v8 = vcombine.high %v6005_v63, %v6021_v36  ;;  %v6483_v20 = vld [vmem:[%s8057_s11 + $0x1] ss:$0 sm:$0xff] }
0x1222   :  { %v6777_v56 = vpack.i.bf16 %v6024_v57, %v5956_v14  ;;  %v6772_v51 = vpack.i.bf16 %v6023_v24, %v5955_v22  ;;  %v6782_v23 = vpack.i.bf16 %v6025_v8, %v5957_v58  ;;  %v6489_v8 = vld [vmem:[%s8053_s7 + $0x1] ss:$0 sm:$0xff] }
0x1224   :  { %6778 = vrot.lane.b32.xlu0 %v6777_v56, %s6971_s24  ;;  %6773 = vrot.lane.b32.xlu1 %v6772_v51, %s6959_s17  ;;  %v6805_v56 = vld [vmem:[%s8054_s8 + $0x28] sm:$0xff]   ;;  %v6806_v51 = vld [vmem:[%s8054_s8 + $0x20] sm:$0xff]  }
0x1228   :  { %6783 = vrot.lane.b32.xlu1 %v6782_v23, %s6972_s0 }
0x1296   :  { %v6779_v44 = vpop.permute.xlu0 %6778  ;;  %v6774_v25 = vpop.permute.xlu1 %6773 }
0x1297   :  { %v6776_v50 = vunpack.i.h.bf16 %v6774_v25  ;;  %v6775_v6 = vunpack.i.l.bf16 %v6774_v25  ;;  %v6781_v37 = vunpack.i.h.bf16 %v6779_v44  ;;  %v6780_v62 = vunpack.i.l.bf16 %v6779_v44 }
0x1299   :  { %v6050_v61 = vsel %vm1400_vm3, %v5954_v13, %v6775_v6  ;;  %v6051_v17 = vsel %vm1400_vm3, %v6022_v16, %v6776_v50  ;;  %v6804_v16 = vld [vmem:[%s8054_s8 + $0x30] sm:$0xff]  }
0x129a   :  { %v6784_v27 = vpop.permute.xlu1 %6783  ;;  %v6052_v31 = vsel %vm1590_vm4, %v6050_v61, %v6780_v62  ;;  %v6053_v32 = vsel %vm1590_vm4, %v6051_v17, %v6781_v37 }
0x129b   :  { %v6786_v30 = vunpack.i.h.bf16 %v6784_v27  ;;  %v6785_v26 = vunpack.i.l.bf16 %v6784_v27 }
0x129d   :  { %v6054_v33 = vsel %vm2909_vm5, %v6052_v31, %v6785_v26  ;;  %v6055_v28 = vsel %vm2909_vm5, %v6053_v32, %v6786_v30 }
0x129e   :  { %v6056_v46 = vpack.c.bf16 %v6055_v28, %v6054_v33 }
0x12a0   :  { %6717 = vmatmul.mubr.msk.bf16.vlgmr.msra.gmra.mxu1 %vm105_vm1, %v6056_v46 }
0x12a1   :  { %6736 = vmatprep.mubr.msk.bf16.mxu1 %vm6962_vm0, %v6961_v0  ;;  %6729 = vmatpush3.bf16.msra.mxu1 %v6803_v3 }
0x12a2   :  { %6730 = vmatprep.subr.bf16.mxu1 %v6961_v0 }
0x12a5   :  { %6731 = vmatpush3.bf16.msra.mxu1 %v6804_v16 }
0x12a6   :  { %6732 = vmatprep.subr.bf16.mxu1 %v6961_v0 }
0x12a9   :  { %6733 = vmatpush3.bf16.msra.mxu1 %v6805_v56 }
0x12aa   :  { %6734 = vmatprep.subr.bf16.mxu1 %v6961_v0 }
0x12ad   :  { %6735 = vmatpush3.bf16.msra.mxu1 %v6806_v51 }
0x1360   :  { %v6119_v54 = vpop.f32.mrf.mxu1 }
0x1361   :  { %v6120_v7 = vadd.f32 %v6476_v35, %v6119_v54 }
0x1362   :  { %v6718_v21 = vpop.f32.mrf.mxu1 }
0x1363   :  { %v6126_v47 = vadd.f32 %v6120_v7, %v7561_v38 }
0x1364   :  { %v6122_v49 = vpop.f32.mrf.mxu1 }
0x1365   :  { %v6123_v60 = vadd.f32 %v6476_v35, %v6122_v49  ;;  %v6128_v40 = vsel %vm105_vm1, %v6126_v47, 0.0 }
0x1366   :  { %6129 = vadd.xlane.f32.xlu1 %v6128_v40  ;;  %v6719_v1 = vpop.f32.mrf.mxu1 }
0x1367   :  { %v6127_v2 = vadd.f32 %v6123_v60, %v7563_v11  ;;  %v6801_v11 = vld [vmem:[%s8052_s6 + $0x18] sm:$0xff]  }
0x1368   :  { %6721 = vmatpush3.bf16.msra.mxu0 %v6801_v11 }
0x1369   :  { %v6131_v15 = vsel %vm105_vm1, %v6127_v2, 0.0  ;;  %6722 = vmatprep.subr.bf16.mxu0 %v6961_v0  ;;  %v6502_v0 = vld [vmem:[%s8055_s9 + $0x1] ss:$0 sm:$0xff] }
0x136a   :  { %6132 = vadd.xlane.f32.xlu0 %v6131_v15 }
0x136c   :  { %6723 = vmatpush3.bf16.msra.mxu0 %v6802_v18 }
0x13ef   :  { %v6130_v4 = vpop.xlane.xlu1 %6129 }
0x13f0   :  { %v6134_v29 = vmul.f32 0.03125, %v6130_v4 }
0x13f2   :  { %v6136_v19 = vsub.f32 %v6126_v47, %v6134_v29 }
0x13f3   :  { %v6133_v5 = vpop.xlane.xlu0 %6132 }
0x13f4   :  { %v6135_v43 = vmul.f32 0.03125, %v6133_v5  ;;  %v6138_v45 = vmul.f32 %v6136_v19, %v6136_v19 }
0x13f6   :  { %v6137_v39 = vsub.f32 %v6127_v2, %v6135_v43  ;;  %v6140_v38 = vsel %vm105_vm1, %v6138_v45, 0.0 }
0x13f7   :  { %6141 = vadd.xlane.f32.xlu1 %v6140_v38  ;;  %v6509_v38 = vld [vmem:[%s8058_s12 + $0x1] ss:$0 sm:$0xff] }
0x13f8   :  { %v6139_v53 = vmul.f32 %v6137_v39, %v6137_v39 }
0x13fa   :  { %v6143_v12 = vsel %vm105_vm1, %v6139_v53, 0.0 }
0x13fb   :  { %6144 = vadd.xlane.f32.xlu1 %v6143_v12  ;;  %v6511_v12 = vld [vmem:[%s8059_s13 + $0x1] ss:$0 sm:$0xff] }
0x1480   :  { %v6142_v34 = vpop.xlane.xlu1 %6141 }
0x1481   :  { %v6146_v10 = vmul.f32 0.03125, %v6142_v34 }
0x1483   :  { %v6148_v59 = vadd.f32 1e-06, %v6146_v10 }
0x1484   :  { %v6145_v13 = vpop.xlane.xlu1 %6144 }
0x1485   :  { %6879 = vrsqrt.f32 %v6148_v59  ;;  %v6147_v9 = vmul.f32 0.03125, %v6145_v13 }
0x1487   :  { %v6149_v41 = vadd.f32 1e-06, %v6147_v9 }
0x1489   :  { %6881 = vrsqrt.f32 %v6149_v41 }
0x1492   :  { %v6880_v42 = vpop.eup %6879 }
0x1493   :  { %v6152_v48 = vmul.f32 %v6880_v42, %v6136_v19 }
0x1495   :  { %v6162_v52 = vmul.f32 %v6481_v55, %v6152_v48 }
0x1496   :  { %v6882_v63 = vpop.eup %6881 }
0x1497   :  { %v6153_v36 = vmul.f32 %v6882_v63, %v6137_v39  ;;  %v6172_v57 = vadd.f32 %v6483_v20, %v6162_v52 }
0x1499   :  { %v6163_v14 = vmul.f32 %v6481_v55, %v6153_v36 }
0x149b   :  { %v6173_v22 = vadd.f32 %v6483_v20, %v6163_v14 }
0x149d   :  { %v6174_v24 = vpack.c.bf16 %v6173_v22, %v6172_v57 }
0x149f   :  { %6725 = vmatmul.mubr.msk.bf16.vlgmr.msra.gmra.mxu0 %vm105_vm1, %v6174_v24 }
0x155f   :  { %v6237_v58 = vpop.f32.mrf.mxu0 }
0x1560   :  { %v6238_v44 = vadd.f32 %v6489_v8, %v6237_v58 }
0x1561   :  { %v6726_v23 = vpop.f32.mrf.mxu0 }
0x1562   :  { %v6244_v37 = vmax.f32 %v6238_v44, 0.0 }
0x1563   :  { %v6240_v25 = vpop.f32.mrf.mxu0 }
0x1564   :  { %v6241_v50 = vadd.f32 %v6489_v8, %v6240_v25 }
0x1565   :  { %v6727_v6 = vpop.f32.mrf.mxu0 }
0x1566   :  { %v6245_v62 = vmax.f32 %v6241_v50, 0.0 }
0x1568   :  { %v6246_v61 = vpack.c.bf16 %v6245_v62, %v6244_v37 }
0x156a   :  { %6737 = vmatmul.mubr.msk.bf16.vlgmr.msra.gmra.mxu1 %vm3137_vm6, %v6246_v61 }
0x162a   :  { %v6325_v17 = vpop.f32.mrf.mxu1 }
0x162b   :  { %v6326_v27 = vadd.f32 %v6502_v0, %v6325_v17 }
0x162c   :  { %v6738_v30 = vpop.f32.mrf.mxu1 }
0x162d   :  { %v6332_v26 = vadd.f32 %v6326_v27, %v6172_v57 }
0x162e   :  { %v6328_v31 = vpop.f32.mrf.mxu1 }
0x162f   :  { %v6329_v32 = vadd.f32 %v6502_v0, %v6328_v31  ;;  %v6334_v33 = vsel %vm105_vm1, %v6332_v26, 0.0 }
0x1630   :  { %6335 = vadd.xlane.f32.xlu0 %v6334_v33  ;;  %v6739_v28 = vpop.f32.mrf.mxu1 }
0x1631   :  { %v6333_v46 = vadd.f32 %v6329_v32, %v6173_v22 }
0x1633   :  { %v6337_v35 = vsel %vm105_vm1, %v6333_v46, 0.0 }
0x1634   :  { %6338 = vadd.xlane.f32.xlu1 %v6337_v35 }
0x16b9   :  { %v6336_v54 = vpop.xlane.xlu0 %6335 }
0x16ba   :  { %v6340_v7 = vmul.f32 0.03125, %v6336_v54 }
0x16bc   :  { %v6342_v21 = vsub.f32 %v6332_v26, %v6340_v7 }
0x16bd   :  { %v6339_v47 = vpop.xlane.xlu1 %6338 }
0x16be   :  { %v6341_v49 = vmul.f32 0.03125, %v6339_v47  ;;  %v6344_v60 = vmul.f32 %v6342_v21, %v6342_v21 }
0x16c0   :  { %v6343_v40 = vsub.f32 %v6333_v46, %v6341_v49  ;;  %v6346_v1 = vsel %vm105_vm1, %v6344_v60, 0.0 }
0x16c1   :  { %6347 = vadd.xlane.f32.xlu0 %v6346_v1 }
0x16c2   :  { %v6345_v2 = vmul.f32 %v6343_v40, %v6343_v40 }
0x16c4   :  { %v6349_v15 = vsel %vm105_vm1, %v6345_v2, 0.0 }
0x16c5   :  { %6350 = vadd.xlane.f32.xlu1 %v6349_v15 }
0x174a   :  { %v6348_v4 = vpop.xlane.xlu0 %6347 }
0x174b   :  { %v6352_v29 = vmul.f32 0.03125, %v6348_v4 }
0x174d   :  { %v6354_v19 = vadd.f32 1e-06, %v6352_v29 }
0x174e   :  { %v6351_v5 = vpop.xlane.xlu1 %6350 }
0x174f   :  { %6883 = vrsqrt.f32 %v6354_v19  ;;  %v6353_v43 = vmul.f32 0.03125, %v6351_v5 }
0x1751   :  { %v6355_v45 = vadd.f32 1e-06, %v6353_v43 }
0x1753   :  { %6885 = vrsqrt.f32 %v6355_v45 }
0x175c   :  { %v6884_v39 = vpop.eup %6883 }
0x175d   :  { %v6358_v53 = vmul.f32 %v6884_v39, %v6342_v21 }
0x175f   :  { %v6368_v11 = vmul.f32 %v6509_v38, %v6358_v53 }
0x1760   :  { %v6886_v18 = vpop.eup %6885 }
0x1761   :  { %v6359_v3 = vmul.f32 %v6886_v18, %v6343_v40  ;;  %v6378_v34 = vadd.f32 %v6511_v12, %v6368_v11 }
0x1763   :  { %v6369_v10 = vmul.f32 %v6509_v38, %v6359_v3  ;;  %6380 = vst.msk [vmem:[#allocation7] sm:$0xff] %vm105_vm1, %v6378_v34 }
0x1765   :  { %v6379_v59 = vadd.f32 %v6511_v12, %v6369_v10 }
0x1767   :  { %6381 = vst.msk [vmem:[#allocation7 + $0x8] sm:$0xff] %vm105_vm1, %v6379_v59 }
0x1768   :  { %6942 = shalt.err (!%p6939_p0)
}
0x1769   :  { %6393 = dma.vmem_to_hbm [thread:$0]  %s6388_s18, 256, %s8060_s14, [#allocation4], %s6958_s16, %s6958_s16, %s6959_s17  }
0x176a   :  { %6955 = dma.done.wait [#allocation4], 256  }
0x176b   :  { %6956 = vsyncadd [#allocation4], 4294967040 }
0x176c   :  { %6397 = vsyncpa [#allocation3], 1 }
0x176d   :  { %6398 = vsyncpa [#allocation6], 1 }
0x176e   :  { %6399 = vsyncpa [#allocation4], 1 }

</bundles_post_ra>
